<compile_context>
chip_gen: v5e
topology: v5e:2x2
jax: 0.10.0
libtpu: 0.0.40
codegen_flags: <defaults>
</compile_context>

<pallas_src>
import jax
import jax.numpy as jnp
import numpy as np
from jax.experimental import pallas as pl
from jax.experimental.pallas import tpu as pltpu

HL = 512                 # self.hl_size
HALF = HL // 2           # 256
S_DIM = 17               # state vector size (s_shape[0])
A_DIM = 6                # action vector size (a_shape[0])
IN_DIM = S_DIM + A_DIM   # packed [x_s | x_a] width = 23
BATCH = 256              # demo batch (amortizes the resident-weight DMA)


def critic_kernel(s_ref, x_ref,
                  win_ref, bin_ref,          # fused input layer (23,512) bf16 / (1,512) f32
                  w1_ref, b1_ref,            # fc1 (512,512) bf16 / (1,512) f32
                  w2_ref, b2_ref,            # fc2 (512,512) bf16 / (1,512) f32
                  wo_ref, bo_ref,            # fc_out row (1,512) f32 / (1,1) f32
                  e1_ref, e2_ref,            # efc1 / efc2 embedding rows (1,512) f32
                  out_ref, g1_ref, g2_ref):  # (TILE_B,1), (1,512), (1,512)
    # Gates are batch independent: compute once on the first grid step; the
    # constant-index output blocks stay resident in VMEM for later steps.
    @pl.when(pl.program_id(0) == 0)
    def _():
        g1_ref[...] = jax.nn.sigmoid(s_ref[...] * e1_ref[...])
        g2_ref[...] = jax.nn.sigmoid(s_ref[...] * e2_ref[...])

    g1 = g1_ref[...]
    g2 = g2_ref[...]

    # Input layer: packed [x_s | x_a] @ block_diag(ws, wa)  ==  cat(hs, ha)
    h = jnp.dot(x_ref[...].astype(jnp.bfloat16), win_ref[...],
                preferred_element_type=jnp.float32) + bin_ref[...]
    h = jnp.maximum(h, 0.0)

    # fc1 -> ReLU -> gate
    h = jnp.dot(h.astype(jnp.bfloat16), w1_ref[...],
                preferred_element_type=jnp.float32) + b1_ref[...]
    h = jnp.maximum(h, 0.0) * g1

    # fc2 -> ReLU -> gate
    h = jnp.dot(h.astype(jnp.bfloat16), w2_ref[...],
                preferred_element_type=jnp.float32) + b2_ref[...]
    h = jnp.maximum(h, 0.0) * g2

    # fc_out (512 -> 1): VPU multiply + lane (XLU) reduction instead of an
    # N=1 MXU matmul.
    out_ref[...] = (jnp.sum(h * wo_ref[...], axis=-1, keepdims=True)
                    + bo_ref[...])


def critic_forward(packed, x_s, x_a, s=1.0):
    """Runs the CriticNet forward; returns (q_value (B,1), (gfc1, gfc2))."""
    B = x_s.shape[0]
    # Host-side packing removes the in-kernel lane concat.
    x = jnp.concatenate([x_s.astype(jnp.float32),
                         x_a.astype(jnp.float32)], axis=1)

    # Batch tiling: pad to a sublane multiple (8) for small batches, tile at
    # 128 rows otherwise so weights are amortized across grid steps.
    if B <= 128:
        tile_b = max(8, ((B + 7) // 8) * 8)
    else:
        tile_b = 128
    b_pad = ((B + tile_b - 1) // tile_b) * tile_b
    if b_pad != B:
        x = jnp.pad(x, ((0, b_pad - B), (0, 0)))

    s_arr = jnp.full((1, 1), s, dtype=jnp.float32)

    def const(shape):
        # Resident block: same block index for every grid step -> DMA'd once.
        return pl.BlockSpec(shape, lambda i: (0, 0))

    grid_spec = pltpu.PrefetchScalarGridSpec(
        num_scalar_prefetch=0,
        grid=(b_pad // tile_b,),
        in_specs=[
            const((1, 1)),                                      # s
            pl.BlockSpec((tile_b, IN_DIM), lambda i: (i, 0)),   # packed input
            const((IN_DIM, HL)), const((1, HL)),                # w_in, b_in
            const((HL, HL)), const((1, HL)),                    # w1, b1
            const((HL, HL)), const((1, HL)),                    # w2, b2
            const((1, HL)), const((1, 1)),                      # wo_row, bo
            const((1, HL)), const((1, HL)),                     # e1, e2
        ],
        out_specs=(
            pl.BlockSpec((tile_b, 1), lambda i: (i, 0)),        # q value
            const((1, HL)),                                     # gfc1
            const((1, HL)),                                     # gfc2
        ),
    )

    out, g1, g2 = pl.pallas_call(
        critic_kernel,
        out_shape=(
            jax.ShapeDtypeStruct((b_pad, 1), jnp.float32),
            jax.ShapeDtypeStruct((1, HL), jnp.float32),
            jax.ShapeDtypeStruct((1, HL), jnp.float32),
        ),
        grid_spec=grid_spec,
        # Gate outputs use a constant block index across the batch axis, so
        # that axis must be "arbitrary" (weights also stay resident this way).
        compiler_params=pltpu.CompilerParams(
            dimension_semantics=("arbitrary",)),
    )(s_arr, x,
      packed["w_in"], packed["b_in"],
      packed["w1"], packed["b1"],
      packed["w2"], packed["b2"],
      packed["wo_row"], packed["bo"],
      packed["e1"], packed["e2"])

    return out[:B], (g1, g2)


def init_params(key):
    """Deterministic parameter init (PyTorch-style uniform ranges), f32."""
    def linear(key, fan_in, fan_out):
        k1, k2 = jax.random.split(key)
        bound = 1.0 / np.sqrt(fan_in)
        w = jax.random.uniform(k1, (fan_in, fan_out), jnp.float32, -bound, bound)
        b = jax.random.uniform(k2, (1, fan_out), jnp.float32, -bound, bound)
        return w, b

    keys = jax.random.split(key, 7)
    ws, bs = linear(keys[0], S_DIM, HALF)     # fc_s_in
    wa, ba = linear(keys[1], A_DIM, HALF)     # fc_a_in
    w1, b1 = linear(keys[2], HL, HL)          # fc1
    w2, b2 = linear(keys[3], HL, HL)          # fc2
    wo, bo = linear(keys[4], HL, 1)           # fc_out
    e1 = jax.random.normal(keys[5], (1, HL), jnp.float32)   # efc1 (Embedding N(0,1))
    e2 = jax.random.normal(keys[6], (1, HL), jnp.float32)   # efc2
    return dict(ws=ws, bs=bs, wa=wa, ba=ba, w1=w1, b1=b1, w2=w2, b2=b2,
                wo=wo, bo=bo, e1=e1, e2=e2)


def pack_params(p):
    """Convert f32 params to the kernel's device layout.

    fc_s_in / fc_a_in are fused into one block-diagonal (23, 512) weight so the
    first matmul directly yields cat(relu(fc_s_in(x_s)), relu(fc_a_in(x_a))).
    Large matmul weights are stored bf16; biases/gates stay f32.
    """
    w_in = jnp.zeros((IN_DIM, HL), jnp.float32)
    w_in = w_in.at[:S_DIM, :HALF].set(p["ws"])
    w_in = w_in.at[S_DIM:, HALF:].set(p["wa"])
    b_in = jnp.concatenate([p["bs"], p["ba"]], axis=1)
    return dict(
        w_in=w_in.astype(jnp.bfloat16), b_in=b_in,
        w1=p["w1"].astype(jnp.bfloat16), b1=p["b1"],
        w2=p["w2"].astype(jnp.bfloat16), b2=p["b2"],
        wo_row=p["wo"].T,      # (1, HL) f32
        bo=p["bo"],            # (1, 1)  f32
        e1=p["e1"], e2=p["e2"],
    )


def critic_forward_ref_exact(packed, x_s, x_a, s=1.0):
    """Pure-JAX emulation of the exact kernel arithmetic (bf16 weights/inputs,
    f32 accumulation) for tight correctness checking."""
    g1 = jax.nn.sigmoid(s * packed["e1"])
    g2 = jax.nn.sigmoid(s * packed["e2"])
    x = jnp.concatenate([x_s, x_a], axis=1)
    h = jnp.dot(x.astype(jnp.bfloat16), packed["w_in"],
                preferred_element_type=jnp.float32) + packed["b_in"]
    h = jnp.maximum(h, 0.0)
    h = jnp.dot(h.astype(jnp.bfloat16), packed["w1"],
                preferred_element_type=jnp.float32) + packed["b1"]
    h = jnp.maximum(h, 0.0) * g1
    h = jnp.dot(h.astype(jnp.bfloat16), packed["w2"],
                preferred_element_type=jnp.float32) + packed["b2"]
    h = jnp.maximum(h, 0.0) * g2
    out = jnp.sum(h * packed["wo_row"], axis=-1, keepdims=True) + packed["bo"]
    return out, (g1, g2)


def critic_forward_ref_f32(p, x_s, x_a, s=1.0):
    """Full-f32 reference of the original PyTorch forward (vector-state path)."""
    g1 = jax.nn.sigmoid(s * p["e1"])
    g2 = jax.nn.sigmoid(s * p["e2"])
    hs = jnp.maximum(x_s @ p["ws"] + p["bs"], 0.0)
    ha = jnp.maximum(x_a @ p["wa"] + p["ba"], 0.0)
    x = jnp.concatenate([hs, ha], axis=1)
    x = jnp.maximum(x @ p["w1"] + p["b1"], 0.0) * g1
    x = jnp.maximum(x @ p["w2"] + p["b2"], 0.0) * g2
    out = x @ p["wo"] + p["bo"]
    return out, (g1, g2)


if __name__ == "__main__":
    key = jax.random.PRNGKey(0)
    kp, kx, ka = jax.random.split(key, 3)
    params = init_params(kp)
    packed = pack_params(params)

    x_s = jax.random.normal(kx, (BATCH, S_DIM), jnp.float32)
    x_a = jax.random.normal(ka, (BATCH, A_DIM), jnp.float32)

    out, (g1, g2) = critic_forward(packed, x_s, x_a, s=1.0)
    jax.block_until_ready(out)

    # Tight check vs. a reference that mirrors the kernel arithmetic exactly.
    out_ref, (g1_ref, g2_ref) = critic_forward_ref_exact(packed, x_s, x_a, s=1.0)
    np.testing.assert_allclose(np.asarray(out), np.asarray(out_ref),
                               rtol=2e-3, atol=2e-3)
    np.testing.assert_allclose(np.asarray(g1), np.asarray(g1_ref),
                               rtol=1e-5, atol=1e-5)
    np.testing.assert_allclose(np.asarray(g2), np.asarray(g2_ref),
                               rtol=1e-5, atol=1e-5)

    # Loose check vs. the original full-f32 math (bf16 weight-storage error).
    out_f32, _ = critic_forward_ref_f32(params, x_s, x_a, s=1.0)
    np.testing.assert_allclose(np.asarray(out), np.asarray(out_f32),
                               rtol=1e-1, atol=1e-1)

    # Exercise the small / unaligned-batch padding path too.
    out_small, _ = critic_forward(packed, x_s[:3], x_a[:3], s=1.0)
    jax.block_until_ready(out_small)
    np.testing.assert_allclose(np.asarray(out_small), np.asarray(out_ref[:3]),
                               rtol=2e-3, atol=2e-3)

    print("KERNEL_OK")
</pallas_src>

<mosaic_0001>
module attributes {stable_mosaic.version = 11 : i64} {
  func.func @critic_kernel(%arg0: i32, %arg1: memref<1x1xf32, #tpu.memory_space<vmem>>, %arg2: memref<128x23xf32, #tpu.memory_space<vmem>>, %arg3: memref<23x512xbf16, #tpu.memory_space<vmem>>, %arg4: memref<1x512xf32, #tpu.memory_space<vmem>>, %arg5: memref<512x512xbf16, #tpu.memory_space<vmem>>, %arg6: memref<1x512xf32, #tpu.memory_space<vmem>>, %arg7: memref<512x512xbf16, #tpu.memory_space<vmem>>, %arg8: memref<1x512xf32, #tpu.memory_space<vmem>>, %arg9: memref<1x512xf32, #tpu.memory_space<vmem>>, %arg10: memref<1x1xf32, #tpu.memory_space<vmem>>, %arg11: memref<1x512xf32, #tpu.memory_space<vmem>>, %arg12: memref<1x512xf32, #tpu.memory_space<vmem>>, %arg13: memref<128x1xf32, #tpu.memory_space<vmem>>, %arg14: memref<1x512xf32, #tpu.memory_space<vmem>>, %arg15: memref<1x512xf32, #tpu.memory_space<vmem>>) attributes {dimension_semantics = [#tpu.dimension_semantics<arbitrary>], iteration_bounds = array<i64: 2>, scalar_prefetch = 0 : i64, scratch_operands = 0 : i64, tpu.core_type = #tpu.core_type<tc>, window_params = [{pipeline_mode = #tpu.pipeline_mode<synchronous>, transform_indices = @transform_0, window_bounds = array<i64: 1, 1>}, {transform_indices = @transform_1, window_bounds = array<i64: 128, 23>}, {pipeline_mode = #tpu.pipeline_mode<synchronous>, transform_indices = @transform_2, window_bounds = array<i64: 23, 512>}, {pipeline_mode = #tpu.pipeline_mode<synchronous>, transform_indices = @transform_3, window_bounds = array<i64: 1, 512>}, {pipeline_mode = #tpu.pipeline_mode<synchronous>, transform_indices = @transform_4, window_bounds = array<i64: 512, 512>}, {pipeline_mode = #tpu.pipeline_mode<synchronous>, transform_indices = @transform_5, window_bounds = array<i64: 1, 512>}, {pipeline_mode = #tpu.pipeline_mode<synchronous>, transform_indices = @transform_6, window_bounds = array<i64: 512, 512>}, {pipeline_mode = #tpu.pipeline_mode<synchronous>, transform_indices = @transform_7, window_bounds = array<i64: 1, 512>}, {pipeline_mode = #tpu.pipeline_mode<synchronous>, transform_indices = @transform_8, window_bounds = array<i64: 1, 512>}, {pipeline_mode = #tpu.pipeline_mode<synchronous>, transform_indices = @transform_9, window_bounds = array<i64: 1, 1>}, {pipeline_mode = #tpu.pipeline_mode<synchronous>, transform_indices = @transform_10, window_bounds = array<i64: 1, 512>}, {pipeline_mode = #tpu.pipeline_mode<synchronous>, transform_indices = @transform_11, window_bounds = array<i64: 1, 512>}, {transform_indices = @transform_12, window_bounds = array<i64: 128, 1>}, {pipeline_mode = #tpu.pipeline_mode<synchronous>, transform_indices = @transform_13, window_bounds = array<i64: 1, 512>}, {pipeline_mode = #tpu.pipeline_mode<synchronous>, transform_indices = @transform_14, window_bounds = array<i64: 1, 512>}]} {
    %c0_i32 = arith.constant 0 : i32
    %0 = arith.cmpi eq, %arg0, %c0_i32 : i32
    %1 = arith.extui %0 : i1 to i32
    %c0_i32_0 = arith.constant 0 : i32
    %2 = arith.cmpi ne, %1, %c0_i32_0 : i32
    scf.if %2 {
      %c0_30 = arith.constant 0 : index
      %c0_31 = arith.constant 0 : index
      %43 = vector.load %arg1[%c0_30, %c0_31] : memref<1x1xf32, #tpu.memory_space<vmem>>, vector<1x1xf32>
      %c0_32 = arith.constant 0 : index
      %c0_33 = arith.constant 0 : index
      %44 = vector.load %arg11[%c0_32, %c0_33] : memref<1x512xf32, #tpu.memory_space<vmem>>, vector<1x512xf32>
      %45 = vector.broadcast %43 : vector<1x1xf32> to vector<1x512xf32>
      %46 = arith.mulf %45, %44 : vector<1x512xf32>
      %47 = arith.negf %46 : vector<1x512xf32>
      %48 = math.exp %47 : vector<1x512xf32>
      %cst_34 = arith.constant 1.000000e+00 : f32
      %49 = vector.broadcast %cst_34 : f32 to vector<1x512xf32>
      %50 = arith.addf %49, %48 : vector<1x512xf32>
      %51 = arith.divf %49, %50 : vector<1x512xf32>
      %c0_35 = arith.constant 0 : index
      %c0_36 = arith.constant 0 : index
      %52 = vector.load %arg14[%c0_35, %c0_36] : memref<1x512xf32, #tpu.memory_space<vmem>>, vector<1x512xf32>
      tpu.vector_store %arg14[%c0_35, %c0_36], %51 {strides = array<i32>} : memref<1x512xf32, #tpu.memory_space<vmem>>, vector<1x512xf32>,
      %c0_37 = arith.constant 0 : index
      %c0_38 = arith.constant 0 : index
      %53 = vector.load %arg1[%c0_37, %c0_38] : memref<1x1xf32, #tpu.memory_space<vmem>>, vector<1x1xf32>
      %c0_39 = arith.constant 0 : index
      %c0_40 = arith.constant 0 : index
      %54 = vector.load %arg12[%c0_39, %c0_40] : memref<1x512xf32, #tpu.memory_space<vmem>>, vector<1x512xf32>
      %55 = vector.broadcast %53 : vector<1x1xf32> to vector<1x512xf32>
      %56 = arith.mulf %55, %54 : vector<1x512xf32>
      %57 = arith.negf %56 : vector<1x512xf32>
      %58 = math.exp %57 : vector<1x512xf32>
      %cst_41 = arith.constant 1.000000e+00 : f32
      %59 = vector.broadcast %cst_41 : f32 to vector<1x512xf32>
      %60 = arith.addf %59, %58 : vector<1x512xf32>
      %61 = arith.divf %59, %60 : vector<1x512xf32>
      %c0_42 = arith.constant 0 : index
      %c0_43 = arith.constant 0 : index
      %62 = vector.load %arg15[%c0_42, %c0_43] : memref<1x512xf32, #tpu.memory_space<vmem>>, vector<1x512xf32>
      tpu.vector_store %arg15[%c0_42, %c0_43], %61 {strides = array<i32>} : memref<1x512xf32, #tpu.memory_space<vmem>>, vector<1x512xf32>,
    } else {
    }
    %c0 = arith.constant 0 : index
    %c0_1 = arith.constant 0 : index
    %3 = vector.load %arg14[%c0, %c0_1] : memref<1x512xf32, #tpu.memory_space<vmem>>, vector<1x512xf32>
    %c0_2 = arith.constant 0 : index
    %c0_3 = arith.constant 0 : index
    %4 = vector.load %arg15[%c0_2, %c0_3] : memref<1x512xf32, #tpu.memory_space<vmem>>, vector<1x512xf32>
    %c0_4 = arith.constant 0 : index
    %c0_5 = arith.constant 0 : index
    %5 = vector.load %arg2[%c0_4, %c0_5] : memref<128x23xf32, #tpu.memory_space<vmem>>, vector<128x23xf32>
    %6 = arith.truncf %5 : vector<128x23xf32> to vector<128x23xbf16>
    %c0_6 = arith.constant 0 : index
    %c0_7 = arith.constant 0 : index
    %7 = vector.load %arg3[%c0_6, %c0_7] : memref<23x512xbf16, #tpu.memory_space<vmem>>, vector<23x512xbf16>
    %cst = arith.constant dense<0.000000e+00> : vector<128x512xf32>
    %8 = tpu.matmul %6, %7, %cst {dimension_numbers = #tpu.dot_dimension_numbers<[1], [0], [0], [1], [0, 0, 1, 1], [], []>} : vector<128x23xbf16>, vector<23x512xbf16>, vector<128x512xf32> -> vector<128x512xf32>
    %c0_8 = arith.constant 0 : index
    %c0_9 = arith.constant 0 : index
    %9 = vector.load %arg4[%c0_8, %c0_9] : memref<1x512xf32, #tpu.memory_space<vmem>>, vector<1x512xf32>
    %10 = vector.broadcast %9 : vector<1x512xf32> to vector<128x512xf32>
    %11 = arith.addf %8, %10 : vector<128x512xf32>
    %cst_10 = arith.constant 0.000000e+00 : f32
    %12 = vector.broadcast %cst_10 : f32 to vector<128x512xf32>
    %13 = arith.maximumf %11, %12 : vector<128x512xf32>
    %14 = arith.truncf %13 : vector<128x512xf32> to vector<128x512xbf16>
    %c0_11 = arith.constant 0 : index
    %c0_12 = arith.constant 0 : index
    %15 = vector.load %arg5[%c0_11, %c0_12] : memref<512x512xbf16, #tpu.memory_space<vmem>>, vector<512x512xbf16>
    %cst_13 = arith.constant dense<0.000000e+00> : vector<128x512xf32>
    %16 = tpu.matmul %14, %15, %cst_13 {dimension_numbers = #tpu.dot_dimension_numbers<[1], [0], [0], [1], [0, 0, 1, 1], [], []>} : vector<128x512xbf16>, vector<512x512xbf16>, vector<128x512xf32> -> vector<128x512xf32>
    %c0_14 = arith.constant 0 : index
    %c0_15 = arith.constant 0 : index
    %17 = vector.load %arg6[%c0_14, %c0_15] : memref<1x512xf32, #tpu.memory_space<vmem>>, vector<1x512xf32>
    %18 = vector.broadcast %17 : vector<1x512xf32> to vector<128x512xf32>
    %19 = arith.addf %16, %18 : vector<128x512xf32>
    %cst_16 = arith.constant 0.000000e+00 : f32
    %20 = vector.broadcast %cst_16 : f32 to vector<128x512xf32>
    %21 = arith.maximumf %19, %20 : vector<128x512xf32>
    %22 = vector.broadcast %3 : vector<1x512xf32> to vector<128x512xf32>
    %23 = arith.mulf %21, %22 : vector<128x512xf32>
    %24 = arith.truncf %23 : vector<128x512xf32> to vector<128x512xbf16>
    %c0_17 = arith.constant 0 : index
    %c0_18 = arith.constant 0 : index
    %25 = vector.load %arg7[%c0_17, %c0_18] : memref<512x512xbf16, #tpu.memory_space<vmem>>, vector<512x512xbf16>
    %cst_19 = arith.constant dense<0.000000e+00> : vector<128x512xf32>
    %26 = tpu.matmul %24, %25, %cst_19 {dimension_numbers = #tpu.dot_dimension_numbers<[1], [0], [0], [1], [0, 0, 1, 1], [], []>} : vector<128x512xbf16>, vector<512x512xbf16>, vector<128x512xf32> -> vector<128x512xf32>
    %c0_20 = arith.constant 0 : index
    %c0_21 = arith.constant 0 : index
    %27 = vector.load %arg8[%c0_20, %c0_21] : memref<1x512xf32, #tpu.memory_space<vmem>>, vector<1x512xf32>
    %28 = vector.broadcast %27 : vector<1x512xf32> to vector<128x512xf32>
    %29 = arith.addf %26, %28 : vector<128x512xf32>
    %cst_22 = arith.constant 0.000000e+00 : f32
    %30 = vector.broadcast %cst_22 : f32 to vector<128x512xf32>
    %31 = arith.maximumf %29, %30 : vector<128x512xf32>
    %32 = vector.broadcast %4 : vector<1x512xf32> to vector<128x512xf32>
    %33 = arith.mulf %31, %32 : vector<128x512xf32>
    %c0_23 = arith.constant 0 : index
    %c0_24 = arith.constant 0 : index
    %34 = vector.load %arg9[%c0_23, %c0_24] : memref<1x512xf32, #tpu.memory_space<vmem>>, vector<1x512xf32>
    %35 = vector.broadcast %34 : vector<1x512xf32> to vector<128x512xf32>
    %36 = arith.mulf %33, %35 : vector<128x512xf32>
    %cst_25 = arith.constant dense<0.000000e+00> : vector<128xf32>
    %37 = vector.multi_reduction <add>, %36, %cst_25 [1] : vector<128x512xf32> to vector<128xf32>
    %38 = vector.shape_cast %37 : vector<128xf32> to vector<128x1xf32>
    %c0_26 = arith.constant 0 : index
    %c0_27 = arith.constant 0 : index
    %39 = vector.load %arg10[%c0_26, %c0_27] : memref<1x1xf32, #tpu.memory_space<vmem>>, vector<1x1xf32>
    %40 = vector.broadcast %39 : vector<1x1xf32> to vector<128x1xf32>
    %41 = arith.addf %38, %40 : vector<128x1xf32>
    %c0_28 = arith.constant 0 : index
    %c0_29 = arith.constant 0 : index
    %42 = vector.load %arg13[%c0_28, %c0_29] : memref<128x1xf32, #tpu.memory_space<vmem>>, vector<128x1xf32>
    tpu.vector_store %arg13[%c0_28, %c0_29], %41 {strides = array<i32>} : memref<128x1xf32, #tpu.memory_space<vmem>>, vector<128x1xf32>,
    return
  }
  func.func @transform_0(%arg0: i32) -> (i32, i32) {
    %c0_i32 = arith.constant 0 : i32
    %c0_i32_0 = arith.constant 0 : i32
    %c0_i32_1 = arith.constant 0 : i32
    return %c0_i32, %c0_i32_0 : i32, i32
  }
  func.func @transform_1(%arg0: i32) -> (i32, i32) {
    %c0_i32 = arith.constant 0 : i32
    %c0_i32_0 = arith.constant 0 : i32
    return %arg0, %c0_i32 : i32, i32
  }
  func.func @transform_2(%arg0: i32) -> (i32, i32) {
    %c0_i32 = arith.constant 0 : i32
    %c0_i32_0 = arith.constant 0 : i32
    %c0_i32_1 = arith.constant 0 : i32
    return %c0_i32, %c0_i32_0 : i32, i32
  }
  func.func @transform_3(%arg0: i32) -> (i32, i32) {
    %c0_i32 = arith.constant 0 : i32
    %c0_i32_0 = arith.constant 0 : i32
    %c0_i32_1 = arith.constant 0 : i32
    return %c0_i32, %c0_i32_0 : i32, i32
  }
  func.func @transform_4(%arg0: i32) -> (i32, i32) {
    %c0_i32 = arith.constant 0 : i32
    %c0_i32_0 = arith.constant 0 : i32
    %c0_i32_1 = arith.constant 0 : i32
    return %c0_i32, %c0_i32_0 : i32, i32
  }
  func.func @transform_5(%arg0: i32) -> (i32, i32) {
    %c0_i32 = arith.constant 0 : i32
    %c0_i32_0 = arith.constant 0 : i32
    %c0_i32_1 = arith.constant 0 : i32
    return %c0_i32, %c0_i32_0 : i32, i32
  }
  func.func @transform_6(%arg0: i32) -> (i32, i32) {
    %c0_i32 = arith.constant 0 : i32
    %c0_i32_0 = arith.constant 0 : i32
    %c0_i32_1 = arith.constant 0 : i32
    return %c0_i32, %c0_i32_0 : i32, i32
  }
  func.func @transform_7(%arg0: i32) -> (i32, i32) {
    %c0_i32 = arith.constant 0 : i32
    %c0_i32_0 = arith.constant 0 : i32
    %c0_i32_1 = arith.constant 0 : i32
    return %c0_i32, %c0_i32_0 : i32, i32
  }
  func.func @transform_8(%arg0: i32) -> (i32, i32) {
    %c0_i32 = arith.constant 0 : i32
    %c0_i32_0 = arith.constant 0 : i32
    %c0_i32_1 = arith.constant 0 : i32
    return %c0_i32, %c0_i32_0 : i32, i32
  }
  func.func @transform_9(%arg0: i32) -> (i32, i32) {
    %c0_i32 = arith.constant 0 : i32
    %c0_i32_0 = arith.constant 0 : i32
    %c0_i32_1 = arith.constant 0 : i32
    return %c0_i32, %c0_i32_0 : i32, i32
  }
  func.func @transform_10(%arg0: i32) -> (i32, i32) {
    %c0_i32 = arith.constant 0 : i32
    %c0_i32_0 = arith.constant 0 : i32
    %c0_i32_1 = arith.constant 0 : i32
    return %c0_i32, %c0_i32_0 : i32, i32
  }
  func.func @transform_11(%arg0: i32) -> (i32, i32) {
    %c0_i32 = arith.constant 0 : i32
    %c0_i32_0 = arith.constant 0 : i32
    %c0_i32_1 = arith.constant 0 : i32
    return %c0_i32, %c0_i32_0 : i32, i32
  }
  func.func @transform_12(%arg0: i32) -> (i32, i32) {
    %c0_i32 = arith.constant 0 : i32
    %c0_i32_0 = arith.constant 0 : i32
    return %arg0, %c0_i32 : i32, i32
  }
  func.func @transform_13(%arg0: i32) -> (i32, i32) {
    %c0_i32 = arith.constant 0 : i32
    %c0_i32_0 = arith.constant 0 : i32
    %c0_i32_1 = arith.constant 0 : i32
    return %c0_i32, %c0_i32_0 : i32, i32
  }
  func.func @transform_14(%arg0: i32) -> (i32, i32) {
    %c0_i32 = arith.constant 0 : i32
    %c0_i32_0 = arith.constant 0 : i32
    %c0_i32_1 = arith.constant 0 : i32
    return %c0_i32, %c0_i32_0 : i32, i32
  }
}

</mosaic_0001>

<bundles_post_ra>
// kernel: tpu_custom_call.1
= control target key start
LH: loop header
LB: loop body
LE: loop exit
PB: predicated region body
PF: predicated region fallthrough
CT: control target
= control target key end

     0   :  { %s7612_s0 = inlined_call_operand.<no memory space> [shape: f32[1,1], index: 0, kind: input, shape index: {}]   ;;  %s7613_s1 = inlined_call_operand.vmem [shape: f32[256,23], index: 1, kind: input, shape index: {}]   ;;  %s7614_s2 = inlined_call_operand.vmem [shape: bf16[23,512], index: 2, kind: input, shape index: {}]   ;;  %s7615_s3 = inlined_call_operand.vmem [shape: f32[1,512], index: 3, kind: input, shape index: {}]   ;;  %s7616_s4 = inlined_call_operand.hbm [shape: bf16[512,512], index: 4, kind: input, shape index: {}]   ;;  %s7617_s5 = inlined_call_operand.vmem [shape: f32[1,512], index: 5, kind: input, shape index: {}]   ;;  %s7618_s6 = inlined_call_operand.hbm [shape: bf16[512,512], index: 6, kind: input, shape index: {}]   ;;  %s7619_s7 = inlined_call_operand.vmem [shape: f32[1,512], index: 7, kind: input, shape index: {}]   ;;  %s7620_s8 = inlined_call_operand.vmem [shape: f32[1,512], index: 8, kind: input, shape index: {}]   ;;  %s7621_s10 = inlined_call_operand.vmem [shape: f32[1,512], index: 10, kind: input, shape index: {}]   ;;  %s7622_s11 = inlined_call_operand.vmem [shape: f32[1,512], index: 11, kind: input, shape index: {}]   ;;  %s7623_s12 = inlined_call_operand.vmem [shape: f32[256,1], index: 12, kind: output, shape index: {0}]   ;;  %s7624_s13 = inlined_call_operand.hbm [shape: f32[1,512], index: 13, kind: output, shape index: {1}]   ;;  %s7625_s14 = inlined_call_operand.hbm [shape: f32[1,512], index: 14, kind: output, shape index: {2}]   ;;  %s7626_s9 = inlined_call_operand.<no memory space> [shape: f32[1,1], index: 9, kind: input, shape index: {}]  }
   0x1   :  { %v20_v0 = vstv %s7612_s0  ;;  %v22_v1 = vstv %s7626_s9 }
   0x2   :  { %21 = vst [vmem:[#allocation2] sm:$0x1] %v20_v0 }
   0x3   :  { %23 = vst [vmem:[#allocation3] sm:$0x1] %v22_v1 }
   0x4   :  { %24 = vsyncpa [#allocation5], 0 }
   0x5   :  { %25 = vsyncpa [#allocation8], 0 }
   0x6   :  { %26 = vsyncpa [#allocation6], 0 }
   0x7   :  { %27 = vsyncpa [#allocation11], 0  ;;  %s6372_s17 = smov 0  }
   0x8 LB: > { %s383_s0 = sshll.u32 %s7616_s4, 4  ;;  %s6381_s9 = sadd.s32 4294967295, %s6281_s17   ;;  %s6281_s17 = sphi %s6372_s17, %s33_s17   ;;  %s384_s0 = int_to_ptr.hbm [resolvable:$true] %s383_s0 }
   0x9   : > { %p4729_p0 = scmp.ge.s32.totalorder %s6281_s17, 1  ;;  %p363_p1 = scmp.lt.s32.totalorder %s6281_s17, 3 }
   0xa   : > { %p4730_p2 = scmp.ne.s32.totalorder %s6381_s9, 0  ;;  %p6104_p3 = scmp.eq.s32.totalorder %s6381_s9, 0 }
   0xb   : > { %p6387_p4 = pnand %p4729_p0, %p363_p1  ;;  %s6283_s21 = smov [#allocation4]  }
   0xc   : > { %s385_s22 = sshll.u32 %s6283_s21, 4  ;;  %s400_s25 = sshll.u32 %s7618_s6, 4  ;;  %s386_s22 = int_to_ptr.vmem [resolvable:$true] %s385_s22  ;;  %s401_s25 = int_to_ptr.hbm [resolvable:$true] %s400_s25 }
   0xd   : > { %p6097_p5 = pneg %p6387_p4  ;;  %s6284_s26 = smov [#allocation7]  }
   0xe   : > { %s402_s27 = sshll.u32 %s6284_s26, 4  ;;  %s6285_s28 = smov 256   ;;  %s403_s27 = int_to_ptr.vmem [resolvable:$true] %s402_s27 }
   0xf   : > { %p6098_p6 = pnand %p6104_p3, %p6097_p5  ;;  %s6286_s29 = smov 16  }
  0x10   : > { %442 = sbr.rel (%p6387_p4) target bundleno = 1652 (0x674), region = 68 }
  0x11   : > { %6100 = dma.hbm_to_vmem [thread:$0]  (!%p6098_p6), %s384_s0, 16384, %s386_s22, [#allocation5], %s6285_s28, %s6285_s28, %s6286_s29  }
  0x12   : > { %6103 = dma.hbm_to_vmem [thread:$0]  (!%p6098_p6), %s401_s25, 16384, %s403_s27, [#allocation8], %s6285_s28, %s6285_s28, %s6286_s29  }
  0x15   : > { %6264 = dma.done.wait (%p6104_p3), [#allocation5], 16384  }
  0x16   : > { %6266 = vsyncadd (%p6104_p3), [#allocation5], 4294950912 }
  0x17   : > { %6268 = dma.done.wait (%p6104_p3), [#allocation8], 16384  }
  0x18   : > { %6270 = vsyncadd (%p6104_p3), [#allocation8], 4294950912  ;;  %s4736_s30 = sshll.u32 %s6381_s9, 4 }
  0x19   : > { %p495_p7 = scmp.lt.s32.totalorder %s4736_s30, 31  ;;  %510 = sbr.rel (%p4730_p2) target bundleno = 188 (0xbc), region = 80 }
  0x1b   : > { %s7701_s30 = smov (!%p495_p7, %s4736_s30), 31 }
  0x1c   : > { %s4737_s15 = sshll.u32 %s7701_s30, 3 }
  0x1d   : > { %s6412_s19 = scalar_lea.vmem %s7613_s1, %s4737_s15  ;;  %s6417_s21 = scalar_lea.vmem %s7623_s12, %s4737_s15 }
  0x1e   : > { %v511_v2 = vld [vmem:[#allocation2] sm:$0x1]  ;;  %v6287_v3 = vmov 0   ;;  %v539_v22 = vlaneseq }
  0x1f   : > { %6128 = vset.pattern.permute.xlu0 %v6287_v3  ;;  %v544_v4 = vld [vmem:[#allocation2] sm:$0x1] }
  0x20   : > { %515 = vperm.xlu0 %6128, %v511_v2   ;;  %v512_v5 = vld [vmem:[%s7621_s10] sm:$0xf]  ;;  %vm6427_vm2 = vcmp.lt.s32.totalorder %v539_v22, 512 }
  0x21   : > { %v545_v10 = vld [vmem:[%s7622_s11] sm:$0xf] }
  0x28   : > { %548 = vperm.xlu0 %6128, %v544_v4  }
  0x92   : > { %v516_v6 = vpop.permute.xlu0 %515 }
  0x93   : > { %v518_v7 = vperm.slane %v516_v6, 0 }
  0x95   : > { %v519_v8 = vmul.f32 %v518_v7, %v512_v5 }
  0x97   : > { %v4741_v9 = vmul.f32 -1.442695, %v519_v8 }
  0x99   : > { %6129 = vpow2.f32 %v4741_v9 }
  0x9a   : > { %v549_v11 = vpop.permute.xlu0 %548 }
  0x9b   : > { %v551_v12 = vperm.slane %v549_v11, 0 }
  0x9d   : > { %v552_v13 = vmul.f32 %v551_v12, %v545_v10 }
  0x9f   : > { %v6130_v14 = vpop.eup %6129  ;;  %v4742_v15 = vmul.f32 -1.442695, %v552_v13 }
  0xa0   : > { %v523_v16 = vadd.f32 1.0, %v6130_v14 }
  0xa1   : > { %6131 = vpow2.f32 %v4742_v15 }
  0xa2   : > { %6133 = vrcp.f32 %v523_v16  ;;  %v535_v23 = vand.u32 2147483648, %v523_v16  ;;  %v533_v25 = vand.u32 2147483647, %v523_v16  ;;  %vm529_vm1 = vweird.f32 %v523_v16 }
  0xa4   : > { %v536_v29 = vor.u32 1.1754944e-38, %v535_v23  ;;  %vm534_vm4 = vcmp.eq.f32.partialorder %v533_v25, 8.507059e+37 }
  0xa7   : > { %v6132_v17 = vpop.eup %6131 }
  0xa8   : > { %v6134_v18 = vpop.eup %6133  ;;  %v556_v19 = vadd.f32 1.0, %v6132_v17 }
  0xa9   : > { %v525_v20 = vmul.f32 %v6134_v18, %v523_v16  ;;  %vm530_vm0 = vweird.f32 %v6134_v18 }
  0xaa   : > { %6135 = vrcp.f32 %v556_v19  ;;  %vm531_vm3 = vmor %vm529_vm1, %vm530_vm0  ;;  %v568_v34 = vand.u32 2147483648, %v556_v19  ;;  %v566_v36 = vand.u32 2147483647, %v556_v19  ;;  %vm562_vm6 = vweird.f32 %v556_v19 }
  0xab   : > { %v526_v21 = vsub.f32 1.0, %v525_v20 }
  0xac   : > { %v569_v38 = vor.u32 1.1754944e-38, %v568_v34  ;;  %vm567_vm8 = vcmp.eq.f32.partialorder %v566_v36, 8.507059e+37 }
  0xad   : > { %v527_v24 = vmul.f32 %v6134_v18, %v526_v21 }
  0xaf   : > { %v528_v26 = vadd.f32 %v6134_v18, %v527_v24 }
  0xb0   : > { %v6136_v27 = vpop.eup %6135 }
  0xb1   : > { %v532_v30 = vsel %vm531_vm3, %v6134_v18, %v528_v26  ;;  %v558_v31 = vmul.f32 %v6136_v27, %v556_v19  ;;  %vm563_vm5 = vweird.f32 %v6136_v27 }
  0xb2   : > { %v537_v32 = vsel %vm534_vm4, %v536_v29, %v532_v30  ;;  %vm564_vm7 = vmor %vm562_vm6, %vm563_vm5 }
  0xb3   : > { %543 = vst.msk [vmem:[#allocation9] sm:$0xf] %vm6427_vm2, %v537_v32  ;;  %v559_v33 = vsub.f32 1.0, %v558_v31 }
  0xb5   : > { %v560_v35 = vmul.f32 %v6136_v27, %v559_v33 }
  0xb7   : > { %v561_v37 = vadd.f32 %v6136_v27, %v560_v35 }
  0xb9   : > { %v565_v39 = vsel %vm564_vm7, %v6136_v27, %v561_v37 }
  0xba   : > { %v570_v40 = vsel %vm567_vm8, %v569_v38, %v565_v39 }
  0xbb   : > { %572 = vst.msk [vmem:[#allocation10] sm:$0xf] %vm6427_vm2, %v570_v40 }
  0xbc PF: > { %v603_v41 = vld [vmem:[%s7614_s2 + $0x20] sm:$0xff]  ;;  %vm670_vm9 = vcmask 1042432   ;;  %vm671_vm10 = vcmask 1043456   ;;  %v604_v42 = vld [vmem:[%s7614_s2 + $0x28] sm:$0xff]  ;;  %v6288_v44 = vmov 65535   ;;  %vm645_vm11 = vcmask 187392  }
  0xbd   : > { %v629_v43 = vunpack.c.l.b16 %v603_v41  ;;  %v672_v45 = vsel %vm670_vm9, 4294967295, %v6288_v44  ;;  %v630_v46 = vunpack.c.h.b16 %v603_v41  ;;  %v631_v47 = vunpack.c.l.b16 %v604_v42  ;;  %v4745_v53 = vld [vmem:[%s7614_s2] sm:$0xf]  ;;  %v5823_v54 = vld [vmem:[%s7614_s2 + $0xc] sm:$0xf0]  ;;  %v576_v9 = vld [vmem:[%s6412_s19 + $0x8] sm:$0xff] }
  0xbe   : > { %v673_v48 = vsel %vm671_vm10, %v672_v45, 0  ;;  %v632_v49 = vunpack.c.h.b16 %v604_v42  ;;  %v5821_v55 = vld [vmem:[%s7614_s2 + $0x4] sm:$0xf]  ;;  %v4747_v57 = vld [vmem:[%s7614_s2 + $0x10] sm:$0xf0]  ;;  %v4746_v6 = vor.u32 %v5823_v54, %v4745_v53  ;;  %v578_v34 = vld [vmem:[%s6412_s19 + $0x18] sm:$0xff] }
  0xbf   : > { %v637_v50 = vpack.c.b16 %v629_v43, %v629_v43  ;;  %v638_v51 = vpack.c.b16 %v630_v46, %v630_v46  ;;  %v639_v52 = vpack.c.b16 %v631_v47, %v631_v47  ;;  %v4753_v58 = vld [vmem:[%s7614_s2 + $0x8] sm:$0xf]  ;;  %v5824_v59 = vld [vmem:[%s7614_s2 + $0x14] sm:$0xf0]  ;;  %v5822_v63 = vld [vmem:[%s7614_s2 + $0xc] sm:$0xf]  ;;  %v4750_v7 = vor.u32 %v5821_v55, %v4747_v57 }
  0xc0   : > { %v640_v56 = vpack.c.b16 %v632_v49, %v632_v49  ;;  %v4755_v0 = vld [vmem:[%s7614_s2 + $0x18] sm:$0xf0]  ;;  %v5161_v1 = vld [vmem:[#allocation4 + $0x2e0] sm:$0xf]  ;;  %v5919_v3 = vld [vmem:[#allocation4 + $0x2ec] sm:$0xf0]  ;;  %v4754_v10 = vor.u32 %v5824_v59, %v4753_v58 }
  0xc1   : > { %v675_v60 = vand.u32 %v673_v48, %v637_v50  ;;  %v678_v61 = vand.u32 %v673_v48, %v638_v51  ;;  %v681_v62 = vand.u32 %v673_v48, %v639_v52  ;;  %v4905_v4 = vld [vmem:[#allocation4 + $0xe0] sm:$0xf]  ;;  %v5855_v5 = vld [vmem:[#allocation4 + $0xec] sm:$0xf0]  ;;  %v4758_v11 = vor.u32 %v5822_v63, %v4755_v0  ;;  %v580_v49 = vld [vmem:[%s6412_s19 + $0x28] sm:$0xff]  ;;  %p6108_p8 = scmp.eq.s32.totalorder %s6381_s9, 1 }
  0xc2   : > { %v684_v2 = vand.u32 %v673_v48, %v640_v56  ;;  %v575_v8 = vld [vmem:[%s6412_s19] sm:$0xff]  ;;  %v5162_v13 = vor.u32 %v5919_v3, %v5161_v1  ;;  %v4906_v14 = vor.u32 %v5855_v5, %v4905_v4  ;;  %v5951_v15 = vld [vmem:[#allocation4 + $0x3ec] sm:$0xf0]  ;;  %v582_v0 = vld [vmem:[%s6412_s19 + $0x38] sm:$0xff]  ;;  %s6289_s15 = smov [#allocation9]   ;;  %s4616_s0 = sshll.u32 %s7624_s13, 4  ;;  %s4617_s0 = int_to_ptr.hbm [resolvable:$true] %s4616_s0 }
  0xc3   : > { %692 = vmatpush.bf16.msra.mxu0 %v675_v60  ;;  %741 = vmatpush.bf16.msra.mxu1 %v678_v61  ;;  %v5289_v12 = vld [vmem:[#allocation4 + $0x3e0] sm:$0xf]  ;;  %v5887_v17 = vld [vmem:[#allocation4 + $0x1ec] sm:$0xf0]  ;;  %v591_v18 = vpack.c.bf16 %v576_v9, %v575_v8  ;;  %s6290_s20 = smov [#allocation10]   ;;  %s4628_s25 = sshll.u32 %s7625_s14, 4  ;;  %s4629_s25 = int_to_ptr.hbm [resolvable:$true] %s4628_s25 }
  0xc4   : > { %790 = vmatpush.bf16.msra.mxu2 %v681_v62  ;;  %839 = vmatpush.bf16.msra.mxu3 %v684_v2  ;;  %v5033_v16 = vld [vmem:[#allocation4 + $0x1e0] sm:$0xf]  ;;  %v5290_v19 = vor.u32 %v5951_v15, %v5289_v12  ;;  %v5915_v22 = vld [vmem:[#allocation4 + $0x2cc] sm:$0xf0]  ;;  %v584_v15 = vld [vmem:[%s6412_s19 + $0x48] sm:$0xff]  ;;  %s4626_s22 = sshll.u32 %s6290_s20, 4  ;;  %s4627_s22 = int_to_ptr.vmem [resolvable:$true] %s4626_s22 }
  0xc5   : > { %v5034_v20 = vor.u32 %v5887_v17, %v5033_v16  ;;  %v5145_v21 = vld [vmem:[#allocation4 + $0x2c0] sm:$0xf]  ;;  %v5851_v25 = vld [vmem:[#allocation4 + $0xcc] sm:$0xf0]  ;;  %6092 = dma.vmem_to_hbm [thread:$0]  (%p6108_p8), %s4627_s22, 64, %s4629_s25, [#allocation11]  }
  0xc6   : > { %v4889_v23 = vld [vmem:[#allocation4 + $0xc0] sm:$0xf]  ;;  %v5146_v24 = vor.u32 %v5915_v22, %v5145_v21  ;;  %v5947_v27 = vld [vmem:[#allocation4 + $0x3cc] sm:$0xf0]  ;;  %vm4582_vm12 = vcmask 7168  }
  0xc7   : > { %693 = vmatpush.bf16.msra.mxu0 %v4746_v6  ;;  %742 = vmatpush.bf16.msra.mxu1 %v4750_v7  ;;  %v5273_v26 = vld [vmem:[#allocation4 + $0x3c0] sm:$0xf]  ;;  %v4890_v28 = vor.u32 %v5851_v25, %v4889_v23  ;;  %v5883_v31 = vld [vmem:[#allocation4 + $0x1cc] sm:$0xf0] }
  0xc8   : > { %791 = vmatpush.bf16.msra.mxu2 %v4754_v10  ;;  %840 = vmatpush.bf16.msra.mxu3 %v4758_v11  ;;  %v5274_v29 = vor.u32 %v5947_v27, %v5273_v26  ;;  %v5017_v30 = vld [vmem:[#allocation4 + $0x1c0] sm:$0xf]  ;;  %v577_v33 = vld [vmem:[%s6412_s19 + $0x10] sm:$0xff] }
  0xc9   : > { %v5018_v32 = vor.u32 %v5883_v31, %v5017_v30  ;;  %v592_v35 = vpack.c.bf16 %v578_v34, %v577_v33  ;;  %v5129_v36 = vld [vmem:[#allocation4 + $0x2a0] sm:$0xf]  ;;  %v5911_v37 = vld [vmem:[#allocation4 + $0x2ac] sm:$0xf0]  ;;  %v586_v30 = vld [vmem:[%s6412_s19 + $0x58] sm:$0xff] }
  0xca   : > { %4759 = vmatmul.msk.bf16.vlgmr.msra.gmra.mxu0 %vm645_vm11, %v591_v18  ;;  %4767 = vmatmul.msk.bf16.vlgmr.msra.gmra.mxu1 %vm645_vm11, %v591_v18  ;;  %v4873_v38 = vld [vmem:[#allocation4 + $0xa0] sm:$0xf]  ;;  %v5130_v39 = vor.u32 %v5911_v37, %v5129_v36  ;;  %v5847_v40 = vld [vmem:[#allocation4 + $0xac] sm:$0xf0] }
  0xcb   : > { %1756 = vmatpush.bf16.msrb.mxu0 %v4906_v14  ;;  %4775 = vmatmul.msk.bf16.vlgmr.msra.gmra.mxu2 %vm645_vm11, %v591_v18  ;;  %v5257_v41 = vld [vmem:[#allocation4 + $0x3a0] sm:$0xf]  ;;  %v5943_v42 = vld [vmem:[#allocation4 + $0x3ac] sm:$0xf0]  ;;  %v4874_v43 = vor.u32 %v5847_v40, %v4873_v38 }
  0xcc   : > { %1854 = vmatpush.bf16.msrb.mxu2 %v5162_v13  ;;  %4783 = vmatmul.msk.bf16.vlgmr.msra.gmra.mxu3 %vm645_vm11, %v591_v18  ;;  %v5258_v44 = vor.u32 %v5943_v42, %v5257_v41  ;;  %v5001_v45 = vld [vmem:[#allocation4 + $0x1a0] sm:$0xf]  ;;  %v5879_v46 = vld [vmem:[#allocation4 + $0x1ac] sm:$0xf0] }
  0xcd   : > { %1903 = vmatpush.bf16.msrb.mxu3 %v5290_v19  ;;  %1805 = vmatpush.bf16.msrb.mxu1 %v5034_v20  ;;  %v5002_v47 = vor.u32 %v5879_v46, %v5001_v45  ;;  %v579_v48 = vld [vmem:[%s6412_s19 + $0x20] sm:$0xff]  ;;  %v5907_v52 = vld [vmem:[#allocation4 + $0x28c] sm:$0xf0]  ;;  %v588_v45 = vld [vmem:[%s6412_s19 + $0x68] sm:$0xff] }
  0xce   : > { %v593_v50 = vpack.c.bf16 %v580_v49, %v579_v48  ;;  %v5113_v51 = vld [vmem:[#allocation4 + $0x280] sm:$0xf]  ;;  %v5843_v55 = vld [vmem:[#allocation4 + $0x8c] sm:$0xf0] }
  0xcf   : > { %1757 = vmatpush.bf16.msrb.mxu0 %v4890_v28  ;;  %v4857_v53 = vld [vmem:[#allocation4 + $0x80] sm:$0xf]  ;;  %v5114_v54 = vor.u32 %v5907_v52, %v5113_v51  ;;  %v5939_v57 = vld [vmem:[#allocation4 + $0x38c] sm:$0xf0] }
  0xd0   : > { %1855 = vmatpush.bf16.msrb.mxu2 %v5146_v24  ;;  %v5241_v56 = vld [vmem:[#allocation4 + $0x380] sm:$0xf]  ;;  %v4858_v58 = vor.u32 %v5843_v55, %v4857_v53  ;;  %v5875_v61 = vld [vmem:[#allocation4 + $0x18c] sm:$0xf0] }
  0xd1   : > { %1904 = vmatpush.bf16.msrb.mxu3 %v5274_v29  ;;  %1806 = vmatpush.bf16.msrb.mxu1 %v5018_v32  ;;  %v5242_v59 = vor.u32 %v5939_v57, %v5241_v56  ;;  %v4985_v60 = vld [vmem:[#allocation4 + $0x180] sm:$0xf]  ;;  %v581_v63 = vld [vmem:[%s6412_s19 + $0x30] sm:$0xff] }
  0xd2   : > { %v4986_v62 = vor.u32 %v5875_v61, %v4985_v60  ;;  %v594_v1 = vpack.c.bf16 %v582_v0, %v581_v63  ;;  %v5097_v2 = vld [vmem:[#allocation4 + $0x260] sm:$0xf]  ;;  %v5903_v3 = vld [vmem:[#allocation4 + $0x26c] sm:$0xf0]  ;;  %v5163_v63 = vld [vmem:[#allocation4 + $0x2f0] sm:$0xf0] }
  0xd3   : > { %1758 = vmatpush.bf16.msrb.mxu0 %v4874_v43  ;;  %v4841_v4 = vld [vmem:[#allocation4 + $0x60] sm:$0xf]  ;;  %v5098_v5 = vor.u32 %v5903_v3, %v5097_v2  ;;  %v5839_v6 = vld [vmem:[#allocation4 + $0x6c] sm:$0xf0]  ;;  %v4907_v2 = vld [vmem:[#allocation4 + $0xf0] sm:$0xf0] }
  0xd4   : > { %1856 = vmatpush.bf16.msrb.mxu2 %v5130_v39  ;;  %v5225_v7 = vld [vmem:[#allocation4 + $0x360] sm:$0xf]  ;;  %v5935_v8 = vld [vmem:[#allocation4 + $0x36c] sm:$0xf0]  ;;  %v4842_v9 = vor.u32 %v5839_v6, %v4841_v4  ;;  %v5949_v3 = vld [vmem:[#allocation4 + $0x3e4] sm:$0xf] }
  0xd5   : > { %1905 = vmatpush.bf16.msrb.mxu3 %v5258_v44  ;;  %1807 = vmatpush.bf16.msrb.mxu1 %v5002_v47  ;;  %v5226_v10 = vor.u32 %v5935_v8, %v5225_v7  ;;  %v4969_v11 = vld [vmem:[#allocation4 + $0x160] sm:$0xf]  ;;  %v5871_v12 = vld [vmem:[#allocation4 + $0x16c] sm:$0xf0]  ;;  %v5885_v7 = vld [vmem:[#allocation4 + $0x1e4] sm:$0xf] }
  0xd6   : > { %v4970_v13 = vor.u32 %v5871_v12, %v4969_v11  ;;  %v583_v14 = vld [vmem:[%s6412_s19 + $0x40] sm:$0xff]  ;;  %v5899_v18 = vld [vmem:[#allocation4 + $0x24c] sm:$0xf0]  ;;  %v5035_v8 = vld [vmem:[#allocation4 + $0x1f0] sm:$0xf0] }
  0xd7   : > { %1759 = vmatpush.bf16.msrb.mxu0 %v4858_v58  ;;  %v595_v16 = vpack.c.bf16 %v584_v15, %v583_v14  ;;  %v5081_v17 = vld [vmem:[#allocation4 + $0x240] sm:$0xf]  ;;  %v5835_v21 = vld [vmem:[#allocation4 + $0x4c] sm:$0xf0]  ;;  %v590_v58 = vld [vmem:[%s6412_s19 + $0x78] sm:$0xff] }
  0xd8   : > { %1857 = vmatpush.bf16.msrb.mxu2 %v5114_v54  ;;  %v4825_v19 = vld [vmem:[#allocation4 + $0x40] sm:$0xf]  ;;  %v5082_v20 = vor.u32 %v5899_v18, %v5081_v17  ;;  %v5931_v23 = vld [vmem:[#allocation4 + $0x34c] sm:$0xf0]  ;;  %v5913_v17 = vld [vmem:[#allocation4 + $0x2c4] sm:$0xf] }
  0xd9   : > { %1906 = vmatpush.bf16.msrb.mxu3 %v5242_v59  ;;  %1808 = vmatpush.bf16.msrb.mxu1 %v4986_v62  ;;  %v5209_v22 = vld [vmem:[#allocation4 + $0x340] sm:$0xf]  ;;  %v4826_v24 = vor.u32 %v5835_v21, %v4825_v19  ;;  %v5867_v27 = vld [vmem:[#allocation4 + $0x14c] sm:$0xf0]  ;;  %v5917_v62 = vld [vmem:[#allocation4 + $0x2e4] sm:$0xf] }
  0xda   : > { %4760 = vmatmul.msk.bf16.gmra.mxu0 %vm645_vm11, %v592_v35  ;;  %4768 = vmatmul.msk.bf16.gmra.mxu1 %vm645_vm11, %v592_v35  ;;  %v5210_v25 = vor.u32 %v5931_v23, %v5209_v22  ;;  %v4953_v26 = vld [vmem:[#allocation4 + $0x140] sm:$0xf]  ;;  %v585_v29 = vld [vmem:[%s6412_s19 + $0x50] sm:$0xff]  ;;  %v5166_v0 = vor.u32 %v5917_v62, %v5163_v63 }
  0xdb   : > { %4776 = vmatmul.msk.bf16.gmra.mxu2 %vm645_vm11, %v592_v35  ;;  %1760 = vmatpush.bf16.msrb.mxu0 %v4842_v9  ;;  %v4954_v28 = vor.u32 %v5867_v27, %v4953_v26  ;;  %v596_v31 = vpack.c.bf16 %v586_v30, %v585_v29  ;;  %v5065_v32 = vld [vmem:[#allocation4 + $0x220] sm:$0xf]  ;;  %v5895_v33 = vld [vmem:[#allocation4 + $0x22c] sm:$0xf0]  ;;  %v5038_v9 = vor.u32 %v5885_v7, %v5035_v8  ;;  %v5147_v18 = vld [vmem:[#allocation4 + $0x2d0] sm:$0xf0] }
  0xdc   : > { %4784 = vmatmul.msk.bf16.gmra.mxu3 %vm645_vm11, %v592_v35  ;;  %1858 = vmatpush.bf16.msrb.mxu2 %v5098_v5  ;;  %v4809_v34 = vld [vmem:[#allocation4 + $0x20] sm:$0xf]  ;;  %v5066_v35 = vor.u32 %v5895_v33, %v5065_v32  ;;  %v5831_v36 = vld [vmem:[#allocation4 + $0x2c] sm:$0xf0]  ;;  %v5291_v5 = vld [vmem:[#allocation4 + $0x3f0] sm:$0xf0]  ;;  %v5150_v21 = vor.u32 %v5913_v17, %v5147_v18 }
  0xdd   : > { %1907 = vmatpush.bf16.msrb.mxu3 %v5226_v10  ;;  %1809 = vmatpush.bf16.msrb.mxu1 %v4970_v13  ;;  %v5193_v37 = vld [vmem:[#allocation4 + $0x320] sm:$0xf]  ;;  %v5927_v38 = vld [vmem:[#allocation4 + $0x32c] sm:$0xf0]  ;;  %v4810_v39 = vor.u32 %v5831_v36, %v4809_v34  ;;  %v5294_v6 = vor.u32 %v5949_v3, %v5291_v5  ;;  %v5849_v30 = vld [vmem:[#allocation4 + $0xc4] sm:$0xf] }
  0xde   : > { %v5194_v40 = vor.u32 %v5927_v38, %v5193_v37  ;;  %v4937_v41 = vld [vmem:[#allocation4 + $0x120] sm:$0xf]  ;;  %v5863_v42 = vld [vmem:[#allocation4 + $0x12c] sm:$0xf0]  ;;  %v5275_v36 = vld [vmem:[#allocation4 + $0x3d0] sm:$0xf0] }
  0xdf   : > { %1761 = vmatpush.bf16.msrb.mxu0 %v4826_v24  ;;  %v4938_v43 = vor.u32 %v5863_v42, %v4937_v41  ;;  %v587_v44 = vld [vmem:[%s6412_s19 + $0x60] sm:$0xff]  ;;  %v5891_v48 = vld [vmem:[#allocation4 + $0x20c] sm:$0xf0]  ;;  %v5019_v41 = vld [vmem:[#allocation4 + $0x1d0] sm:$0xf0] }
  0xe0   : > { %1859 = vmatpush.bf16.msrb.mxu2 %v5082_v20  ;;  %v597_v46 = vpack.c.bf16 %v588_v45, %v587_v44  ;;  %v5049_v47 = vld [vmem:[#allocation4 + $0x200] sm:$0xf]  ;;  %v5827_v51 = vld [vmem:[#allocation4 + $0xc] sm:$0xf0]  ;;  %v4875_v7 = vld [vmem:[#allocation4 + $0xb0] sm:$0xf0] }
  0xe1   : > { %1908 = vmatpush.bf16.msrb.mxu3 %v5210_v25  ;;  %1810 = vmatpush.bf16.msrb.mxu1 %v4954_v28  ;;  %v5050_v49 = vor.u32 %v5891_v48, %v5049_v47  ;;  %v5177_v52 = vld [vmem:[#allocation4 + $0x300] sm:$0xf]  ;;  %v5923_v54 = vld [vmem:[#allocation4 + $0x30c] sm:$0xf0]  ;;  %v5877_v18 = vld [vmem:[#allocation4 + $0x1a4] sm:$0xf] }
  0xe2   : > { %v4921_v55 = vld [vmem:[#allocation4 + $0x100] sm:$0xf]  ;;  %v5859_v56 = vld [vmem:[#allocation4 + $0x10c] sm:$0xf0]  ;;  %v5178_v59 = vor.u32 %v5923_v54, %v5177_v52 }
  0xe3   : > { %1762 = vmatpush.bf16.msrb.mxu0 %v4810_v39  ;;  %v589_v57 = vld [vmem:[%s6412_s19 + $0x70] sm:$0xff]  ;;  %v4922_v60 = vor.u32 %v5859_v56, %v4921_v55  ;;  %v605_v10 = vld [vmem:[%s7615_s3] sm:$0xf]  ;;  %s4614_s19 = sshll.u32 %s6289_s15, 4  ;;  %s4615_s19 = int_to_ptr.vmem [resolvable:$true] %s4614_s19 }
  0xe4   : > { %1860 = vmatpush.bf16.msrb.mxu2 %v5066_v35  ;;  %v598_v61 = vpack.c.bf16 %v590_v58, %v589_v57  ;;  %v6516_v13 = vperm.slane %v605_v10, 0  ;;  %v6518_v14 = vperm.slane %v605_v10, 1  ;;  %v6524_v28 = vperm.slane %v605_v10, 2  ;;  %v5945_v35 = vld [vmem:[#allocation4 + $0x3c4] sm:$0xf] }
  0xe5   : > { %1909 = vmatpush.bf16.msrb.mxu3 %v5194_v40  ;;  %1811 = vmatpush.bf16.msrb.mxu1 %v4938_v43  ;;  %v6526_v29 = vperm.slane %v605_v10, 3  ;;  %v5278_v37 = vor.u32 %v5945_v35, %v5275_v36  ;;  %v5881_v40 = vld [vmem:[#allocation4 + $0x1c4] sm:$0xf]  ;;  %6090 = dma.vmem_to_hbm [thread:$0]  (%p6108_p8), %s4615_s19, 64, %s4617_s0, [#allocation6]  }
  0xe6   : > { %v5022_v44 = vor.u32 %v5881_v40, %v5019_v41  ;;  %v5905_v41 = vld [vmem:[#allocation4 + $0x284] sm:$0xf] }
  0xe8   : > { %1861 = vmatpush.bf16.msrb.mxu2 %v5050_v49 }
  0xe9   : > { %1910 = vmatpush.bf16.msrb.mxu3 %v5178_v59  ;;  %1812 = vmatpush.bf16.msrb.mxu1 %v4922_v60  ;;  %v5909_v59 = vld [vmem:[#allocation4 + $0x2a4] sm:$0xf]  ;;  %v5131_v60 = vld [vmem:[#allocation4 + $0x2b0] sm:$0xf0] }
  0xea   : > { %4761 = vmatmul.msk.bf16.gmra.mxu0 %vm645_vm11, %v593_v50  ;;  %4769 = vmatmul.msk.bf16.gmra.mxu1 %vm645_vm11, %v593_v50  ;;  %v5134_v63 = vor.u32 %v5909_v59, %v5131_v60  ;;  %v5937_v59 = vld [vmem:[#allocation4 + $0x384] sm:$0xf]  ;;  %v5243_v60 = vld [vmem:[#allocation4 + $0x390] sm:$0xf0] }
  0xeb   : > { %4777 = vmatmul.msk.bf16.gmra.mxu2 %vm645_vm11, %v593_v50 }
  0xec   : > { %4785 = vmatmul.msk.bf16.gmra.mxu3 %vm645_vm11, %v593_v50  ;;  %v4793_v50 = vld [vmem:[#allocation4] sm:$0xf]  ;;  %2050 = vmatpush.bf16.msra.mxu2 %v5166_v0 }
  0xed   : > { %v4794_v53 = vor.u32 %v5827_v51, %v4793_v50  ;;  %2099 = vmatpush.bf16.msra.mxu3 %v5294_v6  ;;  %2001 = vmatpush.bf16.msra.mxu1 %v5038_v9  ;;  %v5845_v6 = vld [vmem:[#allocation4 + $0xa4] sm:$0xf] }
  0xee   : > { %v4878_v10 = vor.u32 %v5845_v6, %v4875_v7 }
  0xef   : > { %1763 = vmatpush.bf16.msrb.mxu0 %v4794_v53 }
  0xf0   : > { %2051 = vmatpush.bf16.msra.mxu2 %v5150_v21 }
  0xf1   : > { %2100 = vmatpush.bf16.msra.mxu3 %v5278_v37  ;;  %2002 = vmatpush.bf16.msra.mxu1 %v5022_v44 }
  0xf4   : > { %2052 = vmatpush.bf16.msra.mxu2 %v5134_v63 }
  0xfa   : > { %4762 = vmatmul.msk.bf16.gmra.mxu0 %vm645_vm11, %v594_v1  ;;  %4770 = vmatmul.msk.bf16.gmra.mxu1 %vm645_vm11, %v594_v1 }
  0xfb   : > { %4778 = vmatmul.msk.bf16.gmra.mxu2 %vm645_vm11, %v594_v1 }
  0xfc   : > { %4786 = vmatmul.msk.bf16.gmra.mxu3 %vm645_vm11, %v594_v1  ;;  %v5853_v1 = vld [vmem:[#allocation4 + $0xe4] sm:$0xf] }
  0xfd   : > { %v4910_v4 = vor.u32 %v5853_v1, %v4907_v2 }
  0xff   : > { %1952 = vmatpush.bf16.msra.mxu0 %v4910_v4 }
 0x10a   : > { %4763 = vmatmul.msk.bf16.gmra.mxu0 %vm645_vm11, %v595_v16  ;;  %4771 = vmatmul.msk.bf16.gmra.mxu1 %vm645_vm11, %v595_v16 }
 0x10b   : > { %4779 = vmatmul.msk.bf16.gmra.mxu2 %vm645_vm11, %v595_v16 }
 0x10c   : > { %4787 = vmatmul.msk.bf16.gmra.mxu3 %vm645_vm11, %v595_v16 }
 0x11a   : > { %4764 = vmatmul.msk.bf16.gmra.mxu0 %vm645_vm11, %v596_v31  ;;  %4772 = vmatmul.msk.bf16.gmra.mxu1 %vm645_vm11, %v596_v31 }
 0x11b   : > { %4780 = vmatmul.msk.bf16.gmra.mxu2 %vm645_vm11, %v596_v31 }
 0x11c   : > { %4788 = vmatmul.msk.bf16.gmra.mxu3 %vm645_vm11, %v596_v31  ;;  %v4891_v31 = vld [vmem:[#allocation4 + $0xd0] sm:$0xf0] }
 0x11d   : > { %v4894_v34 = vor.u32 %v5849_v30, %v4891_v31 }
 0x11f   : > { %1953 = vmatpush.bf16.msra.mxu0 %v4894_v34 }
 0x123   : > { %1954 = vmatpush.bf16.msra.mxu0 %v4878_v10 }
 0x12a   : > { %4765 = vmatmul.msk.bf16.gmra.mxu0 %vm645_vm11, %v597_v46  ;;  %4773 = vmatmul.msk.bf16.gmra.mxu1 %vm645_vm11, %v597_v46 }
 0x12b   : > { %4781 = vmatmul.msk.bf16.gmra.mxu2 %vm645_vm11, %v597_v46 }
 0x12c   : > { %4789 = vmatmul.msk.bf16.gmra.mxu3 %vm645_vm11, %v597_v46 }
 0x13a   : > { %4766 = vmatmul.msk.bf16.gmra.mxu0 %vm645_vm11, %v598_v61  ;;  %4774 = vmatmul.msk.bf16.gmra.mxu1 %vm645_vm11, %v598_v61 }
 0x13b   : > { %4782 = vmatmul.msk.bf16.gmra.mxu2 %vm645_vm11, %v598_v61 }
 0x13c   : > { %4790 = vmatmul.msk.bf16.gmra.mxu3 %vm645_vm11, %v598_v61 }
 0x147   : > { %v695_v11 = vpop.f32.mrf.mxu0  ;;  %v744_v12 = vpop.f32.mrf.mxu1 }
 0x148   : > { %v696_v15 = vadd.f32 %v695_v11, %v6516_v13  ;;  %v745_v16 = vadd.f32 %v744_v12, %v6518_v14  ;;  %v5941_v11 = vld [vmem:[#allocation4 + $0x3a4] sm:$0xf]  ;;  %v5259_v12 = vld [vmem:[#allocation4 + $0x3b0] sm:$0xf0] }
 0x14a   : > { %v882_v24 = vmax.f32 %v696_v15, 0.0  ;;  %v883_v25 = vmax.f32 %v745_v16, 0.0  ;;  %v5262_v15 = vor.u32 %v5941_v11, %v5259_v12 }
 0x14c   : > { %2101 = vmatpush.bf16.msra.mxu3 %v5262_v15 }
 0x14e   : > { %v793_v19 = vpop.f32.mrf.mxu2 }
 0x14f   : > { %v842_v20 = vpop.f32.mrf.mxu3  ;;  %v697_v22 = vpop.f32.mrf.mxu0  ;;  %v794_v42 = vadd.f32 %v793_v19, %v6524_v28  ;;  %v5003_v19 = vld [vmem:[#allocation4 + $0x1b0] sm:$0xf0] }
 0x150   : > { %v746_v23 = vpop.f32.mrf.mxu1  ;;  %v698_v26 = vadd.f32 %v697_v22, %v6516_v13  ;;  %v843_v43 = vadd.f32 %v842_v20, %v6526_v29  ;;  %v5006_v22 = vor.u32 %v5877_v18, %v5003_v19 }
 0x151   : > { %v747_v27 = vadd.f32 %v746_v23, %v6518_v14  ;;  %v884_v51 = vmax.f32 %v794_v42, 0.0  ;;  %v5115_v42 = vld [vmem:[#allocation4 + $0x290] sm:$0xf0] }
 0x152   : > { %v886_v32 = vmax.f32 %v698_v26, 0.0  ;;  %v885_v52 = vmax.f32 %v843_v43, 0.0  ;;  %2003 = vmatpush.bf16.msra.mxu1 %v5006_v22 }
 0x153   : > { %v887_v33 = vmax.f32 %v747_v27, 0.0 }
 0x154   : > { %v6528_v38 = vpack.c.bf16 %v886_v32, %v882_v24 }
 0x155   : > { %v6530_v39 = vpack.c.bf16 %v887_v33, %v883_v25 }
 0x156   : > { %v795_v45 = vpop.f32.mrf.mxu2  ;;  %1764 = vmatmul.bf16.vlgmr.msrb.gmra.mxu0 %v6528_v38 }
 0x157   : > { %v844_v46 = vpop.f32.mrf.mxu3  ;;  %1813 = vmatmul.bf16.vlgmr.msrb.gmra.mxu1 %v6530_v39  ;;  %v796_v47 = vadd.f32 %v795_v45, %v6524_v28  ;;  %v700_v49 = vpop.f32.mrf.mxu0  ;;  %v5118_v45 = vor.u32 %v5905_v41, %v5115_v42  ;;  %v4843_v41 = vld [vmem:[#allocation4 + $0x70] sm:$0xf0] }
 0x158   : > { %v845_v48 = vadd.f32 %v844_v46, %v6526_v29  ;;  %v749_v50 = vpop.f32.mrf.mxu1  ;;  %v701_v57 = vadd.f32 %v700_v49, %v6516_v13 }
 0x159   : > { %v888_v53 = vmax.f32 %v796_v47, 0.0  ;;  %v750_v58 = vadd.f32 %v749_v50, %v6518_v14  ;;  %2053 = vmatpush.bf16.msra.mxu2 %v5118_v45  ;;  %v5933_v45 = vld [vmem:[#allocation4 + $0x364] sm:$0xf] }
 0x15a   : > { %v889_v54 = vmax.f32 %v845_v48, 0.0  ;;  %v890_v2 = vmax.f32 %v701_v57, 0.0 }
 0x15b   : > { %v6538_v55 = vpack.c.bf16 %v888_v53, %v884_v51  ;;  %v891_v3 = vmax.f32 %v750_v58, 0.0  ;;  %v4859_v53 = vld [vmem:[#allocation4 + $0x90] sm:$0xf0] }
 0x15c   : > { %v6540_v56 = vpack.c.bf16 %v889_v54, %v885_v52  ;;  %v5841_v52 = vld [vmem:[#allocation4 + $0x84] sm:$0xf] }
 0x15d   : > { %1862 = vmatmul.bf16.vlgmr.msrb.gmra.mxu2 %v6538_v55  ;;  %v4862_v58 = vor.u32 %v5841_v52, %v4859_v53 }
 0x15e   : > { %1911 = vmatmul.bf16.vlgmr.msrb.gmra.mxu3 %v6540_v56  ;;  %v798_v61 = vpop.f32.mrf.mxu2 }
 0x15f   : > { %v847_v62 = vpop.f32.mrf.mxu3  ;;  %v702_v0 = vpop.f32.mrf.mxu0  ;;  %v799_v20 = vadd.f32 %v798_v61, %v6524_v28  ;;  %v5246_v61 = vor.u32 %v5937_v59, %v5243_v60  ;;  %1955 = vmatpush.bf16.msra.mxu0 %v4862_v58 }
 0x160   : > { %v751_v1 = vpop.f32.mrf.mxu1  ;;  %v703_v4 = vadd.f32 %v702_v0, %v6516_v13  ;;  %v848_v21 = vadd.f32 %v847_v62, %v6526_v29  ;;  %v5873_v0 = vld [vmem:[#allocation4 + $0x184] sm:$0xf] }
 0x161   : > { %v752_v5 = vadd.f32 %v751_v1, %v6518_v14  ;;  %v892_v31 = vmax.f32 %v799_v20, 0.0  ;;  %v4987_v1 = vld [vmem:[#allocation4 + $0x190] sm:$0xf0]  ;;  %2102 = vmatpush.bf16.msra.mxu3 %v5246_v61 }
 0x162   : > { %v894_v8 = vmax.f32 %v703_v4, 0.0  ;;  %v893_v32 = vmax.f32 %v848_v21, 0.0  ;;  %v4990_v4 = vor.u32 %v5873_v0, %v4987_v1 }
 0x163   : > { %v895_v9 = vmax.f32 %v752_v5, 0.0 }
 0x164   : > { %v6548_v16 = vpack.c.bf16 %v894_v8, %v890_v2  ;;  %2004 = vmatpush.bf16.msra.mxu1 %v4990_v4 }
 0x165   : > { %v6550_v17 = vpack.c.bf16 %v895_v9, %v891_v3 }
 0x166   : > { %v800_v23 = vpop.f32.mrf.mxu2  ;;  %1769 = vmatmul.bf16.gmra.mxu0 %v6548_v16 }
 0x167   : > { %v849_v24 = vpop.f32.mrf.mxu3  ;;  %1818 = vmatmul.bf16.gmra.mxu1 %v6550_v17  ;;  %v801_v25 = vadd.f32 %v800_v23, %v6524_v28  ;;  %v705_v27 = vpop.f32.mrf.mxu0  ;;  %v5901_v23 = vld [vmem:[#allocation4 + $0x264] sm:$0xf] }
 0x168   : > { %v850_v26 = vadd.f32 %v849_v24, %v6526_v29  ;;  %v754_v30 = vpop.f32.mrf.mxu1  ;;  %v706_v37 = vadd.f32 %v705_v27, %v6516_v13  ;;  %v5099_v24 = vld [vmem:[#allocation4 + $0x270] sm:$0xf0] }
 0x169   : > { %v896_v33 = vmax.f32 %v801_v25, 0.0  ;;  %v755_v40 = vadd.f32 %v754_v30, %v6518_v14  ;;  %v5102_v27 = vor.u32 %v5901_v23, %v5099_v24 }
 0x16a   : > { %v897_v34 = vmax.f32 %v850_v26, 0.0  ;;  %v898_v48 = vmax.f32 %v706_v37, 0.0 }
 0x16b   : > { %v6558_v35 = vpack.c.bf16 %v896_v33, %v892_v31  ;;  %v899_v49 = vmax.f32 %v755_v40, 0.0  ;;  %2054 = vmatpush.bf16.msra.mxu2 %v5102_v27  ;;  %v5837_v40 = vld [vmem:[#allocation4 + $0x64] sm:$0xf]  ;;  %v4827_v27 = vld [vmem:[#allocation4 + $0x50] sm:$0xf0] }
 0x16c   : > { %v6560_v36 = vpack.c.bf16 %v897_v34, %v893_v32 }
 0x16d   : > { %1867 = vmatmul.bf16.gmra.mxu2 %v6558_v35 }
 0x16e   : > { %1916 = vmatmul.bf16.gmra.mxu3 %v6560_v36  ;;  %v803_v43 = vpop.f32.mrf.mxu2 }
 0x16f   : > { %v852_v44 = vpop.f32.mrf.mxu3  ;;  %v707_v46 = vpop.f32.mrf.mxu0  ;;  %v804_v2 = vadd.f32 %v803_v43, %v6524_v28 }
 0x170   : > { %v756_v47 = vpop.f32.mrf.mxu1  ;;  %v708_v50 = vadd.f32 %v707_v46, %v6516_v13  ;;  %v853_v3 = vadd.f32 %v852_v44, %v6526_v29  ;;  %v4846_v44 = vor.u32 %v5837_v40, %v4843_v41  ;;  %v5227_v46 = vld [vmem:[#allocation4 + $0x370] sm:$0xf0] }
 0x171   : > { %v757_v51 = vadd.f32 %v756_v47, %v6518_v14  ;;  %v900_v11 = vmax.f32 %v804_v2, 0.0  ;;  %v5230_v47 = vor.u32 %v5933_v45, %v5227_v46 }
 0x172   : > { %v902_v54 = vmax.f32 %v708_v50, 0.0  ;;  %v901_v12 = vmax.f32 %v853_v3, 0.0  ;;  %1956 = vmatpush.bf16.msra.mxu0 %v4846_v44  ;;  %v5869_v50 = vld [vmem:[#allocation4 + $0x164] sm:$0xf] }
 0x173   : > { %v903_v57 = vmax.f32 %v757_v51, 0.0  ;;  %v4971_v51 = vld [vmem:[#allocation4 + $0x170] sm:$0xf0]  ;;  %2103 = vmatpush.bf16.msra.mxu3 %v5230_v47 }
 0x174   : > { %v6568_v62 = vpack.c.bf16 %v902_v54, %v898_v48  ;;  %v4974_v54 = vor.u32 %v5869_v50, %v4971_v51 }
 0x175   : > { %v6570_v63 = vpack.c.bf16 %v903_v57, %v899_v49 }
 0x176   : > { %v805_v5 = vpop.f32.mrf.mxu2  ;;  %1774 = vmatmul.bf16.gmra.mxu0 %v6568_v62  ;;  %2005 = vmatpush.bf16.msra.mxu1 %v4974_v54 }
 0x177   : > { %v854_v6 = vpop.f32.mrf.mxu3  ;;  %1823 = vmatmul.bf16.gmra.mxu1 %v6570_v63  ;;  %v806_v7 = vadd.f32 %v805_v5, %v6524_v28  ;;  %v710_v9 = vpop.f32.mrf.mxu0 }
 0x178   : > { %v855_v8 = vadd.f32 %v854_v6, %v6526_v29  ;;  %v759_v10 = vpop.f32.mrf.mxu1  ;;  %v711_v21 = vadd.f32 %v710_v9, %v6516_v13  ;;  %v5897_v9 = vld [vmem:[#allocation4 + $0x244] sm:$0xf] }
 0x179   : > { %v904_v15 = vmax.f32 %v806_v7, 0.0  ;;  %v760_v22 = vadd.f32 %v759_v10, %v6518_v14  ;;  %v5083_v10 = vld [vmem:[#allocation4 + $0x250] sm:$0xf0] }
 0x17a   : > { %v905_v18 = vmax.f32 %v855_v8, 0.0  ;;  %v906_v32 = vmax.f32 %v711_v21, 0.0 }
 0x17b   : > { %v6578_v19 = vpack.c.bf16 %v904_v15, %v900_v11  ;;  %v907_v33 = vmax.f32 %v760_v22, 0.0  ;;  %v5086_v15 = vor.u32 %v5897_v9, %v5083_v10 }
 0x17c   : > { %v6580_v20 = vpack.c.bf16 %v905_v18, %v901_v12 }
 0x17d   : > { %1872 = vmatmul.bf16.gmra.mxu2 %v6578_v19 }
 0x17e   : > { %1921 = vmatmul.bf16.gmra.mxu3 %v6580_v20  ;;  %v808_v25 = vpop.f32.mrf.mxu2  ;;  %2055 = vmatpush.bf16.msra.mxu2 %v5086_v15 }
 0x17f   : > { %v857_v26 = vpop.f32.mrf.mxu3  ;;  %v712_v30 = vpop.f32.mrf.mxu0  ;;  %v809_v52 = vadd.f32 %v808_v25, %v6524_v28 }
 0x180   : > { %v761_v31 = vpop.f32.mrf.mxu1  ;;  %v713_v34 = vadd.f32 %v712_v30, %v6516_v13  ;;  %v858_v53 = vadd.f32 %v857_v26, %v6526_v29  ;;  %v5833_v26 = vld [vmem:[#allocation4 + $0x44] sm:$0xf] }
 0x181   : > { %v762_v37 = vadd.f32 %v761_v31, %v6518_v14  ;;  %v908_v1 = vmax.f32 %v809_v52, 0.0 }
 0x182   : > { %v910_v42 = vmax.f32 %v713_v34, 0.0  ;;  %v909_v2 = vmax.f32 %v858_v53, 0.0  ;;  %v5211_v34 = vld [vmem:[#allocation4 + $0x350] sm:$0xf0] }
 0x183   : > { %v911_v43 = vmax.f32 %v762_v37, 0.0 }
 0x184   : > { %v6588_v48 = vpack.c.bf16 %v910_v42, %v906_v32  ;;  %v4830_v32 = vor.u32 %v5833_v26, %v4827_v27  ;;  %v5865_v42 = vld [vmem:[#allocation4 + $0x144] sm:$0xf] }
 0x185   : > { %v6590_v49 = vpack.c.bf16 %v911_v43, %v907_v33  ;;  %v5929_v33 = vld [vmem:[#allocation4 + $0x344] sm:$0xf]  ;;  %v4955_v43 = vld [vmem:[#allocation4 + $0x150] sm:$0xf0] }
 0x186   : > { %v810_v57 = vpop.f32.mrf.mxu2  ;;  %1779 = vmatmul.bf16.gmra.mxu0 %v6588_v48  ;;  %v5214_v37 = vor.u32 %v5929_v33, %v5211_v34  ;;  %v4958_v46 = vor.u32 %v5865_v42, %v4955_v43  ;;  %v5925_v27 = vld [vmem:[#allocation4 + $0x324] sm:$0xf] }
 0x187   : > { %v859_v58 = vpop.f32.mrf.mxu3  ;;  %1828 = vmatmul.bf16.gmra.mxu1 %v6590_v49  ;;  %v811_v59 = vadd.f32 %v810_v57, %v6524_v28  ;;  %v715_v61 = vpop.f32.mrf.mxu0  ;;  %1957 = vmatpush.bf16.msra.mxu0 %v4830_v32  ;;  %v5861_v34 = vld [vmem:[#allocation4 + $0x124] sm:$0xf] }
 0x188   : > { %v860_v60 = vadd.f32 %v859_v58, %v6526_v29  ;;  %v764_v0 = vpop.f32.mrf.mxu1  ;;  %v716_v7 = vadd.f32 %v715_v61, %v6516_v13  ;;  %2104 = vmatpush.bf16.msra.mxu3 %v5214_v37  ;;  %2006 = vmatpush.bf16.msra.mxu1 %v4958_v46  ;;  %v4939_v37 = vld [vmem:[#allocation4 + $0x130] sm:$0xf0] }
 0x189   : > { %v912_v3 = vmax.f32 %v811_v59, 0.0  ;;  %v765_v8 = vadd.f32 %v764_v0, %v6518_v14 }
 0x18a   : > { %v913_v4 = vmax.f32 %v860_v60, 0.0  ;;  %v914_v22 = vmax.f32 %v716_v7, 0.0 }
 0x18b   : > { %v6598_v5 = vpack.c.bf16 %v912_v3, %v908_v1  ;;  %v915_v23 = vmax.f32 %v765_v8, 0.0  ;;  %v5893_v3 = vld [vmem:[#allocation4 + $0x224] sm:$0xf] }
 0x18c   : > { %v6600_v6 = vpack.c.bf16 %v913_v4, %v909_v2  ;;  %v5067_v4 = vld [vmem:[#allocation4 + $0x230] sm:$0xf0] }
 0x18d   : > { %1877 = vmatmul.bf16.gmra.mxu2 %v6598_v5  ;;  %v5070_v9 = vor.u32 %v5893_v3, %v5067_v4  ;;  %v5889_v3 = vld [vmem:[#allocation4 + $0x204] sm:$0xf]  ;;  %v5051_v4 = vld [vmem:[#allocation4 + $0x210] sm:$0xf0] }
 0x18e   : > { %1926 = vmatmul.bf16.gmra.mxu3 %v6600_v6  ;;  %v813_v11 = vpop.f32.mrf.mxu2 }
 0x18f   : > { %v862_v12 = vpop.f32.mrf.mxu3  ;;  %v717_v18 = vpop.f32.mrf.mxu0  ;;  %v814_v44 = vadd.f32 %v813_v11, %v6524_v28  ;;  %2056 = vmatpush.bf16.msra.mxu2 %v5070_v9 }
 0x190   : > { %v766_v21 = vpop.f32.mrf.mxu1  ;;  %v718_v24 = vadd.f32 %v717_v18, %v6516_v13  ;;  %v863_v45 = vadd.f32 %v862_v12, %v6526_v29 }
 0x191   : > { %v767_v25 = vadd.f32 %v766_v21, %v6518_v14  ;;  %v916_v57 = vmax.f32 %v814_v44, 0.0  ;;  %v4942_v44 = vor.u32 %v5861_v34, %v4939_v37 }
 0x192   : > { %v918_v30 = vmax.f32 %v718_v24, 0.0  ;;  %v917_v58 = vmax.f32 %v863_v45, 0.0 }
 0x193   : > { %v919_v31 = vmax.f32 %v767_v25, 0.0  ;;  %2007 = vmatpush.bf16.msra.mxu1 %v4942_v44 }
 0x194   : > { %v6608_v40 = vpack.c.bf16 %v918_v30, %v914_v22  ;;  %v5829_v22 = vld [vmem:[#allocation4 + $0x24] sm:$0xf]  ;;  %v5195_v30 = vld [vmem:[#allocation4 + $0x330] sm:$0xf0] }
 0x195   : > { %v6610_v41 = vpack.c.bf16 %v919_v31, %v915_v23  ;;  %v4811_v23 = vld [vmem:[#allocation4 + $0x30] sm:$0xf0]  ;;  %v5198_v31 = vor.u32 %v5925_v27, %v5195_v30 }
 0x196   : > { %v815_v47 = vpop.f32.mrf.mxu2  ;;  %1784 = vmatmul.bf16.gmra.mxu0 %v6608_v40  ;;  %v4814_v26 = vor.u32 %v5829_v22, %v4811_v23 }
 0x197   : > { %v864_v50 = vpop.f32.mrf.mxu3  ;;  %1833 = vmatmul.bf16.gmra.mxu1 %v6610_v41  ;;  %v816_v51 = vadd.f32 %v815_v47, %v6524_v28  ;;  %v720_v53 = vpop.f32.mrf.mxu0  ;;  %2105 = vmatpush.bf16.msra.mxu3 %v5198_v31 }
 0x198   : > { %v865_v52 = vadd.f32 %v864_v50, %v6526_v29  ;;  %v769_v54 = vpop.f32.mrf.mxu1  ;;  %v721_v1 = vadd.f32 %v720_v53, %v6516_v13  ;;  %1958 = vmatpush.bf16.msra.mxu0 %v4814_v26  ;;  %v4923_v26 = vld [vmem:[#allocation4 + $0x110] sm:$0xf0] }
 0x199   : > { %v920_v59 = vmax.f32 %v816_v51, 0.0  ;;  %v770_v2 = vadd.f32 %v769_v54, %v6518_v14 }
 0x19a   : > { %v921_v60 = vmax.f32 %v865_v52, 0.0  ;;  %v922_v12 = vmax.f32 %v721_v1, 0.0 }
 0x19b   : > { %v6618_v61 = vpack.c.bf16 %v920_v59, %v916_v57  ;;  %v923_v15 = vmax.f32 %v770_v2, 0.0 }
 0x19c   : > { %v6620_v0 = vpack.c.bf16 %v921_v60, %v917_v58 }
 0x19d   : > { %1882 = vmatmul.bf16.gmra.mxu2 %v6618_v61 }
 0x19e   : > { %1931 = vmatmul.bf16.gmra.mxu3 %v6620_v0  ;;  %v818_v7 = vpop.f32.mrf.mxu2 }
 0x19f   : > { %v867_v8 = vpop.f32.mrf.mxu3  ;;  %v722_v10 = vpop.f32.mrf.mxu0  ;;  %v819_v42 = vadd.f32 %v818_v7, %v6524_v28  ;;  %v5825_v7 = vld [vmem:[#allocation4 + $0x4] sm:$0xf] }
 0x1a0   : > { %v771_v11 = vpop.f32.mrf.mxu1  ;;  %v723_v18 = vadd.f32 %v722_v10, %v6516_v13  ;;  %v868_v43 = vadd.f32 %v867_v8, %v6526_v29  ;;  %v5054_v10 = vor.u32 %v5889_v3, %v5051_v4 }
 0x1a1   : > { %v772_v21 = vadd.f32 %v771_v11, %v6518_v14  ;;  %v924_v53 = vmax.f32 %v819_v42, 0.0  ;;  %v4795_v11 = vld [vmem:[#allocation4 + $0x10] sm:$0xf0] }
 0x1a2   : > { %v926_v24 = vmax.f32 %v723_v18, 0.0  ;;  %v925_v54 = vmax.f32 %v868_v43, 0.0  ;;  %v4798_v23 = vor.u32 %v5825_v7, %v4795_v11  ;;  %2057 = vmatpush.bf16.msra.mxu2 %v5054_v10 }
 0x1a3   : > { %v927_v25 = vmax.f32 %v772_v21, 0.0 }
 0x1a4   : > { %v6628_v32 = vpack.c.bf16 %v926_v24, %v922_v12  ;;  %v5921_v12 = vld [vmem:[#allocation4 + $0x304] sm:$0xf]  ;;  %1959 = vmatpush.bf16.msra.mxu0 %v4798_v23 }
 0x1a5   : > { %v6630_v33 = vpack.c.bf16 %v927_v25, %v923_v15  ;;  %v5179_v15 = vld [vmem:[#allocation4 + $0x310] sm:$0xf0]  ;;  %v5857_v25 = vld [vmem:[#allocation4 + $0x104] sm:$0xf] }
 0x1a6   : > { %v820_v45 = vpop.f32.mrf.mxu2  ;;  %1789 = vmatmul.bf16.gmra.mxu0 %v6628_v32  ;;  %v5182_v24 = vor.u32 %v5921_v12, %v5179_v15  ;;  %v4926_v34 = vor.u32 %v5857_v25, %v4923_v26  ;;  %v5169_v15 = vld [vmem:[#allocation4 + $0x2e8] sm:$0xf]  ;;  %v5856_v25 = vld [vmem:[#allocation4 + $0xf4] sm:$0xf0] }
 0x1a7   : > { %v869_v46 = vpop.f32.mrf.mxu3  ;;  %1838 = vmatmul.bf16.gmra.mxu1 %v6630_v33  ;;  %v821_v47 = vadd.f32 %v820_v45, %v6524_v28  ;;  %v725_v51 = vpop.f32.mrf.mxu0  ;;  %v5297_v26 = vld [vmem:[#allocation4 + $0x3e8] sm:$0xf] }
 0x1a8   : > { %v870_v50 = vadd.f32 %v869_v46, %v6526_v29  ;;  %v774_v52 = vpop.f32.mrf.mxu1  ;;  %v726_v1 = vadd.f32 %v725_v51, %v6516_v13  ;;  %2106 = vmatpush.bf16.msra.mxu3 %v5182_v24  ;;  %2008 = vmatpush.bf16.msra.mxu1 %v4926_v34 }
 0x1a9   : > { %v928_v57 = vmax.f32 %v821_v47, 0.0  ;;  %v775_v2 = vadd.f32 %v774_v52, %v6518_v14 }
 0x1aa   : > { %v929_v58 = vmax.f32 %v870_v50, 0.0  ;;  %v930_v18 = vmax.f32 %v726_v1, 0.0 }
 0x1ab   : > { %v6638_v59 = vpack.c.bf16 %v928_v57, %v924_v53  ;;  %v931_v27 = vmax.f32 %v775_v2, 0.0 }
 0x1ac   : > { %v6640_v60 = vpack.c.bf16 %v929_v58, %v925_v54 }
 0x1ad   : > { %1887 = vmatmul.bf16.gmra.mxu2 %v6638_v59 }
 0x1ae   : > { %1936 = vmatmul.bf16.gmra.mxu3 %v6640_v60  ;;  %v823_v8 = vpop.f32.mrf.mxu2 }
 0x1af   : > { %v872_v9 = vpop.f32.mrf.mxu3  ;;  %v727_v21 = vpop.f32.mrf.mxu0  ;;  %v824_v43 = vadd.f32 %v823_v8, %v6524_v28 }
 0x1b0   : > { %v776_v22 = vpop.f32.mrf.mxu1  ;;  %v728_v30 = vadd.f32 %v727_v21, %v6516_v13  ;;  %v873_v44 = vadd.f32 %v872_v9, %v6526_v29  ;;  %v4913_v21 = vld [vmem:[#allocation4 + $0xe8] sm:$0xf] }
 0x1b1   : > { %v777_v31 = vadd.f32 %v776_v22, %v6518_v14  ;;  %v932_v57 = vmax.f32 %v824_v43, 0.0  ;;  %v4914_v34 = vor.u32 %v5856_v25, %v4913_v21  ;;  %v5852_v21 = vld [vmem:[#allocation4 + $0xd4] sm:$0xf0] }
 0x1b2   : > { %v934_v37 = vmax.f32 %v728_v30, 0.0  ;;  %v933_v58 = vmax.f32 %v873_v44, 0.0 }
 0x1b3   : > { %v935_v42 = vmax.f32 %v777_v31, 0.0  ;;  %2148 = vmatpush.bf16.msrb.mxu0 %v4914_v34  ;;  %v5025_v34 = vld [vmem:[#allocation4 + $0x1c8] sm:$0xf] }
 0x1b4   : > { %v6650_v45 = vpack.c.bf16 %v934_v37, %v930_v18  ;;  %v5920_v18 = vld [vmem:[#allocation4 + $0x2f4] sm:$0xf0] }
 0x1b5   : > { %v6652_v46 = vpack.c.bf16 %v935_v42, %v931_v27  ;;  %v5170_v24 = vor.u32 %v5920_v18, %v5169_v15  ;;  %v5952_v27 = vld [vmem:[#allocation4 + $0x3f4] sm:$0xf0]  ;;  %v4897_v15 = vld [vmem:[#allocation4 + $0xc8] sm:$0xf] }
 0x1b6   : > { %v825_v47 = vpop.f32.mrf.mxu2  ;;  %1794 = vmatmul.bf16.gmra.mxu0 %v6650_v45  ;;  %v5298_v37 = vor.u32 %v5952_v27, %v5297_v26  ;;  %v4898_v26 = vor.u32 %v5852_v21, %v4897_v15 }
 0x1b7   : > { %v874_v50 = vpop.f32.mrf.mxu3  ;;  %1843 = vmatmul.bf16.gmra.mxu1 %v6652_v46  ;;  %v826_v51 = vadd.f32 %v825_v47, %v6524_v28  ;;  %v730_v53 = vpop.f32.mrf.mxu0  ;;  %2246 = vmatpush.bf16.msrb.mxu2 %v5170_v24 }
 0x1b8   : > { %v875_v52 = vadd.f32 %v874_v50, %v6526_v29  ;;  %v779_v54 = vpop.f32.mrf.mxu1  ;;  %v731_v3 = vadd.f32 %v730_v53, %v6516_v13  ;;  %2295 = vmatpush.bf16.msrb.mxu3 %v5298_v37  ;;  %2149 = vmatpush.bf16.msrb.mxu0 %v4898_v26  ;;  %v5884_v37 = vld [vmem:[#allocation4 + $0x1d4] sm:$0xf0]  ;;  %v6701_v26 = vld [vmem:[#allocation9] sm:$0xf] }
 0x1b9   : > { %v936_v1 = vmax.f32 %v826_v51, 0.0  ;;  %v780_v4 = vadd.f32 %v779_v54, %v6518_v14  ;;  %v5041_v54 = vld [vmem:[#allocation4 + $0x1e8] sm:$0xf] }
 0x1ba   : > { %v937_v2 = vmax.f32 %v875_v52, 0.0  ;;  %v938_v9 = vmax.f32 %v731_v3, 0.0 }
 0x1bb   : > { %v6660_v7 = vpack.c.bf16 %v936_v1, %v932_v57  ;;  %v939_v10 = vmax.f32 %v780_v4, 0.0  ;;  %v5888_v57 = vld [vmem:[#allocation4 + $0x1f4] sm:$0xf0] }
 0x1bc   : > { %v6662_v8 = vpack.c.bf16 %v937_v2, %v933_v58  ;;  %v5042_v58 = vor.u32 %v5888_v57, %v5041_v54  ;;  %v5137_v54 = vld [vmem:[#allocation4 + $0x2a8] sm:$0xf]  ;;  %v5912_v57 = vld [vmem:[#allocation4 + $0x2b4] sm:$0xf0] }
 0x1bd   : > { %1892 = vmatmul.bf16.gmra.mxu2 %v6660_v7 }
 0x1be   : > { %1941 = vmatmul.bf16.gmra.mxu3 %v6662_v8  ;;  %v828_v11 = vpop.f32.mrf.mxu2  ;;  %2197 = vmatpush.bf16.msrb.mxu1 %v5042_v58  ;;  %v4881_v58 = vld [vmem:[#allocation4 + $0xa8] sm:$0xf] }
 0x1bf   : > { %v877_v12 = vpop.f32.mrf.mxu3  ;;  %v732_v22 = vpop.f32.mrf.mxu0  ;;  %v829_v50 = vadd.f32 %v828_v11, %v6524_v28  ;;  %v5153_v11 = vld [vmem:[#allocation4 + $0x2c8] sm:$0xf] }
 0x1c0   : > { %v781_v23 = vpop.f32.mrf.mxu1  ;;  %v733_v30 = vadd.f32 %v732_v22, %v6516_v13  ;;  %v878_v51 = vadd.f32 %v877_v12, %v6526_v29  ;;  %v5916_v12 = vld [vmem:[#allocation4 + $0x2d4] sm:$0xf0]  ;;  %v5281_v22 = vld [vmem:[#allocation4 + $0x3c8] sm:$0xf] }
 0x1c1   : > { %v782_v31 = vadd.f32 %v781_v23, %v6518_v14  ;;  %v940_v1 = vmax.f32 %v829_v50, 0.0  ;;  %v5154_v18 = vor.u32 %v5916_v12, %v5153_v11  ;;  %v5948_v23 = vld [vmem:[#allocation4 + $0x3d4] sm:$0xf0] }
 0x1c2   : > { %v942_v42 = vmax.f32 %v733_v30, 0.0  ;;  %v941_v2 = vmax.f32 %v878_v51, 0.0  ;;  %v5282_v27 = vor.u32 %v5948_v23, %v5281_v22 }
 0x1c3   : > { %v943_v43 = vmax.f32 %v782_v31, 0.0  ;;  %2247 = vmatpush.bf16.msrb.mxu2 %v5154_v18 }
 0x1c4   : > { %v6668_v44 = vpack.c.bf16 %v942_v42, %v938_v9  ;;  %2296 = vmatpush.bf16.msrb.mxu3 %v5282_v27  ;;  %v5026_v42 = vor.u32 %v5884_v37, %v5025_v34 }
 0x1c5   : > { %v6670_v47 = vpack.c.bf16 %v943_v43, %v939_v10 }
 0x1c6   : > { %v830_v52 = vpop.f32.mrf.mxu2  ;;  %1799 = vmatmul.bf16.gmra.mxu0 %v6668_v44  ;;  %2198 = vmatpush.bf16.msrb.mxu1 %v5026_v42  ;;  %v6704_v42 = vperm.slane %v6701_v26, 0 }
 0x1c7   : > { %v879_v53 = vpop.f32.mrf.mxu3  ;;  %1848 = vmatmul.bf16.gmra.mxu1 %v6670_v47  ;;  %v831_v13 = vadd.f32 %v830_v52, %v6524_v28  ;;  %v6687_v28 = vld [vmem:[%s7617_s5] sm:$0xf] }
 0x1c8   : > { %v880_v14 = vadd.f32 %v879_v53, %v6526_v29  ;;  %v6690_v29 = vperm.slane %v6687_v28, 0 }
 0x1c9   : > { %v944_v3 = vmax.f32 %v831_v13, 0.0 }
 0x1ca   : > { %v945_v4 = vmax.f32 %v880_v14, 0.0 }
 0x1cb   : > { %v6678_v9 = vpack.c.bf16 %v944_v3, %v940_v1  ;;  %v5138_v1 = vor.u32 %v5912_v57, %v5137_v54  ;;  %v5265_v3 = vld [vmem:[#allocation4 + $0x3a8] sm:$0xf] }
 0x1cc   : > { %v6680_v10 = vpack.c.bf16 %v945_v4, %v941_v2  ;;  %v5848_v2 = vld [vmem:[#allocation4 + $0xb4] sm:$0xf0] }
 0x1cd   : > { %1897 = vmatmul.bf16.gmra.mxu2 %v6678_v9  ;;  %v5944_v4 = vld [vmem:[#allocation4 + $0x3b4] sm:$0xf0]  ;;  %v4882_v18 = vor.u32 %v5848_v2, %v4881_v58 }
 0x1ce   : > { %1946 = vmatmul.bf16.gmra.mxu3 %v6680_v10  ;;  %v5266_v21 = vor.u32 %v5944_v4, %v5265_v3  ;;  %2248 = vmatpush.bf16.msrb.mxu2 %v5138_v1  ;;  %v5121_v3 = vld [vmem:[#allocation4 + $0x288] sm:$0xf]  ;;  %v5908_v4 = vld [vmem:[#allocation4 + $0x294] sm:$0xf0] }
 0x1cf   : > { %2150 = vmatpush.bf16.msrb.mxu0 %v4882_v18  ;;  %v5249_v18 = vld [vmem:[#allocation4 + $0x388] sm:$0xf] }
 0x1d0   : > { %2297 = vmatpush.bf16.msrb.mxu3 %v5266_v21  ;;  %v5940_v21 = vld [vmem:[#allocation4 + $0x394] sm:$0xf0] }
 0x1d3   : > { %v1765_v24 = vpop.f32.mrf.mxu0 }
 0x1d4   : > { %v1814_v25 = vpop.f32.mrf.mxu1  ;;  %v1766_v30 = vadd.f32 %v1765_v24, %v6690_v29  ;;  %v5009_v24 = vld [vmem:[#allocation4 + $0x1a8] sm:$0xf] }
 0x1d6   : > { %v1815_v31 = vadd.f32 %v1814_v25, %v1766_v30  ;;  %1960 = vmatmul.bf16.vlgmr.msra.gmra.mxu0 %v6528_v38  ;;  %v5880_v25 = vld [vmem:[#allocation4 + $0x1b4] sm:$0xf0] }
 0x1d7   : > { %2009 = vmatmul.bf16.vlgmr.msra.gmra.mxu1 %v6530_v39 }
 0x1db   : > { %v1767_v43 = vpop.f32.mrf.mxu0 }
 0x1dc   : > { %v1816_v50 = vpop.f32.mrf.mxu1  ;;  %v1768_v51 = vadd.f32 %v1767_v43, %v6690_v29 }
 0x1dd   : > { %2058 = vmatmul.bf16.vlgmr.msra.gmra.mxu2 %v6538_v55 }
 0x1de   : > { %2107 = vmatmul.bf16.vlgmr.msra.gmra.mxu3 %v6540_v56  ;;  %v1817_v52 = vadd.f32 %v1816_v50, %v1768_v51 }
 0x1e0   : > { %v1863_v53 = vpop.f32.mrf.mxu2 }
 0x1e1   : > { %v1912_v13 = vpop.f32.mrf.mxu3  ;;  %v1864_v14 = vadd.f32 %v1863_v53, %v1815_v31  ;;  %v5010_v31 = vor.u32 %v5880_v25, %v5009_v24 }
 0x1e3   : > { %v1913_v11 = vadd.f32 %v1912_v13, %v1864_v14  ;;  %v1770_v12 = vpop.f32.mrf.mxu0  ;;  %2199 = vmatpush.bf16.msrb.mxu1 %v5010_v31 }
 0x1e4   : > { %v1819_v15 = vpop.f32.mrf.mxu1  ;;  %v1771_v22 = vadd.f32 %v1770_v12, %v6690_v29  ;;  %v5122_v12 = vor.u32 %v5908_v4, %v5121_v3 }
 0x1e5   : > { %v2540_v37 = vmax.f32 %v1913_v11, 0.0  ;;  %v4865_v11 = vld [vmem:[#allocation4 + $0x88] sm:$0xf] }
 0x1e6   : > { %v1820_v23 = vadd.f32 %v1819_v15, %v1771_v22  ;;  %1965 = vmatmul.bf16.gmra.mxu0 %v6548_v16  ;;  %v5844_v15 = vld [vmem:[#allocation4 + $0x94] sm:$0xf0]  ;;  %2249 = vmatpush.bf16.msrb.mxu2 %v5122_v12 }
 0x1e7   : > { %2014 = vmatmul.bf16.gmra.mxu1 %v6550_v17  ;;  %v2613_v54 = vmul.f32 %v6704_v42, %v2540_v37  ;;  %v5876_v37 = vld [vmem:[#allocation4 + $0x194] sm:$0xf0] }
 0x1e8   : > { %v1865_v27 = vpop.f32.mrf.mxu2 }
 0x1e9   : > { %v1914_v30 = vpop.f32.mrf.mxu3  ;;  %v1866_v34 = vadd.f32 %v1865_v27, %v1817_v52  ;;  %v4866_v27 = vor.u32 %v5844_v15, %v4865_v11 }
 0x1eb   : > { %v1915_v43 = vadd.f32 %v1914_v30, %v1866_v34  ;;  %v1772_v50 = vpop.f32.mrf.mxu0  ;;  %v5250_v30 = vor.u32 %v5940_v21, %v5249_v18  ;;  %2151 = vmatpush.bf16.msrb.mxu0 %v4866_v27  ;;  %v5105_v21 = vld [vmem:[#allocation4 + $0x268] sm:$0xf]  ;;  %v5840_v27 = vld [vmem:[#allocation4 + $0x74] sm:$0xf0] }
 0x1ec   : > { %v1821_v51 = vpop.f32.mrf.mxu1  ;;  %v1773_v53 = vadd.f32 %v1772_v50, %v6690_v29 }
 0x1ed   : > { %v2544_v13 = vmax.f32 %v1915_v43, 0.0  ;;  %2063 = vmatmul.bf16.gmra.mxu2 %v6558_v35  ;;  %2298 = vmatpush.bf16.msrb.mxu3 %v5250_v30  ;;  %v5233_v30 = vld [vmem:[#allocation4 + $0x368] sm:$0xf] }
 0x1ee   : > { %2112 = vmatmul.bf16.gmra.mxu3 %v6560_v36  ;;  %v1822_v14 = vadd.f32 %v1821_v51, %v1773_v53 }
 0x1ef   : > { %v2617_v52 = vmul.f32 %v6704_v42, %v2544_v13 }
 0x1f0   : > { %v1868_v57 = vpop.f32.mrf.mxu2 }
 0x1f1   : > { %v1917_v58 = vpop.f32.mrf.mxu3  ;;  %v6711_v1 = vpack.c.bf16 %v2617_v52, %v2613_v54  ;;  %v1869_v2 = vadd.f32 %v1868_v57, %v1820_v23  ;;  %v4993_v23 = vld [vmem:[#allocation4 + $0x188] sm:$0xf] }
 0x1f2   : > { %v4994_v51 = vor.u32 %v5876_v37, %v4993_v23 }
 0x1f3   : > { %v1918_v22 = vadd.f32 %v1917_v58, %v1869_v2  ;;  %v1775_v24 = vpop.f32.mrf.mxu0 }
 0x1f4   : > { %v1824_v25 = vpop.f32.mrf.mxu1  ;;  %v1776_v31 = vadd.f32 %v1775_v24, %v6690_v29  ;;  %2200 = vmatpush.bf16.msrb.mxu1 %v4994_v51  ;;  %v4849_v24 = vld [vmem:[#allocation4 + $0x68] sm:$0xf] }
 0x1f5   : > { %v2548_v13 = vmax.f32 %v1918_v22, 0.0  ;;  %v5904_v22 = vld [vmem:[#allocation4 + $0x274] sm:$0xf0] }
 0x1f6   : > { %v1825_v34 = vadd.f32 %v1824_v25, %v1776_v31  ;;  %1970 = vmatmul.bf16.gmra.mxu0 %v6568_v62  ;;  %v5106_v25 = vor.u32 %v5904_v22, %v5105_v21  ;;  %v5936_v31 = vld [vmem:[#allocation4 + $0x374] sm:$0xf0] }
 0x1f7   : > { %2019 = vmatmul.bf16.gmra.mxu1 %v6570_v63  ;;  %v2621_v4 = vmul.f32 %v6704_v42, %v2548_v13  ;;  %v5234_v51 = vor.u32 %v5936_v31, %v5233_v30 }
 0x1f8   : > { %v1870_v43 = vpop.f32.mrf.mxu2  ;;  %2250 = vmatpush.bf16.msrb.mxu2 %v5106_v25 }
 0x1f9   : > { %v1919_v50 = vpop.f32.mrf.mxu3  ;;  %v1871_v53 = vadd.f32 %v1870_v43, %v1822_v14  ;;  %2299 = vmatpush.bf16.msrb.mxu3 %v5234_v51  ;;  %v5836_v51 = vld [vmem:[#allocation4 + $0x54] sm:$0xf0] }
 0x1fb   : > { %v1920_v54 = vadd.f32 %v1919_v50, %v1871_v53  ;;  %v1777_v52 = vpop.f32.mrf.mxu0  ;;  %v4850_v50 = vor.u32 %v5840_v27, %v4849_v24 }
 0x1fc   : > { %v1826_v57 = vpop.f32.mrf.mxu1  ;;  %v1778_v58 = vadd.f32 %v1777_v52, %v6690_v29 }
 0x1fd   : > { %v2552_v2 = vmax.f32 %v1920_v54, 0.0  ;;  %2068 = vmatmul.bf16.gmra.mxu2 %v6578_v19  ;;  %2152 = vmatpush.bf16.msrb.mxu0 %v4850_v50  ;;  %v5872_v54 = vld [vmem:[#allocation4 + $0x174] sm:$0xf0] }
 0x1fe   : > { %2117 = vmatmul.bf16.gmra.mxu3 %v6580_v20  ;;  %v1827_v3 = vadd.f32 %v1826_v57, %v1778_v58 }
 0x1ff   : > { %v2625_v11 = vmul.f32 %v6704_v42, %v2552_v2 }
 0x200   : > { %v1873_v12 = vpop.f32.mrf.mxu2 }
 0x201   : > { %v1922_v15 = vpop.f32.mrf.mxu3  ;;  %v6721_v14 = vpack.c.bf16 %v2625_v11, %v2621_v4  ;;  %v1874_v18 = vadd.f32 %v1873_v12, %v1825_v34  ;;  %v4977_v34 = vld [vmem:[#allocation4 + $0x168] sm:$0xf] }
 0x202   : > { %v4978_v58 = vor.u32 %v5872_v54, %v4977_v34  ;;  %v5932_v34 = vld [vmem:[#allocation4 + $0x354] sm:$0xf0] }
 0x203   : > { %v1923_v23 = vadd.f32 %v1922_v15, %v1874_v18  ;;  %v1780_v37 = vpop.f32.mrf.mxu0 }
 0x204   : > { %v1829_v43 = vpop.f32.mrf.mxu1  ;;  %v1781_v53 = vadd.f32 %v1780_v37, %v6690_v29  ;;  %2201 = vmatpush.bf16.msrb.mxu1 %v4978_v58  ;;  %v5900_v37 = vld [vmem:[#allocation4 + $0x254] sm:$0xf0] }
 0x205   : > { %v2556_v4 = vmax.f32 %v1923_v23, 0.0  ;;  %v5089_v23 = vld [vmem:[#allocation4 + $0x248] sm:$0xf] }
 0x206   : > { %v1830_v13 = vadd.f32 %v1829_v43, %v1781_v53  ;;  %1975 = vmatmul.bf16.gmra.mxu0 %v6588_v48  ;;  %v4833_v43 = vld [vmem:[#allocation4 + $0x48] sm:$0xf]  ;;  %v5090_v50 = vor.u32 %v5900_v37, %v5089_v23 }
 0x207   : > { %2024 = vmatmul.bf16.gmra.mxu1 %v6590_v49  ;;  %v2629_v24 = vmul.f32 %v6704_v42, %v2556_v4  ;;  %v5217_v53 = vld [vmem:[#allocation4 + $0x348] sm:$0xf]  ;;  %v4834_v58 = vor.u32 %v5836_v51, %v4833_v43 }
 0x208   : > { %v1875_v52 = vpop.f32.mrf.mxu2  ;;  %2251 = vmatpush.bf16.msrb.mxu2 %v5090_v50 }
 0x209   : > { %v1924_v57 = vpop.f32.mrf.mxu3  ;;  %v1876_v2 = vadd.f32 %v1875_v52, %v1827_v3  ;;  %2153 = vmatpush.bf16.msrb.mxu0 %v4834_v58  ;;  %v4817_v58 = vld [vmem:[#allocation4 + $0x28] sm:$0xf] }
 0x20b   : > { %v1925_v11 = vadd.f32 %v1924_v57, %v1876_v2  ;;  %v1782_v12 = vpop.f32.mrf.mxu0  ;;  %v5218_v2 = vor.u32 %v5932_v34, %v5217_v53 }
 0x20c   : > { %v1831_v15 = vpop.f32.mrf.mxu1  ;;  %v1783_v18 = vadd.f32 %v1782_v12, %v6690_v29  ;;  %v5868_v12 = vld [vmem:[#allocation4 + $0x154] sm:$0xf0] }
 0x20d   : > { %v2560_v21 = vmax.f32 %v1925_v11, 0.0  ;;  %2073 = vmatmul.bf16.gmra.mxu2 %v6598_v5  ;;  %2300 = vmatpush.bf16.msrb.mxu3 %v5218_v2 }
 0x20e   : > { %2122 = vmatmul.bf16.gmra.mxu3 %v6600_v6  ;;  %v1832_v22 = vadd.f32 %v1831_v15, %v1783_v18 }
 0x20f   : > { %v2633_v25 = vmul.f32 %v6704_v42, %v2560_v21 }
 0x210   : > { %v1878_v27 = vpop.f32.mrf.mxu2 }
 0x211   : > { %v1927_v30 = vpop.f32.mrf.mxu3  ;;  %v6731_v3 = vpack.c.bf16 %v2633_v25, %v2629_v24  ;;  %v1879_v31 = vadd.f32 %v1878_v27, %v1830_v13  ;;  %v4961_v13 = vld [vmem:[#allocation4 + $0x148] sm:$0xf] }
 0x212   : > { %v4962_v21 = vor.u32 %v5868_v12, %v4961_v13  ;;  %v5201_v13 = vld [vmem:[#allocation4 + $0x328] sm:$0xf]  ;;  %v5928_v12 = vld [vmem:[#allocation4 + $0x334] sm:$0xf0] }
 0x213   : > { %v1928_v54 = vadd.f32 %v1927_v30, %v1879_v31  ;;  %v1785_v52 = vpop.f32.mrf.mxu0 }
 0x214   : > { %v1834_v57 = vpop.f32.mrf.mxu1  ;;  %v1786_v4 = vadd.f32 %v1785_v52, %v6690_v29  ;;  %2202 = vmatpush.bf16.msrb.mxu1 %v4962_v21  ;;  %v5073_v52 = vld [vmem:[#allocation4 + $0x228] sm:$0xf] }
 0x215   : > { %v2564_v25 = vmax.f32 %v1928_v54, 0.0 }
 0x216   : > { %v1835_v11 = vadd.f32 %v1834_v57, %v1786_v4  ;;  %1980 = vmatmul.bf16.gmra.mxu0 %v6608_v40  ;;  %v5896_v57 = vld [vmem:[#allocation4 + $0x234] sm:$0xf0] }
 0x217   : > { %2029 = vmatmul.bf16.gmra.mxu1 %v6610_v41  ;;  %v2637_v50 = vmul.f32 %v6704_v42, %v2564_v25  ;;  %v5074_v2 = vor.u32 %v5896_v57, %v5073_v52  ;;  %v5832_v4 = vld [vmem:[#allocation4 + $0x34] sm:$0xf0] }
 0x218   : > { %v1880_v15 = vpop.f32.mrf.mxu2 }
 0x219   : > { %v1929_v18 = vpop.f32.mrf.mxu3  ;;  %v1881_v24 = vadd.f32 %v1880_v15, %v1832_v22  ;;  %2252 = vmatpush.bf16.msrb.mxu2 %v5074_v2 }
 0x21b   : > { %v1930_v27 = vadd.f32 %v1929_v18, %v1881_v24  ;;  %v1787_v30 = vpop.f32.mrf.mxu0  ;;  %v4818_v24 = vor.u32 %v5832_v4, %v4817_v58 }
 0x21c   : > { %v1836_v31 = vpop.f32.mrf.mxu1  ;;  %v1788_v23 = vadd.f32 %v1787_v30, %v6690_v29 }
 0x21d   : > { %v2568_v37 = vmax.f32 %v1930_v27, 0.0  ;;  %2078 = vmatmul.bf16.gmra.mxu2 %v6618_v61  ;;  %v5202_v27 = vor.u32 %v5928_v12, %v5201_v13  ;;  %2154 = vmatpush.bf16.msrb.mxu0 %v4818_v24  ;;  %v5892_v24 = vld [vmem:[#allocation4 + $0x214] sm:$0xf0] }
 0x21e   : > { %2127 = vmatmul.bf16.gmra.mxu3 %v6620_v0  ;;  %v1837_v43 = vadd.f32 %v1836_v31, %v1788_v23  ;;  %v5864_v31 = vld [vmem:[#allocation4 + $0x134] sm:$0xf0] }
 0x21f   : > { %v2641_v51 = vmul.f32 %v6704_v42, %v2568_v37  ;;  %2301 = vmatpush.bf16.msrb.mxu3 %v5202_v27  ;;  %v4801_v27 = vld [vmem:[#allocation4 + $0x8] sm:$0xf] }
 0x220   : > { %v1883_v53 = vpop.f32.mrf.mxu2 }
 0x221   : > { %v1932_v34 = vpop.f32.mrf.mxu3  ;;  %v6741_v22 = vpack.c.bf16 %v2641_v51, %v2637_v50  ;;  %v1884_v54 = vadd.f32 %v1883_v53, %v1835_v11  ;;  %v4945_v11 = vld [vmem:[#allocation4 + $0x128] sm:$0xf] }
 0x222   : > { %v4946_v50 = vor.u32 %v5864_v31, %v4945_v11  ;;  %v5828_v11 = vld [vmem:[#allocation4 + $0x14] sm:$0xf0]  ;;  %v5185_v31 = vld [vmem:[#allocation4 + $0x308] sm:$0xf] }
 0x223   : > { %7654 = vst [vmem:[#allocation16_spill] sm:$0xff] %v6741_v22  ;;  %v1933_v15 = vadd.f32 %v1932_v34, %v1884_v54  ;;  %v1790_v18 = vpop.f32.mrf.mxu0 }
 0x224   : > { %v1839_v21 = vpop.f32.mrf.mxu1  ;;  %v1791_v25 = vadd.f32 %v1790_v18, %v6690_v29  ;;  %2203 = vmatpush.bf16.msrb.mxu1 %v4946_v50 }
 0x225   : > { %v2572_v53 = vmax.f32 %v1933_v15, 0.0 }
 0x226   : > { %v1840_v30 = vadd.f32 %v1839_v21, %v1791_v25  ;;  %1985 = vmatmul.bf16.gmra.mxu0 %v6628_v32  ;;  %v5057_v21 = vld [vmem:[#allocation4 + $0x208] sm:$0xf] }
 0x227   : > { %2034 = vmatmul.bf16.gmra.mxu1 %v6630_v33  ;;  %v2645_v4 = vmul.f32 %v6704_v42, %v2572_v53  ;;  %v5058_v25 = vor.u32 %v5892_v24, %v5057_v21  ;;  %v4929_v53 = vld [vmem:[#allocation4 + $0x108] sm:$0xf] }
 0x228   : > { %v1885_v23 = vpop.f32.mrf.mxu2 }
 0x229   : > { %v1934_v37 = vpop.f32.mrf.mxu3  ;;  %v1886_v51 = vadd.f32 %v1885_v23, %v1837_v43  ;;  %v5924_v23 = vld [vmem:[#allocation4 + $0x314] sm:$0xf0]  ;;  %2253 = vmatpush.bf16.msrb.mxu2 %v5058_v25 }
 0x22b   : > { %v1935_v34 = vadd.f32 %v1934_v37, %v1886_v51  ;;  %v1792_v54 = vpop.f32.mrf.mxu0 }
 0x22c   : > { %v1841_v52 = vpop.f32.mrf.mxu1  ;;  %v1793_v57 = vadd.f32 %v1792_v54, %v6690_v29  ;;  %v5186_v54 = vor.u32 %v5924_v23, %v5185_v31 }
 0x22d   : > { %v2576_v58 = vmax.f32 %v1935_v34, 0.0  ;;  %2083 = vmatmul.bf16.gmra.mxu2 %v6638_v59  ;;  %v4802_v34 = vor.u32 %v5828_v11, %v4801_v27 }
 0x22e   : > { %2132 = vmatmul.bf16.gmra.mxu3 %v6640_v60  ;;  %v1842_v2 = vadd.f32 %v1841_v52, %v1793_v57  ;;  %v5860_v52 = vld [vmem:[#allocation4 + $0x114] sm:$0xf0] }
 0x22f   : > { %v2649_v13 = vmul.f32 %v6704_v42, %v2576_v58  ;;  %v4930_v58 = vor.u32 %v5860_v52, %v4929_v53  ;;  %2155 = vmatpush.bf16.msrb.mxu0 %v4802_v34  ;;  %2302 = vmatpush.bf16.msrb.mxu3 %v5186_v54  ;;  %v5171_v54 = vld [vmem:[#allocation4 + $0x2f8] sm:$0xf0]  ;;  %v5854_v53 = vld [vmem:[#allocation4 + $0xec] sm:$0xf] }
 0x230   : > { %v1888_v12 = vpop.f32.mrf.mxu2 }
 0x231   : > { %v1937_v18 = vpop.f32.mrf.mxu3  ;;  %v6751_v43 = vpack.c.bf16 %v2649_v13, %v2645_v4  ;;  %v1889_v15 = vadd.f32 %v1888_v12, %v1840_v30  ;;  %2204 = vmatpush.bf16.msrb.mxu1 %v4930_v58  ;;  %v5950_v58 = vld [vmem:[#allocation4 + $0x3ec] sm:$0xf] }
 0x233   : > { %7655 = vst [vmem:[#allocation17_spill] sm:$0xff] %v6751_v43  ;;  %v1938_v37 = vadd.f32 %v1937_v18, %v1889_v15  ;;  %v1795_v50 = vpop.f32.mrf.mxu0 }
 0x234   : > { %v1844_v51 = vpop.f32.mrf.mxu1  ;;  %v1796_v57 = vadd.f32 %v1795_v50, %v6690_v29 }
 0x235   : > { %v2580_v18 = vmax.f32 %v1938_v37, 0.0  ;;  %v5918_v37 = vld [vmem:[#allocation4 + $0x2ec] sm:$0xf] }
 0x236   : > { %v1845_v30 = vadd.f32 %v1844_v51, %v1796_v57  ;;  %1990 = vmatmul.bf16.gmra.mxu0 %v6650_v45  ;;  %v5174_v52 = vor.u32 %v5918_v37, %v5171_v54  ;;  %v4915_v57 = vld [vmem:[#allocation4 + $0xf8] sm:$0xf0] }
 0x237   : > { %2039 = vmatmul.bf16.gmra.mxu1 %v6652_v46  ;;  %v2653_v31 = vmul.f32 %v6704_v42, %v2580_v18 }
 0x238   : > { %v1890_v4 = vpop.f32.mrf.mxu2  ;;  %2442 = vmatpush.bf16.msra.mxu2 %v5174_v52 }
 0x239   : > { %v1939_v13 = vpop.f32.mrf.mxu3  ;;  %v1891_v12 = vadd.f32 %v1890_v4, %v1842_v2  ;;  %v5299_v4 = vld [vmem:[#allocation4 + $0x3f8] sm:$0xf0] }
 0x23b   : > { %v1940_v15 = vadd.f32 %v1939_v13, %v1891_v12  ;;  %v1797_v21 = vpop.f32.mrf.mxu0 }
 0x23c   : > { %v1846_v24 = vpop.f32.mrf.mxu1  ;;  %v1798_v27 = vadd.f32 %v1797_v21, %v6690_v29  ;;  %v4918_v21 = vor.u32 %v5854_v53, %v4915_v57 }
 0x23d   : > { %v2584_v11 = vmax.f32 %v1940_v15, 0.0  ;;  %2088 = vmatmul.bf16.gmra.mxu2 %v6660_v7 }
 0x23e   : > { %2137 = vmatmul.bf16.gmra.mxu3 %v6662_v8  ;;  %v1847_v25 = vadd.f32 %v1846_v24, %v1798_v27  ;;  %v5302_v24 = vor.u32 %v5950_v58, %v5299_v4  ;;  %2344 = vmatpush.bf16.msra.mxu0 %v4918_v21 }
 0x23f   : > { %v2657_v23 = vmul.f32 %v6704_v42, %v2584_v11  ;;  %v5043_v11 = vld [vmem:[#allocation4 + $0x1f8] sm:$0xf0] }
 0x240   : > { %v1893_v50 = vpop.f32.mrf.mxu2  ;;  %2491 = vmatpush.bf16.msra.mxu3 %v5302_v24 }
 0x241   : > { %v1942_v51 = vpop.f32.mrf.mxu3  ;;  %v6761_v34 = vpack.c.bf16 %v2657_v23, %v2653_v31  ;;  %v1894_v2 = vadd.f32 %v1893_v50, %v1845_v30  ;;  %v5886_v30 = vld [vmem:[#allocation4 + $0x1ec] sm:$0xf] }
 0x242   : > { %v5046_v50 = vor.u32 %v5886_v30, %v5043_v11  ;;  %v5850_v30 = vld [vmem:[#allocation4 + $0xcc] sm:$0xf] }
 0x243   : > { %7656 = vst [vmem:[#allocation18_spill] sm:$0xff] %v6761_v34  ;;  %v1943_v13 = vadd.f32 %v1942_v51, %v1894_v2  ;;  %v1800_v12 = vpop.f32.mrf.mxu0 }
 0x244   : > { %v1849_v15 = vpop.f32.mrf.mxu1  ;;  %v1801_v18 = vadd.f32 %v1800_v12, %v6690_v29  ;;  %2393 = vmatpush.bf16.msra.mxu1 %v5046_v50  ;;  %v5283_v50 = vld [vmem:[#allocation4 + $0x3d8] sm:$0xf0] }
 0x245   : > { %v2588_v2 = vmax.f32 %v1943_v13, 0.0 }
 0x246   : > { %v1850_v27 = vadd.f32 %v1849_v15, %v1801_v18  ;;  %1995 = vmatmul.bf16.gmra.mxu0 %v6668_v44  ;;  %v5914_v18 = vld [vmem:[#allocation4 + $0x2cc] sm:$0xf] }
 0x247   : > { %2044 = vmatmul.bf16.gmra.mxu1 %v6670_v47  ;;  %v2661_v4 = vmul.f32 %v6704_v42, %v2588_v2 }
 0x248   : > { %v1895_v31 = vpop.f32.mrf.mxu2 }
 0x249   : > { %v1944_v23 = vpop.f32.mrf.mxu3  ;;  %v1896_v51 = vadd.f32 %v1895_v31, %v1847_v25  ;;  %v6772_v25 = vperm.slane %v6687_v28, 1  ;;  %v4899_v31 = vld [vmem:[#allocation4 + $0xd8] sm:$0xf0] }
 0x24b   : > { %v1945_v37 = vadd.f32 %v1944_v23, %v1896_v51  ;;  %v1802_v54 = vpop.f32.mrf.mxu0  ;;  %v5946_v23 = vld [vmem:[#allocation4 + $0x3cc] sm:$0xf] }
 0x24c   : > { %v1851_v53 = vpop.f32.mrf.mxu1  ;;  %v1803_v52 = vadd.f32 %v1802_v54, %v6690_v29  ;;  %v5155_v29 = vld [vmem:[#allocation4 + $0x2d8] sm:$0xf0]  ;;  %v4902_v54 = vor.u32 %v5850_v30, %v4899_v31 }
 0x24d   : > { %v2592_v57 = vmax.f32 %v1945_v37, 0.0  ;;  %2093 = vmatmul.bf16.gmra.mxu2 %v6678_v9  ;;  %v5158_v11 = vor.u32 %v5914_v18, %v5155_v29 }
 0x24e   : > { %2142 = vmatmul.bf16.gmra.mxu3 %v6680_v10  ;;  %v1852_v58 = vadd.f32 %v1851_v53, %v1803_v52  ;;  %v5286_v53 = vor.u32 %v5946_v23, %v5283_v50  ;;  %2345 = vmatpush.bf16.msra.mxu0 %v4902_v54 }
 0x24f   : > { %v2665_v12 = vmul.f32 %v6704_v42, %v2592_v57  ;;  %2443 = vmatpush.bf16.msra.mxu2 %v5158_v11  ;;  %v5027_v57 = vld [vmem:[#allocation4 + $0x1d8] sm:$0xf0] }
 0x250   : > { %v1898_v15 = vpop.f32.mrf.mxu2  ;;  %2492 = vmatpush.bf16.msra.mxu3 %v5286_v53  ;;  %v5910_v53 = vld [vmem:[#allocation4 + $0x2ac] sm:$0xf] }
 0x251   : > { %v1947_v21 = vpop.f32.mrf.mxu3  ;;  %v6774_v13 = vpack.c.bf16 %v2665_v12, %v2661_v4  ;;  %v1899_v24 = vadd.f32 %v1898_v15, %v1850_v27  ;;  %v5882_v27 = vld [vmem:[#allocation4 + $0x1cc] sm:$0xf] }
 0x252   : > { %v5030_v15 = vor.u32 %v5882_v27, %v5027_v57  ;;  %v5846_v27 = vld [vmem:[#allocation4 + $0xac] sm:$0xf] }
 0x253   : > { %7657 = vst [vmem:[#allocation19_spill] sm:$0xff] %v6774_v13  ;;  %v1948_v51 = vadd.f32 %v1947_v21, %v1899_v24  ;;  %v1961_v37 = vpop.f32.mrf.mxu0 }
 0x254   : > { %v2010_v2 = vpop.f32.mrf.mxu1  ;;  %v1962_v52 = vadd.f32 %v1961_v37, %v6772_v25  ;;  %2394 = vmatpush.bf16.msra.mxu1 %v5030_v15  ;;  %v5267_v15 = vld [vmem:[#allocation4 + $0x3b8] sm:$0xf0] }
 0x255   : > { %v2596_v24 = vmax.f32 %v1948_v51, 0.0 }
 0x256   : > { %v2011_v28 = vadd.f32 %v2010_v2, %v1962_v52  ;;  %2156 = vmatmul.bf16.vlgmr.msrb.gmra.mxu0 %v6528_v38  ;;  %v5139_v52 = vld [vmem:[#allocation4 + $0x2b8] sm:$0xf0] }
 0x257   : > { %2205 = vmatmul.bf16.vlgmr.msrb.gmra.mxu1 %v6530_v39  ;;  %v2669_v50 = vmul.f32 %v6704_v42, %v2596_v24  ;;  %v5142_v57 = vor.u32 %v5910_v53, %v5139_v52  ;;  %v6790_v53 = vperm.slane %v6701_v26, 1 }
 0x258   : > { %v1900_v4 = vpop.f32.mrf.mxu2 }
 0x259   : > { %v1949_v12 = vpop.f32.mrf.mxu3  ;;  %v1901_v21 = vadd.f32 %v1900_v4, %v1852_v58  ;;  %v4883_v4 = vld [vmem:[#allocation4 + $0xb8] sm:$0xf0]  ;;  %2444 = vmatpush.bf16.msra.mxu2 %v5142_v57 }
 0x25b   : > { %v1950_v18 = vadd.f32 %v1949_v12, %v1901_v21  ;;  %v1963_v29 = vpop.f32.mrf.mxu0  ;;  %v5942_v12 = vld [vmem:[#allocation4 + $0x3ac] sm:$0xf] }
 0x25c   : > { %v2012_v30 = vpop.f32.mrf.mxu1  ;;  %v1964_v11 = vadd.f32 %v1963_v29, %v6772_v25 }
 0x25d   : > { %v2600_v31 = vmax.f32 %v1950_v18, 0.0  ;;  %2254 = vmatmul.bf16.vlgmr.msrb.gmra.mxu2 %v6538_v55 }
 0x25e   : > { %2303 = vmatmul.bf16.vlgmr.msrb.gmra.mxu3 %v6540_v56  ;;  %v2013_v23 = vadd.f32 %v2012_v30, %v1964_v11  ;;  %v4886_v30 = vor.u32 %v5846_v27, %v4883_v4  ;;  %v5270_v11 = vor.u32 %v5942_v12, %v5267_v15 }
 0x25f   : > { %v2673_v37 = vmul.f32 %v6704_v42, %v2600_v31  ;;  %v5011_v31 = vld [vmem:[#allocation4 + $0x1b8] sm:$0xf0] }
 0x260   : > { %v2059_v2 = vpop.f32.mrf.mxu2  ;;  %2346 = vmatpush.bf16.msra.mxu0 %v4886_v30  ;;  %2493 = vmatpush.bf16.msra.mxu3 %v5270_v11  ;;  %v5906_v11 = vld [vmem:[#allocation4 + $0x28c] sm:$0xf] }
 0x261   : > { %v2108_v54 = vpop.f32.mrf.mxu3  ;;  %v6784_v58 = vpack.c.bf16 %v2673_v37, %v2669_v50  ;;  %v2060_v51 = vadd.f32 %v2059_v2, %v2011_v28  ;;  %v5878_v28 = vld [vmem:[#allocation4 + $0x1ac] sm:$0xf] }
 0x262   : > { %v5014_v2 = vor.u32 %v5878_v28, %v5011_v31  ;;  %v5842_v28 = vld [vmem:[#allocation4 + $0x8c] sm:$0xf] }
 0x263   : > { %7658 = vst [vmem:[#allocation20_spill] sm:$0xff] %v6784_v58  ;;  %v2109_v21 = vadd.f32 %v2108_v54, %v2060_v51  ;;  %v1966_v18 = vpop.f32.mrf.mxu0 }
 0x264   : > { %v2015_v29 = vpop.f32.mrf.mxu1  ;;  %v1967_v24 = vadd.f32 %v1966_v18, %v6772_v25  ;;  %2395 = vmatpush.bf16.msra.mxu1 %v5014_v2  ;;  %v5251_v2 = vld [vmem:[#allocation4 + $0x398] sm:$0xf0] }
 0x265   : > { %v2541_v51 = vmax.f32 %v2109_v21, 0.0 }
 0x266   : > { %v2016_v42 = vadd.f32 %v2015_v29, %v1967_v24  ;;  %2161 = vmatmul.bf16.gmra.mxu0 %v6548_v16  ;;  %v5123_v24 = vld [vmem:[#allocation4 + $0x298] sm:$0xf0] }
 0x267   : > { %2210 = vmatmul.bf16.gmra.mxu1 %v6550_v17  ;;  %v2614_v18 = vmul.f32 %v6790_v53, %v2541_v51  ;;  %v5126_v31 = vor.u32 %v5906_v11, %v5123_v24 }
 0x268   : > { %v2061_v50 = vpop.f32.mrf.mxu2 }
 0x269   : > { %v2110_v37 = vpop.f32.mrf.mxu3  ;;  %v2062_v54 = vadd.f32 %v2061_v50, %v2013_v23  ;;  %v4867_v50 = vld [vmem:[#allocation4 + $0x98] sm:$0xf0]  ;;  %2445 = vmatpush.bf16.msra.mxu2 %v5126_v31 }
 0x26b   : > { %v2111_v52 = vadd.f32 %v2110_v37, %v2062_v54  ;;  %v1968_v27 = vpop.f32.mrf.mxu0  ;;  %v5938_v37 = vld [vmem:[#allocation4 + $0x38c] sm:$0xf] }
 0x26c   : > { %v2017_v57 = vpop.f32.mrf.mxu1  ;;  %v1969_v4 = vadd.f32 %v1968_v27, %v6772_v25 }
 0x26d   : > { %v2545_v12 = vmax.f32 %v2111_v52, 0.0  ;;  %2259 = vmatmul.bf16.gmra.mxu2 %v6558_v35 }
 0x26e   : > { %2308 = vmatmul.bf16.gmra.mxu3 %v6560_v36  ;;  %v2018_v15 = vadd.f32 %v2017_v57, %v1969_v4  ;;  %v4870_v57 = vor.u32 %v5842_v28, %v4867_v50  ;;  %v5254_v4 = vor.u32 %v5938_v37, %v5251_v2 }
 0x26f   : > { %v2618_v23 = vmul.f32 %v6790_v53, %v2545_v12 }
 0x270   : > { %v2064_v29 = vpop.f32.mrf.mxu2  ;;  %2347 = vmatpush.bf16.msra.mxu0 %v4870_v57  ;;  %2494 = vmatpush.bf16.msra.mxu3 %v5254_v4 }
 0x271   : > { %v2113_v21 = vpop.f32.mrf.mxu3  ;;  %v6797_v30 = vpack.c.bf16 %v2618_v23, %v2614_v18  ;;  %v2065_v26 = vadd.f32 %v2064_v29, %v2016_v42  ;;  %v5874_v42 = vld [vmem:[#allocation4 + $0x18c] sm:$0xf]  ;;  %v4995_v18 = vld [vmem:[#allocation4 + $0x198] sm:$0xf0] }
 0x272   : > { %v4998_v11 = vor.u32 %v5874_v42, %v4995_v18  ;;  %v5107_v42 = vld [vmem:[#allocation4 + $0x278] sm:$0xf0]  ;;  %v5838_v18 = vld [vmem:[#allocation4 + $0x6c] sm:$0xf] }
 0x273   : > { %v2114_v54 = vadd.f32 %v2113_v21, %v2065_v26  ;;  %v1971_v52 = vpop.f32.mrf.mxu0 }
 0x274   : > { %v2020_v27 = vpop.f32.mrf.mxu1  ;;  %v1972_v51 = vadd.f32 %v1971_v52, %v6772_v25  ;;  %2396 = vmatpush.bf16.msra.mxu1 %v4998_v11  ;;  %v5934_v11 = vld [vmem:[#allocation4 + $0x36c] sm:$0xf] }
 0x275   : > { %v2549_v26 = vmax.f32 %v2114_v54, 0.0 }
 0x276   : > { %v2021_v12 = vadd.f32 %v2020_v27, %v1972_v51  ;;  %2166 = vmatmul.bf16.gmra.mxu0 %v6568_v62  ;;  %v5902_v51 = vld [vmem:[#allocation4 + $0x26c] sm:$0xf] }
 0x277   : > { %2215 = vmatmul.bf16.gmra.mxu1 %v6570_v63  ;;  %v2622_v52 = vmul.f32 %v6790_v53, %v2549_v26 }
 0x278   : > { %v2066_v23 = vpop.f32.mrf.mxu2 }
 0x279   : > { %v2115_v29 = vpop.f32.mrf.mxu3  ;;  %v2067_v21 = vadd.f32 %v2066_v23, %v2018_v15  ;;  %v5110_v23 = vor.u32 %v5902_v51, %v5107_v42 }
 0x27b   : > { %v2116_v24 = vadd.f32 %v2115_v29, %v2067_v21  ;;  %v1973_v28 = vpop.f32.mrf.mxu0  ;;  %v4851_v29 = vld [vmem:[#allocation4 + $0x78] sm:$0xf0]  ;;  %2446 = vmatpush.bf16.msra.mxu2 %v5110_v23 }
 0x27c   : > { %v2022_v50 = vpop.f32.mrf.mxu1  ;;  %v1974_v31 = vadd.f32 %v1973_v28, %v6772_v25  ;;  %v5235_v21 = vld [vmem:[#allocation4 + $0x378] sm:$0xf0] }
 0x27d   : > { %v2553_v37 = vmax.f32 %v2116_v24, 0.0  ;;  %2264 = vmatmul.bf16.gmra.mxu2 %v6578_v19 }
 0x27e   : > { %2313 = vmatmul.bf16.gmra.mxu3 %v6580_v20  ;;  %v2023_v2 = vadd.f32 %v2022_v50, %v1974_v31  ;;  %v4854_v50 = vor.u32 %v5838_v18, %v4851_v29  ;;  %v5238_v31 = vor.u32 %v5934_v11, %v5235_v21 }
 0x27f   : > { %v2626_v27 = vmul.f32 %v6790_v53, %v2553_v37 }
 0x280   : > { %v2069_v57 = vpop.f32.mrf.mxu2  ;;  %2348 = vmatpush.bf16.msra.mxu0 %v4854_v50  ;;  %2495 = vmatpush.bf16.msra.mxu3 %v5238_v31 }
 0x281   : > { %v2118_v4 = vpop.f32.mrf.mxu3  ;;  %v6807_v15 = vpack.c.bf16 %v2626_v27, %v2622_v52  ;;  %v2070_v54 = vadd.f32 %v2069_v57, %v2021_v12  ;;  %v5870_v12 = vld [vmem:[#allocation4 + $0x16c] sm:$0xf]  ;;  %v4979_v52 = vld [vmem:[#allocation4 + $0x178] sm:$0xf0] }
 0x282   : > { %v4982_v51 = vor.u32 %v5870_v12, %v4979_v52  ;;  %v5091_v12 = vld [vmem:[#allocation4 + $0x258] sm:$0xf0]  ;;  %v5834_v52 = vld [vmem:[#allocation4 + $0x4c] sm:$0xf] }
 0x283   : > { %7659 = vst [vmem:[#allocation21_spill] sm:$0xff] %v6807_v15  ;;  %v2119_v24 = vadd.f32 %v2118_v4, %v2070_v54  ;;  %v1976_v28 = vpop.f32.mrf.mxu0 }
 0x284   : > { %v2025_v58 = vpop.f32.mrf.mxu1  ;;  %v1977_v26 = vadd.f32 %v1976_v28, %v6772_v25  ;;  %2397 = vmatpush.bf16.msra.mxu1 %v4982_v51  ;;  %v5930_v51 = vld [vmem:[#allocation4 + $0x34c] sm:$0xf] }
 0x285   : > { %v2557_v54 = vmax.f32 %v2119_v24, 0.0 }
 0x286   : > { %v2026_v37 = vadd.f32 %v2025_v58, %v1977_v26  ;;  %2171 = vmatmul.bf16.gmra.mxu0 %v6588_v48  ;;  %v5898_v26 = vld [vmem:[#allocation4 + $0x24c] sm:$0xf] }
 0x287   : > { %2220 = vmatmul.bf16.gmra.mxu1 %v6590_v49  ;;  %v2630_v21 = vmul.f32 %v6790_v53, %v2557_v54 }
 0x288   : > { %v2071_v27 = vpop.f32.mrf.mxu2 }
 0x289   : > { %v2120_v57 = vpop.f32.mrf.mxu3  ;;  %v2072_v4 = vadd.f32 %v2071_v27, %v2023_v2  ;;  %v5094_v27 = vor.u32 %v5898_v26, %v5091_v12 }
 0x28b   : > { %v2121_v42 = vadd.f32 %v2120_v57, %v2072_v4  ;;  %v1978_v18 = vpop.f32.mrf.mxu0  ;;  %v4835_v57 = vld [vmem:[#allocation4 + $0x58] sm:$0xf0]  ;;  %2447 = vmatpush.bf16.msra.mxu2 %v5094_v27 }
 0x28c   : > { %v2027_v29 = vpop.f32.mrf.mxu1  ;;  %v1979_v23 = vadd.f32 %v1978_v18, %v6772_v25  ;;  %v5219_v4 = vld [vmem:[#allocation4 + $0x358] sm:$0xf0] }
 0x28d   : > { %v2561_v11 = vmax.f32 %v2121_v42, 0.0  ;;  %2269 = vmatmul.bf16.gmra.mxu2 %v6598_v5 }
 0x28e   : > { %2318 = vmatmul.bf16.gmra.mxu3 %v6600_v6  ;;  %v2028_v58 = vadd.f32 %v2027_v29, %v1979_v23  ;;  %v4838_v29 = vor.u32 %v5834_v52, %v4835_v57  ;;  %v5222_v23 = vor.u32 %v5930_v51, %v5219_v4 }
 0x28f   : > { %v2634_v28 = vmul.f32 %v6790_v53, %v2561_v11 }
 0x290   : > { %v2074_v50 = vpop.f32.mrf.mxu2  ;;  %2349 = vmatpush.bf16.msra.mxu0 %v4838_v29  ;;  %2496 = vmatpush.bf16.msra.mxu3 %v5222_v23 }
 0x291   : > { %v2123_v31 = vpop.f32.mrf.mxu3  ;;  %v6817_v2 = vpack.c.bf16 %v2634_v28, %v2630_v21  ;;  %v2075_v24 = vadd.f32 %v2074_v50, %v2026_v37  ;;  %v5866_v37 = vld [vmem:[#allocation4 + $0x14c] sm:$0xf]  ;;  %v4963_v21 = vld [vmem:[#allocation4 + $0x158] sm:$0xf0] }
 0x292   : > { %v4966_v26 = vor.u32 %v5866_v37, %v4963_v21  ;;  %v5075_v37 = vld [vmem:[#allocation4 + $0x238] sm:$0xf0]  ;;  %v5830_v21 = vld [vmem:[#allocation4 + $0x2c] sm:$0xf] }
 0x293   : > { %7660 = vst [vmem:[#allocation22_spill] sm:$0xff] %v6817_v2  ;;  %v2124_v42 = vadd.f32 %v2123_v31, %v2075_v24  ;;  %v1981_v18 = vpop.f32.mrf.mxu0 }
 0x294   : > { %v2030_v13 = vpop.f32.mrf.mxu1  ;;  %v1982_v54 = vadd.f32 %v1981_v18, %v6772_v25  ;;  %2398 = vmatpush.bf16.msra.mxu1 %v4966_v26  ;;  %v5926_v26 = vld [vmem:[#allocation4 + $0x32c] sm:$0xf] }
 0x295   : > { %v2565_v24 = vmax.f32 %v2124_v42, 0.0 }
 0x296   : > { %v2031_v11 = vadd.f32 %v2030_v13, %v1982_v54  ;;  %2176 = vmatmul.bf16.gmra.mxu0 %v6608_v40  ;;  %v5894_v54 = vld [vmem:[#allocation4 + $0x22c] sm:$0xf] }
 0x297   : > { %2225 = vmatmul.bf16.gmra.mxu1 %v6610_v41  ;;  %v2638_v4 = vmul.f32 %v6790_v53, %v2565_v24 }
 0x298   : > { %v2076_v28 = vpop.f32.mrf.mxu2 }
 0x299   : > { %v2125_v50 = vpop.f32.mrf.mxu3  ;;  %v2077_v31 = vadd.f32 %v2076_v28, %v2028_v58  ;;  %v5078_v28 = vor.u32 %v5894_v54, %v5075_v37 }
 0x29b   : > { %v2126_v12 = vadd.f32 %v2125_v50, %v2077_v31  ;;  %v1983_v52 = vpop.f32.mrf.mxu0  ;;  %v4819_v50 = vld [vmem:[#allocation4 + $0x38] sm:$0xf0]  ;;  %2448 = vmatpush.bf16.msra.mxu2 %v5078_v28 }
 0x29c   : > { %v2032_v57 = vpop.f32.mrf.mxu1  ;;  %v1984_v27 = vadd.f32 %v1983_v52, %v6772_v25  ;;  %v5203_v31 = vld [vmem:[#allocation4 + $0x338] sm:$0xf0] }
 0x29d   : > { %v2569_v51 = vmax.f32 %v2126_v12, 0.0  ;;  %2274 = vmatmul.bf16.gmra.mxu2 %v6618_v61 }
 0x29e   : > { %2323 = vmatmul.bf16.gmra.mxu3 %v6620_v0  ;;  %v2033_v13 = vadd.f32 %v2032_v57, %v1984_v27  ;;  %v4822_v57 = vor.u32 %v5830_v21, %v4819_v50  ;;  %v5206_v27 = vor.u32 %v5926_v26, %v5203_v31 }
 0x29f   : > { %v2642_v18 = vmul.f32 %v6790_v53, %v2569_v51 }
 0x2a0   : > { %v2079_v29 = vpop.f32.mrf.mxu2  ;;  %2350 = vmatpush.bf16.msra.mxu0 %v4822_v57  ;;  %2497 = vmatpush.bf16.msra.mxu3 %v5206_v27 }
 0x2a1   : > { %v2128_v23 = vpop.f32.mrf.mxu3  ;;  %v6827_v58 = vpack.c.bf16 %v2642_v18, %v2638_v4  ;;  %v2080_v42 = vadd.f32 %v2079_v29, %v2031_v11  ;;  %v5862_v11 = vld [vmem:[#allocation4 + $0x12c] sm:$0xf]  ;;  %v4947_v4 = vld [vmem:[#allocation4 + $0x138] sm:$0xf0] }
 0x2a2   : > { %v4950_v54 = vor.u32 %v5862_v11, %v4947_v4  ;;  %v5059_v11 = vld [vmem:[#allocation4 + $0x218] sm:$0xf0]  ;;  %v5826_v4 = vld [vmem:[#allocation4 + $0xc] sm:$0xf] }
 0x2a3   : > { %7661 = vst [vmem:[#allocation23_spill] sm:$0xff] %v6827_v58  ;;  %v2129_v12 = vadd.f32 %v2128_v23, %v2080_v42  ;;  %v1986_v52 = vpop.f32.mrf.mxu0  ;;  %v4931_v58 = vld [vmem:[#allocation4 + $0x118] sm:$0xf0] }
 0x2a4   : > { %v2035_v34 = vpop.f32.mrf.mxu1  ;;  %v1987_v24 = vadd.f32 %v1986_v52, %v6772_v25  ;;  %2399 = vmatpush.bf16.msra.mxu1 %v4950_v54  ;;  %v5922_v54 = vld [vmem:[#allocation4 + $0x30c] sm:$0xf] }
 0x2a5   : > { %v2573_v42 = vmax.f32 %v2129_v12, 0.0 }
 0x2a6   : > { %v2036_v51 = vadd.f32 %v2035_v34, %v1987_v24  ;;  %2181 = vmatmul.bf16.gmra.mxu0 %v6628_v32  ;;  %v5890_v24 = vld [vmem:[#allocation4 + $0x20c] sm:$0xf] }
 0x2a7   : > { %2230 = vmatmul.bf16.gmra.mxu1 %v6630_v33  ;;  %v2646_v31 = vmul.f32 %v6790_v53, %v2573_v42  ;;  %v5858_v42 = vld [vmem:[#allocation4 + $0x10c] sm:$0xf] }
 0x2a8   : > { %v2081_v18 = vpop.f32.mrf.mxu2 }
 0x2a9   : > { %v2130_v29 = vpop.f32.mrf.mxu3  ;;  %v2082_v23 = vadd.f32 %v2081_v18, %v2033_v13  ;;  %v5062_v18 = vor.u32 %v5890_v24, %v5059_v11 }
 0x2ab   : > { %v2131_v37 = vadd.f32 %v2130_v29, %v2082_v23  ;;  %v1988_v21 = vpop.f32.mrf.mxu0  ;;  %v4803_v29 = vld [vmem:[#allocation4 + $0x18] sm:$0xf0]  ;;  %2449 = vmatpush.bf16.msra.mxu2 %v5062_v18 }
 0x2ac   : > { %v2037_v50 = vpop.f32.mrf.mxu1  ;;  %v1989_v28 = vadd.f32 %v1988_v21, %v6772_v25  ;;  %v5187_v23 = vld [vmem:[#allocation4 + $0x318] sm:$0xf0] }
 0x2ad   : > { %v2577_v26 = vmax.f32 %v2131_v37, 0.0  ;;  %2279 = vmatmul.bf16.gmra.mxu2 %v6638_v59 }
 0x2ae   : > { %2328 = vmatmul.bf16.gmra.mxu3 %v6640_v60  ;;  %v2038_v34 = vadd.f32 %v2037_v50, %v1989_v28  ;;  %v4806_v50 = vor.u32 %v5826_v4, %v4803_v29  ;;  %v5190_v28 = vor.u32 %v5922_v54, %v5187_v23 }
 0x2af   : > { %v2650_v52 = vmul.f32 %v6790_v53, %v2577_v26 }
 0x2b0   : > { %v2084_v57 = vpop.f32.mrf.mxu2  ;;  %2351 = vmatpush.bf16.msra.mxu0 %v4806_v50  ;;  %2498 = vmatpush.bf16.msra.mxu3 %v5190_v28 }
 0x2b1   : > { %v2133_v27 = vpop.f32.mrf.mxu3  ;;  %v6837_v13 = vpack.c.bf16 %v2650_v52, %v2646_v31  ;;  %v2085_v12 = vadd.f32 %v2084_v57, %v2036_v51  ;;  %v4934_v31 = vor.u32 %v5858_v42, %v4931_v58 }
 0x2b3   : > { %v2134_v37 = vadd.f32 %v2133_v27, %v2085_v12  ;;  %v1991_v21 = vpop.f32.mrf.mxu0  ;;  %2400 = vmatpush.bf16.msra.mxu1 %v4934_v31 }
 0x2b4   : > { %v2040_v43 = vpop.f32.mrf.mxu1  ;;  %v1992_v26 = vadd.f32 %v1991_v21, %v6772_v25 }
 0x2b5   : > { %v2581_v12 = vmax.f32 %v2134_v37, 0.0 }
 0x2b6   : > { %v2041_v51 = vadd.f32 %v2040_v43, %v1992_v26  ;;  %2186 = vmatmul.bf16.gmra.mxu0 %v6650_v45 }
 0x2b7   : > { %2235 = vmatmul.bf16.gmra.mxu1 %v6652_v46  ;;  %v2654_v58 = vmul.f32 %v6790_v53, %v2581_v12 }
 0x2b8   : > { %v2086_v52 = vpop.f32.mrf.mxu2 }
 0x2b9   : > { %v2135_v57 = vpop.f32.mrf.mxu3  ;;  %v2087_v27 = vadd.f32 %v2086_v52, %v2038_v34 }
 0x2bb   : > { %v2136_v24 = vadd.f32 %v2135_v57, %v2087_v27  ;;  %v1993_v11 = vpop.f32.mrf.mxu0 }
 0x2bc   : > { %v2042_v4 = vpop.f32.mrf.mxu1  ;;  %v1994_v29 = vadd.f32 %v1993_v11, %v6772_v25 }
 0x2bd   : > { %v2585_v54 = vmax.f32 %v2136_v24, 0.0  ;;  %2284 = vmatmul.bf16.gmra.mxu2 %v6660_v7 }
 0x2be   : > { %2333 = vmatmul.bf16.gmra.mxu3 %v6662_v8  ;;  %v2043_v43 = vadd.f32 %v2042_v4, %v1994_v29 }
 0x2bf   : > { %v2658_v18 = vmul.f32 %v6790_v53, %v2585_v54 }
 0x2c0   : > { %v2089_v23 = vpop.f32.mrf.mxu2 }
 0x2c1   : > { %v2138_v21 = vpop.f32.mrf.mxu3  ;;  %v6847_v50 = vpack.c.bf16 %v2658_v18, %v2654_v58  ;;  %v2090_v34 = vadd.f32 %v2089_v23, %v2041_v51 }
 0x2c3   : > { %7662 = vst [vmem:[#allocation24_spill] sm:$0xff] %v6847_v50  ;;  %v2139_v37 = vadd.f32 %v2138_v21, %v2090_v34  ;;  %v1996_v28 = vpop.f32.mrf.mxu0 }
 0x2c4   : > { %v2045_v42 = vpop.f32.mrf.mxu1  ;;  %v1997_v26 = vadd.f32 %v1996_v28, %v6772_v25 }
 0x2c5   : > { %v2589_v12 = vmax.f32 %v2139_v37, 0.0 }
 0x2c6   : > { %v2046_v31 = vadd.f32 %v2045_v42, %v1997_v26  ;;  %2191 = vmatmul.bf16.gmra.mxu0 %v6668_v44 }
 0x2c7   : > { %2240 = vmatmul.bf16.gmra.mxu1 %v6670_v47  ;;  %v2662_v58 = vmul.f32 %v6790_v53, %v2589_v12  ;;  %v6047_v12 = vld [vmem:[#allocation7 + $0x2ec] sm:$0xf0] }
 0x2c8   : > { %v2091_v52 = vpop.f32.mrf.mxu2 }
 0x2c9   : > { %v2140_v57 = vpop.f32.mrf.mxu3  ;;  %v2092_v27 = vadd.f32 %v2091_v52, %v2043_v43  ;;  %v6860_v43 = vld [vmem:[%s7617_s5] sm:$0xf] }
 0x2ca   : > { %v6863_v34 = vperm.slane %v6860_v43, 2 }
 0x2cb   : > { %v2141_v24 = vadd.f32 %v2140_v57, %v2092_v27  ;;  %v1998_v11 = vpop.f32.mrf.mxu0  ;;  %v5673_v27 = vld [vmem:[#allocation7 + $0x2e0] sm:$0xf] }
 0x2cc   : > { %v2047_v4 = vpop.f32.mrf.mxu1  ;;  %v1999_v29 = vadd.f32 %v1998_v11, %v6772_v25 }
 0x2cd   : > { %v2593_v51 = vmax.f32 %v2141_v24, 0.0  ;;  %2289 = vmatmul.bf16.gmra.mxu2 %v6678_v9  ;;  %v5417_v24 = vld [vmem:[#allocation7 + $0xe0] sm:$0xf] }
 0x2ce   : > { %2338 = vmatmul.bf16.gmra.mxu3 %v6680_v10  ;;  %v2048_v54 = vadd.f32 %v2047_v4, %v1999_v29  ;;  %v5674_v29 = vor.u32 %v6047_v12, %v5673_v27 }
 0x2cf   : > { %v2666_v18 = vmul.f32 %v6790_v53, %v2593_v51  ;;  %v5983_v51 = vld [vmem:[#allocation7 + $0xec] sm:$0xf0] }
 0x2d0   : > { %v2094_v23 = vpop.f32.mrf.mxu2  ;;  %3585 = vmatpush.bf16.msrb.mxu2 %v5674_v29 }
 0x2d1   : > { %v2143_v21 = vpop.f32.mrf.mxu3  ;;  %v6865_v25 = vpack.c.bf16 %v2666_v18, %v2662_v58  ;;  %v2095_v37 = vadd.f32 %v2094_v23, %v2046_v31  ;;  %v5801_v58 = vld [vmem:[#allocation7 + $0x3e0] sm:$0xf]  ;;  %v6079_v18 = vld [vmem:[#allocation7 + $0x3ec] sm:$0xf0]  ;;  %v5418_v23 = vor.u32 %v5983_v51, %v5417_v24 }
 0x2d3   : > { %7663 = vst [vmem:[#allocation25_spill] sm:$0xff] %v6865_v25  ;;  %v2144_v28 = vadd.f32 %v2143_v21, %v2095_v37  ;;  %v2157_v42 = vpop.f32.mrf.mxu0  ;;  %v5802_v21 = vor.u32 %v6079_v18, %v5801_v58  ;;  %v5545_v37 = vld [vmem:[#allocation7 + $0x1e0] sm:$0xf]  ;;  %v6015_v25 = vld [vmem:[#allocation7 + $0x1ec] sm:$0xf0]  ;;  %3487 = vmatpush.bf16.msrb.mxu0 %v5418_v23 }
 0x2d4   : > { %v2206_v26 = vpop.f32.mrf.mxu1  ;;  %v2158_v52 = vadd.f32 %v2157_v42, %v6863_v34  ;;  %v5546_v42 = vor.u32 %v6015_v25, %v5545_v37  ;;  %v5979_v37 = vld [vmem:[#allocation7 + $0xcc] sm:$0xf0] }
 0x2d5   : > { %3634 = vmatpush.bf16.msrb.mxu3 %v5802_v21 }
 0x2d6   : > { %v2207_v57 = vadd.f32 %v2206_v26, %v2158_v52  ;;  %2352 = vmatmul.bf16.vlgmr.msra.gmra.mxu0 %v6528_v38  ;;  %v2597_v26 = vmax.f32 %v2144_v28, 0.0  ;;  %3536 = vmatpush.bf16.msrb.mxu1 %v5546_v42  ;;  %v5785_v42 = vld [vmem:[#allocation7 + $0x3c0] sm:$0xf] }
 0x2d7   : > { %2401 = vmatmul.bf16.vlgmr.msra.gmra.mxu1 %v6530_v39 }
 0x2d8   : > { %v2096_v11 = vpop.f32.mrf.mxu2  ;;  %v2670_v12 = vmul.f32 %v6790_v53, %v2597_v26  ;;  %v6075_v26 = vld [vmem:[#allocation7 + $0x3cc] sm:$0xf0] }
 0x2d9   : > { %v2145_v4 = vpop.f32.mrf.mxu3  ;;  %v2097_v31 = vadd.f32 %v2096_v11, %v2048_v54 }
 0x2db   : > { %v2146_v38 = vadd.f32 %v2145_v4, %v2097_v31  ;;  %v2159_v52 = vpop.f32.mrf.mxu0 }
 0x2dc   : > { %v2208_v39 = vpop.f32.mrf.mxu1  ;;  %v2160_v50 = vadd.f32 %v2159_v52, %v6863_v34  ;;  %v5786_v52 = vor.u32 %v6075_v26, %v5785_v42 }
 0x2dd   : > { %v2601_v27 = vmax.f32 %v2146_v38, 0.0  ;;  %2450 = vmatmul.bf16.vlgmr.msra.gmra.mxu2 %v6538_v55  ;;  %v5657_v55 = vld [vmem:[#allocation7 + $0x2c0] sm:$0xf] }
 0x2de   : > { %2499 = vmatmul.bf16.vlgmr.msra.gmra.mxu3 %v6540_v56  ;;  %v2209_v54 = vadd.f32 %v2208_v39, %v2160_v50  ;;  %v6043_v56 = vld [vmem:[#allocation7 + $0x2cc] sm:$0xf0]  ;;  %v5401_v50 = vld [vmem:[#allocation7 + $0xc0] sm:$0xf] }
 0x2df   : > { %v2674_v24 = vmul.f32 %v6790_v53, %v2601_v27  ;;  %v5658_v21 = vor.u32 %v6043_v56, %v5657_v55  ;;  %v5402_v38 = vor.u32 %v5979_v37, %v5401_v50  ;;  %v5529_v39 = vld [vmem:[#allocation7 + $0x1c0] sm:$0xf]  ;;  %v6011_v27 = vld [vmem:[#allocation7 + $0x1cc] sm:$0xf0]  ;;  %3635 = vmatpush.bf16.msrb.mxu3 %v5786_v52 }
 0x2e0   : > { %v2255_v25 = vpop.f32.mrf.mxu2 }
 0x2e1   : > { %v2304_v28 = vpop.f32.mrf.mxu3  ;;  %v6875_v11 = vpack.c.bf16 %v2674_v24, %v2670_v12  ;;  %v2256_v4 = vadd.f32 %v2255_v25, %v2207_v57  ;;  %3586 = vmatpush.bf16.msrb.mxu2 %v5658_v21  ;;  %v5530_v12 = vor.u32 %v6011_v27, %v5529_v39  ;;  %3488 = vmatpush.bf16.msrb.mxu0 %v5402_v38  ;;  %v5975_v27 = vld [vmem:[#allocation7 + $0xac] sm:$0xf0] }
 0x2e3   : > { %v2305_v29 = vadd.f32 %v2304_v28, %v2256_v4  ;;  %v2162_v51 = vpop.f32.mrf.mxu0  ;;  %3537 = vmatpush.bf16.msrb.mxu1 %v5530_v12  ;;  %v5769_v12 = vld [vmem:[#allocation7 + $0x3a0] sm:$0xf] }
 0x2e4   : > { %v2211_v58 = vpop.f32.mrf.mxu1  ;;  %v2163_v18 = vadd.f32 %v2162_v51, %v6863_v34 }
 0x2e5   : > { %v2542_v24 = vmax.f32 %v2305_v29, 0.0 }
 0x2e6   : > { %v2212_v31 = vadd.f32 %v2211_v58, %v2163_v18  ;;  %2357 = vmatmul.bf16.gmra.mxu0 %v6548_v16  ;;  %v6880_v16 = vld [vmem:[#allocation9] sm:$0xf] }
 0x2e7   : > { %2406 = vmatmul.bf16.gmra.mxu1 %v6550_v17  ;;  %v6883_v17 = vperm.slane %v6880_v16, 2 }
 0x2e8   : > { %v2257_v23 = vpop.f32.mrf.mxu2 }
 0x2e9   : > { %v2306_v53 = vpop.f32.mrf.mxu3  ;;  %v2258_v57 = vadd.f32 %v2257_v23, %v2209_v54  ;;  %v2615_v29 = vmul.f32 %v6883_v17, %v2542_v24  ;;  %v6071_v24 = vld [vmem:[#allocation7 + $0x3ac] sm:$0xf0] }
 0x2eb   : > { %v2307_v25 = vadd.f32 %v2306_v53, %v2258_v57  ;;  %v2164_v28 = vpop.f32.mrf.mxu0  ;;  %v5385_v57 = vld [vmem:[#allocation7 + $0xa0] sm:$0xf] }
 0x2ec   : > { %v2213_v4 = vpop.f32.mrf.mxu1  ;;  %v2165_v51 = vadd.f32 %v2164_v28, %v6863_v34  ;;  %v5770_v28 = vor.u32 %v6071_v24, %v5769_v12 }
 0x2ed   : > { %v2546_v54 = vmax.f32 %v2307_v25, 0.0  ;;  %2455 = vmatmul.bf16.gmra.mxu2 %v6558_v35  ;;  %v5641_v35 = vld [vmem:[#allocation7 + $0x2a0] sm:$0xf]  ;;  %v5386_v25 = vor.u32 %v5975_v27, %v5385_v57 }
 0x2ee   : > { %2504 = vmatmul.bf16.gmra.mxu3 %v6560_v36  ;;  %v2214_v58 = vadd.f32 %v2213_v4, %v2165_v51  ;;  %v6039_v36 = vld [vmem:[#allocation7 + $0x2ac] sm:$0xf0]  ;;  %v5513_v4 = vld [vmem:[#allocation7 + $0x1a0] sm:$0xf] }
 0x2ef   : > { %v2619_v18 = vmul.f32 %v6883_v17, %v2546_v54  ;;  %v5642_v39 = vor.u32 %v6039_v36, %v5641_v35  ;;  %v6007_v51 = vld [vmem:[#allocation7 + $0x1ac] sm:$0xf0]  ;;  %3489 = vmatpush.bf16.msrb.mxu0 %v5386_v25  ;;  %3636 = vmatpush.bf16.msrb.mxu3 %v5770_v28  ;;  %v5369_v27 = vld [vmem:[#allocation7 + $0x80] sm:$0xf] }
 0x2f0   : > { %v2260_v55 = vpop.f32.mrf.mxu2  ;;  %v5514_v54 = vor.u32 %v6007_v51, %v5513_v4  ;;  %v5971_v25 = vld [vmem:[#allocation7 + $0x8c] sm:$0xf0]  ;;  %v5753_v28 = vld [vmem:[#allocation7 + $0x380] sm:$0xf] }
 0x2f1   : > { %v2309_v56 = vpop.f32.mrf.mxu3  ;;  %v6890_v50 = vpack.c.bf16 %v2619_v18, %v2615_v29  ;;  %v2261_v23 = vadd.f32 %v2260_v55, %v2212_v31  ;;  %3587 = vmatpush.bf16.msrb.mxu2 %v5642_v39  ;;  %v6067_v4 = vld [vmem:[#allocation7 + $0x38c] sm:$0xf0]  ;;  %v5370_v51 = vor.u32 %v5971_v25, %v5369_v27 }
 0x2f2   : > { %3538 = vmatpush.bf16.msrb.mxu1 %v5514_v54  ;;  %v5754_v54 = vor.u32 %v6067_v4, %v5753_v28  ;;  %v5967_v28 = vld [vmem:[#allocation7 + $0x6c] sm:$0xf0]  ;;  %v5737_v4 = vld [vmem:[#allocation7 + $0x360] sm:$0xf] }
 0x2f3   : > { %7664 = vst [vmem:[#allocation26_spill] sm:$0xff] %v6890_v50  ;;  %v2310_v53 = vadd.f32 %v2309_v56, %v2261_v23  ;;  %v2167_v21 = vpop.f32.mrf.mxu0  ;;  %3490 = vmatpush.bf16.msrb.mxu0 %v5370_v51 }
 0x2f4   : > { %v2216_v37 = vpop.f32.mrf.mxu1  ;;  %v2168_v42 = vadd.f32 %v2167_v21, %v6863_v34  ;;  %3637 = vmatpush.bf16.msrb.mxu3 %v5754_v54 }
 0x2f5   : > { %v2550_v29 = vmax.f32 %v2310_v53, 0.0 }
 0x2f6   : > { %v2217_v26 = vadd.f32 %v2216_v37, %v2168_v42  ;;  %2362 = vmatmul.bf16.gmra.mxu0 %v6568_v62 }
 0x2f7   : > { %2411 = vmatmul.bf16.gmra.mxu1 %v6570_v63  ;;  %v2623_v23 = vmul.f32 %v6883_v17, %v2550_v29  ;;  %v5497_v29 = vld [vmem:[#allocation7 + $0x180] sm:$0xf] }
 0x2f8   : > { %v2262_v38 = vpop.f32.mrf.mxu2 }
 0x2f9   : > { %v2311_v52 = vpop.f32.mrf.mxu3  ;;  %v2263_v31 = vadd.f32 %v2262_v38, %v2214_v58 }
 0x2fb   : > { %v2312_v62 = vadd.f32 %v2311_v52, %v2263_v31  ;;  %v2169_v18 = vpop.f32.mrf.mxu0 }
 0x2fc   : > { %v2218_v63 = vpop.f32.mrf.mxu1  ;;  %v2170_v55 = vadd.f32 %v2169_v18, %v6863_v34 }
 0x2fd   : > { %v2554_v56 = vmax.f32 %v2312_v62, 0.0  ;;  %2460 = vmatmul.bf16.gmra.mxu2 %v6578_v19  ;;  %v5625_v19 = vld [vmem:[#allocation7 + $0x280] sm:$0xf]  ;;  %v6003_v62 = vld [vmem:[#allocation7 + $0x18c] sm:$0xf0] }
 0x2fe   : > { %2509 = vmatmul.bf16.gmra.mxu3 %v6580_v20  ;;  %v2219_v58 = vadd.f32 %v2218_v63, %v2170_v55  ;;  %v6035_v20 = vld [vmem:[#allocation7 + $0x28c] sm:$0xf0]  ;;  %v5498_v18 = vor.u32 %v6003_v62, %v5497_v29  ;;  %v5481_v29 = vld [vmem:[#allocation7 + $0x160] sm:$0xf] }
 0x2ff   : > { %v2627_v21 = vmul.f32 %v6883_v17, %v2554_v56  ;;  %v5626_v31 = vor.u32 %v6035_v20, %v5625_v19  ;;  %v5999_v62 = vld [vmem:[#allocation7 + $0x16c] sm:$0xf0] }
 0x300   : > { %v2265_v37 = vpop.f32.mrf.mxu2  ;;  %3539 = vmatpush.bf16.msrb.mxu1 %v5498_v18  ;;  %v5482_v18 = vor.u32 %v5999_v62, %v5481_v29 }
 0x301   : > { %v2314_v53 = vpop.f32.mrf.mxu3  ;;  %v6900_v42 = vpack.c.bf16 %v2627_v21, %v2623_v23  ;;  %v2266_v35 = vadd.f32 %v2265_v37, %v2217_v26  ;;  %3588 = vmatpush.bf16.msrb.mxu2 %v5626_v31 }
 0x303   : > { %7665 = vst [vmem:[#allocation27_spill] sm:$0xff] %v6900_v42  ;;  %v2315_v36 = vadd.f32 %v2314_v53, %v2266_v35  ;;  %v2172_v57 = vpop.f32.mrf.mxu0 }
 0x304   : > { %v2221_v38 = vpop.f32.mrf.mxu1  ;;  %v2173_v52 = vadd.f32 %v2172_v57, %v6863_v34  ;;  %3540 = vmatpush.bf16.msrb.mxu1 %v5482_v18 }
 0x305   : > { %v2558_v63 = vmax.f32 %v2315_v36, 0.0 }
 0x306   : > { %v2222_v39 = vadd.f32 %v2221_v38, %v2173_v52  ;;  %2367 = vmatmul.bf16.gmra.mxu0 %v6588_v48 }
 0x307   : > { %2416 = vmatmul.bf16.gmra.mxu1 %v6590_v49  ;;  %v2631_v21 = vmul.f32 %v6883_v17, %v2558_v63 }
 0x308   : > { %v2267_v12 = vpop.f32.mrf.mxu2 }
 0x309   : > { %v2316_v24 = vpop.f32.mrf.mxu3  ;;  %v2268_v26 = vadd.f32 %v2267_v12, %v2219_v58  ;;  %v5353_v12 = vld [vmem:[#allocation7 + $0x60] sm:$0xf] }
 0x30a   : > { %v5354_v51 = vor.u32 %v5967_v28, %v5353_v12  ;;  %v6059_v28 = vld [vmem:[#allocation7 + $0x34c] sm:$0xf0] }
 0x30b   : > { %v2317_v48 = vadd.f32 %v2316_v24, %v2268_v26  ;;  %v2174_v55 = vpop.f32.mrf.mxu0  ;;  %v6063_v26 = vld [vmem:[#allocation7 + $0x36c] sm:$0xf0] }
 0x30c   : > { %v2223_v49 = vpop.f32.mrf.mxu1  ;;  %v2175_v56 = vadd.f32 %v2174_v55, %v6863_v34  ;;  %v5738_v54 = vor.u32 %v6063_v26, %v5737_v4  ;;  %3491 = vmatpush.bf16.msrb.mxu0 %v5354_v51  ;;  %v5995_v51 = vld [vmem:[#allocation7 + $0x14c] sm:$0xf0] }
 0x30d   : > { %v2562_v23 = vmax.f32 %v2317_v48, 0.0  ;;  %2465 = vmatmul.bf16.gmra.mxu2 %v6598_v5  ;;  %v5609_v5 = vld [vmem:[#allocation7 + $0x260] sm:$0xf] }
 0x30e   : > { %2514 = vmatmul.bf16.gmra.mxu3 %v6600_v6  ;;  %v2224_v58 = vadd.f32 %v2223_v49, %v2175_v56  ;;  %v6031_v6 = vld [vmem:[#allocation7 + $0x26c] sm:$0xf0] }
 0x30f   : > { %v2635_v37 = vmul.f32 %v6883_v17, %v2562_v23  ;;  %v5610_v25 = vor.u32 %v6031_v6, %v5609_v5  ;;  %3638 = vmatpush.bf16.msrb.mxu3 %v5738_v54  ;;  %v5337_v5 = vld [vmem:[#allocation7 + $0x40] sm:$0xf] }
 0x310   : > { %v2270_v53 = vpop.f32.mrf.mxu2 }
 0x311   : > { %v2319_v35 = vpop.f32.mrf.mxu3  ;;  %v6910_v36 = vpack.c.bf16 %v2635_v37, %v2631_v21  ;;  %v2271_v57 = vadd.f32 %v2270_v53, %v2222_v39  ;;  %3589 = vmatpush.bf16.msrb.mxu2 %v5610_v25  ;;  %v5721_v25 = vld [vmem:[#allocation7 + $0x340] sm:$0xf] }
 0x312   : > { %v5722_v26 = vor.u32 %v6059_v28, %v5721_v25 }
 0x313   : > { %7666 = vst [vmem:[#allocation28_spill] sm:$0xff] %v6910_v36  ;;  %v2320_v38 = vadd.f32 %v2319_v35, %v2271_v57  ;;  %v2177_v52 = vpop.f32.mrf.mxu0 }
 0x314   : > { %v2226_v19 = vpop.f32.mrf.mxu1  ;;  %v2178_v20 = vadd.f32 %v2177_v52, %v6863_v34  ;;  %3639 = vmatpush.bf16.msrb.mxu3 %v5722_v26  ;;  %v5561_v26 = vld [vmem:[#allocation7 + $0x200] sm:$0xf] }
 0x315   : > { %v2566_v63 = vmax.f32 %v2320_v38, 0.0 }
 0x316   : > { %v2227_v27 = vadd.f32 %v2226_v19, %v2178_v20  ;;  %2372 = vmatmul.bf16.gmra.mxu0 %v6608_v40 }
 0x317   : > { %2421 = vmatmul.bf16.gmra.mxu1 %v6610_v41  ;;  %v2639_v23 = vmul.f32 %v6883_v17, %v2566_v63 }
 0x318   : > { %v2272_v24 = vpop.f32.mrf.mxu2 }
 0x319   : > { %v2321_v31 = vpop.f32.mrf.mxu3  ;;  %v2273_v39 = vadd.f32 %v2272_v24, %v2224_v58 }
 0x31b   : > { %v2322_v40 = vadd.f32 %v2321_v31, %v2273_v39  ;;  %v2179_v48 = vpop.f32.mrf.mxu0  ;;  %v5963_v31 = vld [vmem:[#allocation7 + $0x4c] sm:$0xf0]  ;;  %v5465_v39 = vld [vmem:[#allocation7 + $0x140] sm:$0xf] }
 0x31c   : > { %v2228_v41 = vpop.f32.mrf.mxu1  ;;  %v2180_v55 = vadd.f32 %v2179_v48, %v6863_v34  ;;  %v5338_v4 = vor.u32 %v5963_v31, %v5337_v5  ;;  %v5466_v54 = vor.u32 %v5995_v51, %v5465_v39  ;;  %v5959_v48 = vld [vmem:[#allocation7 + $0x2c] sm:$0xf0] }
 0x31d   : > { %v2570_v49 = vmax.f32 %v2322_v40, 0.0  ;;  %2470 = vmatmul.bf16.gmra.mxu2 %v6618_v61  ;;  %v5593_v61 = vld [vmem:[#allocation7 + $0x240] sm:$0xf] }
 0x31e   : > { %2519 = vmatmul.bf16.gmra.mxu3 %v6620_v0  ;;  %v2229_v56 = vadd.f32 %v2228_v41, %v2180_v55  ;;  %v6027_v0 = vld [vmem:[#allocation7 + $0x24c] sm:$0xf0]  ;;  %3492 = vmatpush.bf16.msrb.mxu0 %v5338_v4  ;;  %v5321_v40 = vld [vmem:[#allocation7 + $0x20] sm:$0xf] }
 0x31f   : > { %v2643_v58 = vmul.f32 %v6883_v17, %v2570_v49  ;;  %v5594_v24 = vor.u32 %v6027_v0, %v5593_v61  ;;  %3541 = vmatpush.bf16.msrb.mxu1 %v5466_v54  ;;  %v5322_v55 = vor.u32 %v5959_v48, %v5321_v40  ;;  %v5449_v49 = vld [vmem:[#allocation7 + $0x120] sm:$0xf]  ;;  %v5987_v61 = vld [vmem:[#allocation7 + $0x10c] sm:$0xf0] }
 0x320   : > { %v2275_v21 = vpop.f32.mrf.mxu2  ;;  %v6055_v4 = vld [vmem:[#allocation7 + $0x32c] sm:$0xf0] }
 0x321   : > { %v2324_v37 = vpop.f32.mrf.mxu3  ;;  %v6920_v53 = vpack.c.bf16 %v2643_v58, %v2639_v23  ;;  %v2276_v35 = vadd.f32 %v2275_v21, %v2227_v27  ;;  %3590 = vmatpush.bf16.msrb.mxu2 %v5594_v24  ;;  %v6023_v24 = vld [vmem:[#allocation7 + $0x22c] sm:$0xf0] }
 0x322   : > { %3493 = vmatpush.bf16.msrb.mxu0 %v5322_v55 }
 0x323   : > { %v2325_v57 = vadd.f32 %v2324_v37, %v2276_v35  ;;  %v2182_v38 = vpop.f32.mrf.mxu0 }
 0x324   : > { %v2231_v52 = vpop.f32.mrf.mxu1  ;;  %v2183_v19 = vadd.f32 %v2182_v38, %v6863_v34 }
 0x325   : > { %v2574_v29 = vmax.f32 %v2325_v57, 0.0 }
 0x326   : > { %v2232_v20 = vadd.f32 %v2231_v52, %v2183_v19  ;;  %2377 = vmatmul.bf16.gmra.mxu0 %v6628_v32  ;;  %v5433_v52 = vld [vmem:[#allocation7 + $0x100] sm:$0xf] }
 0x327   : > { %2426 = vmatmul.bf16.gmra.mxu1 %v6630_v33  ;;  %v2647_v23 = vmul.f32 %v6883_v17, %v2574_v29  ;;  %v5434_v31 = vor.u32 %v5987_v61, %v5433_v52  ;;  %v6019_v29 = vld [vmem:[#allocation7 + $0x20c] sm:$0xf0] }
 0x328   : > { %v2277_v6 = vpop.f32.mrf.mxu2 }
 0x329   : > { %v2326_v12 = vpop.f32.mrf.mxu3  ;;  %v2278_v27 = vadd.f32 %v2277_v6, %v2229_v56  ;;  %v5991_v56 = vld [vmem:[#allocation7 + $0x12c] sm:$0xf0] }
 0x32a   : > { %v5450_v21 = vor.u32 %v5991_v56, %v5449_v49 }
 0x32b   : > { %v2327_v32 = vadd.f32 %v2326_v12, %v2278_v27  ;;  %v2184_v62 = vpop.f32.mrf.mxu0  ;;  %v5577_v12 = vld [vmem:[#allocation7 + $0x220] sm:$0xf] }
 0x32c   : > { %v2233_v33 = vpop.f32.mrf.mxu1  ;;  %v2185_v18 = vadd.f32 %v2184_v62, %v6863_v34  ;;  %3542 = vmatpush.bf16.msrb.mxu1 %v5450_v21  ;;  %v5578_v28 = vor.u32 %v6023_v24, %v5577_v12  ;;  %v5562_v62 = vor.u32 %v6019_v29, %v5561_v26 }
 0x32d   : > { %v2578_v63 = vmax.f32 %v2327_v32, 0.0  ;;  %2475 = vmatmul.bf16.gmra.mxu2 %v6638_v59  ;;  %v5305_v59 = vld [vmem:[#allocation7] sm:$0xf] }
 0x32e   : > { %2524 = vmatmul.bf16.gmra.mxu3 %v6640_v60  ;;  %v2234_v41 = vadd.f32 %v2233_v33, %v2185_v18  ;;  %v5955_v60 = vld [vmem:[#allocation7 + $0xc] sm:$0xf0]  ;;  %3591 = vmatpush.bf16.msrb.mxu2 %v5578_v28 }
 0x32f   : > { %v2651_v58 = vmul.f32 %v6883_v17, %v2578_v63  ;;  %v5306_v19 = vor.u32 %v5955_v60, %v5305_v59 }
 0x330   : > { %v2280_v37 = vpop.f32.mrf.mxu2  ;;  %3543 = vmatpush.bf16.msrb.mxu1 %v5434_v31 }
 0x331   : > { %v2329_v35 = vpop.f32.mrf.mxu3  ;;  %v6930_v57 = vpack.c.bf16 %v2651_v58, %v2647_v23  ;;  %v2281_v38 = vadd.f32 %v2280_v37, %v2232_v20  ;;  %3494 = vmatpush.bf16.msrb.mxu0 %v5306_v19  ;;  %v5705_v20 = vld [vmem:[#allocation7 + $0x320] sm:$0xf] }
 0x332   : > { %v5706_v54 = vor.u32 %v6055_v4, %v5705_v20  ;;  %3592 = vmatpush.bf16.msrb.mxu2 %v5562_v62  ;;  %v5419_v62 = vld [vmem:[#allocation7 + $0xf0] sm:$0xf0] }
 0x333   : > { %v2330_v0 = vadd.f32 %v2329_v35, %v2281_v38  ;;  %v2187_v5 = vpop.f32.mrf.mxu0 }
 0x334   : > { %v2236_v6 = vpop.f32.mrf.mxu1  ;;  %v2188_v25 = vadd.f32 %v2187_v5, %v6863_v34  ;;  %3640 = vmatpush.bf16.msrb.mxu3 %v5706_v54 }
 0x335   : > { %v2582_v33 = vmax.f32 %v2330_v0, 0.0 }
 0x336   : > { %v2237_v27 = vadd.f32 %v2236_v6, %v2188_v25  ;;  %2382 = vmatmul.bf16.gmra.mxu0 %v6650_v45 }
 0x337   : > { %2431 = vmatmul.bf16.gmra.mxu1 %v6652_v46  ;;  %v2655_v55 = vmul.f32 %v6883_v17, %v2582_v33  ;;  %v6077_v33 = vld [vmem:[#allocation7 + $0x3e4] sm:$0xf] }
 0x338   : > { %v2282_v39 = vpop.f32.mrf.mxu2 }
 0x339   : > { %v2331_v51 = vpop.f32.mrf.mxu3  ;;  %v2283_v32 = vadd.f32 %v2282_v39, %v2234_v41 }
 0x33b   : > { %v2332_v18 = vadd.f32 %v2331_v51, %v2283_v32  ;;  %v2189_v63 = vpop.f32.mrf.mxu0 }
 0x33c   : > { %v2238_v40 = vpop.f32.mrf.mxu1  ;;  %v2190_v45 = vadd.f32 %v2189_v63, %v6863_v34  ;;  %v6955_v63 = vperm.slane %v6860_v43, 3 }
 0x33d   : > { %v2586_v48 = vmax.f32 %v2332_v18, 0.0  ;;  %2480 = vmatmul.bf16.gmra.mxu2 %v6660_v7  ;;  %v5689_v7 = vld [vmem:[#allocation7 + $0x300] sm:$0xf]  ;;  %v5803_v18 = vld [vmem:[#allocation7 + $0x3f0] sm:$0xf0] }
 0x33e   : > { %2529 = vmatmul.bf16.gmra.mxu3 %v6662_v8  ;;  %v2239_v46 = vadd.f32 %v2238_v40, %v2190_v45  ;;  %v6051_v8 = vld [vmem:[#allocation7 + $0x30c] sm:$0xf0] }
 0x33f   : > { %v2659_v49 = vmul.f32 %v6883_v17, %v2586_v48  ;;  %v5690_v19 = vor.u32 %v6051_v8, %v5689_v7  ;;  %v5806_v48 = vor.u32 %v6077_v33, %v5803_v18 }
 0x340   : > { %v2285_v41 = vpop.f32.mrf.mxu2 }
 0x341   : > { %v2334_v56 = vpop.f32.mrf.mxu3  ;;  %v6940_v23 = vpack.c.bf16 %v2659_v49, %v2655_v55  ;;  %v2286_v58 = vadd.f32 %v2285_v41, %v2237_v27  ;;  %3641 = vmatpush.bf16.msrb.mxu3 %v5690_v19  ;;  %v5547_v55 = vld [vmem:[#allocation7 + $0x1f0] sm:$0xf0] }
 0x343   : > { %7667 = vst [vmem:[#allocation29_spill] sm:$0xff] %v6940_v23  ;;  %v2335_v21 = vadd.f32 %v2334_v56, %v2286_v58  ;;  %v2192_v37 = vpop.f32.mrf.mxu0 }
 0x344   : > { %v2241_v35 = vpop.f32.mrf.mxu1  ;;  %v2193_v38 = vadd.f32 %v2192_v37, %v6863_v34 }
 0x345   : > { %v2590_v0 = vmax.f32 %v2335_v21, 0.0  ;;  %3830 = vmatpush.bf16.msra.mxu3 %v5806_v48 }
 0x346   : > { %v2242_v59 = vadd.f32 %v2241_v35, %v2193_v38  ;;  %2387 = vmatmul.bf16.gmra.mxu0 %v6668_v44 }
 0x347   : > { %2436 = vmatmul.bf16.gmra.mxu1 %v6670_v47  ;;  %v2663_v47 = vmul.f32 %v6883_v17, %v2590_v0 }
 0x348   : > { %v2287_v60 = vpop.f32.mrf.mxu2 }
 0x349   : > { %v2336_v52 = vpop.f32.mrf.mxu3  ;;  %v2288_v61 = vadd.f32 %v2287_v60, %v2239_v46  ;;  %v6013_v46 = vld [vmem:[#allocation7 + $0x1e4] sm:$0xf] }
 0x34a   : > { %v5550_v49 = vor.u32 %v6013_v46, %v5547_v55 }
 0x34b   : > { %v2337_v5 = vadd.f32 %v2336_v52, %v2288_v61  ;;  %v2194_v6 = vpop.f32.mrf.mxu0 }
 0x34c   : > { %v2243_v12 = vpop.f32.mrf.mxu1  ;;  %v2195_v24 = vadd.f32 %v2194_v6, %v6863_v34  ;;  %v5675_v34 = vld [vmem:[#allocation7 + $0x2f0] sm:$0xf0]  ;;  %3732 = vmatpush.bf16.msra.mxu1 %v5550_v49 }
 0x34d   : > { %v2594_v31 = vmax.f32 %v2337_v5, 0.0  ;;  %2485 = vmatmul.bf16.gmra.mxu2 %v6678_v9  ;;  %v6045_v9 = vld [vmem:[#allocation7 + $0x2e4] sm:$0xf] }
 0x34e   : > { %2534 = vmatmul.bf16.gmra.mxu3 %v6680_v10  ;;  %v2244_v44 = vadd.f32 %v2243_v12, %v2195_v24  ;;  %v5981_v10 = vld [vmem:[#allocation7 + $0xe4] sm:$0xf]  ;;  %v5678_v32 = vor.u32 %v6045_v9, %v5675_v34  ;;  %v5659_v24 = vld [vmem:[#allocation7 + $0x2d0] sm:$0xf0] }
 0x34f   : > { %v2667_v25 = vmul.f32 %v6883_v17, %v2594_v31  ;;  %v5422_v45 = vor.u32 %v5981_v10, %v5419_v62  ;;  %v6041_v12 = vld [vmem:[#allocation7 + $0x2c4] sm:$0xf]  ;;  %v5531_v9 = vld [vmem:[#allocation7 + $0x1d0] sm:$0xf0] }
 0x350   : > { %v2290_v28 = vpop.f32.mrf.mxu2  ;;  %3781 = vmatpush.bf16.msra.mxu2 %v5678_v32  ;;  %v5977_v31 = vld [vmem:[#allocation7 + $0xc4] sm:$0xf] }
 0x351   : > { %v2339_v27 = vpop.f32.mrf.mxu3  ;;  %v6950_v20 = vpack.c.bf16 %v2667_v25, %v2663_v47  ;;  %v2291_v4 = vadd.f32 %v2290_v28, %v2242_v59  ;;  %3683 = vmatpush.bf16.msra.mxu0 %v5422_v45  ;;  %v5662_v47 = vor.u32 %v6041_v12, %v5659_v24  ;;  %v5403_v25 = vld [vmem:[#allocation7 + $0xd0] sm:$0xf0]  ;;  %v6073_v28 = vld [vmem:[#allocation7 + $0x3c4] sm:$0xf] }
 0x352   : > { %v6005_v12 = vld [vmem:[#allocation7 + $0x1a4] sm:$0xf]  ;;  %v5515_v24 = vld [vmem:[#allocation7 + $0x1b0] sm:$0xf0] }
 0x353   : > { %v2340_v26 = vadd.f32 %v2339_v27, %v2291_v4  ;;  %v2353_v39 = vpop.f32.mrf.mxu0  ;;  %v5787_v27 = vld [vmem:[#allocation7 + $0x3d0] sm:$0xf0] }
 0x354   : > { %v2402_v51 = vpop.f32.mrf.mxu1  ;;  %v2354_v37 = vadd.f32 %v2353_v39, %v6955_v63  ;;  %v5790_v39 = vor.u32 %v6073_v28, %v5787_v27  ;;  %3782 = vmatpush.bf16.msra.mxu2 %v5662_v47 }
 0x355   : > { %v2598_v41 = vmax.f32 %v2340_v26, 0.0  ;;  %v5406_v26 = vor.u32 %v5977_v31, %v5403_v25  ;;  %v5518_v31 = vor.u32 %v6005_v12, %v5515_v24 }
 0x356   : > { %3495 = vmatmul.bf16.vlgmr.msrb.gmra.mxu0 %v6711_v1  ;;  %v2403_v8 = vadd.f32 %v2402_v51, %v2354_v37  ;;  %v6009_v51 = vld [vmem:[#allocation7 + $0x1c4] sm:$0xf]  ;;  %3831 = vmatpush.bf16.msra.mxu3 %v5790_v39 }
 0x357   : > { %3544 = vmatmul.bf16.vlgmr.msrb.gmra.mxu1 %v6797_v30  ;;  %v2671_v43 = vmul.f32 %v6883_v17, %v2598_v41  ;;  %v5534_v34 = vor.u32 %v6009_v51, %v5531_v9  ;;  %3684 = vmatpush.bf16.msra.mxu0 %v5406_v26 }
 0x358   : > { %v2292_v54 = vpop.f32.mrf.mxu2 }
 0x359   : > { %v2341_v29 = vpop.f32.mrf.mxu3  ;;  %v2293_v40 = vadd.f32 %v2292_v54, %v2244_v44  ;;  %v6967_v54 = vperm.slane %v6880_v16, 3  ;;  %3733 = vmatpush.bf16.msra.mxu1 %v5534_v34 }
 0x35b   : > { %v2342_v56 = vadd.f32 %v2341_v29, %v2293_v40  ;;  %v2355_v58 = vpop.f32.mrf.mxu0 }
 0x35c   : > { %v2404_v21 = vpop.f32.mrf.mxu1  ;;  %v2356_v52 = vadd.f32 %v2355_v58, %v6955_v63 }
 0x35d   : > { %v2602_v35 = vmax.f32 %v2342_v56, 0.0  ;;  %3593 = vmatmul.bf16.vlgmr.msrb.gmra.mxu2 %v6890_v50  ;;  %3734 = vmatpush.bf16.msra.mxu1 %v5518_v31 }
 0x35e   : > { %v2405_v5 = vadd.f32 %v2404_v21, %v2356_v52  ;;  %v5387_v52 = vld [vmem:[#allocation7 + $0xb0] sm:$0xf0] }
 0x35f   : > { %v2675_v38 = vmul.f32 %v6883_v17, %v2602_v35  ;;  %v6037_v35 = vld [vmem:[#allocation7 + $0x2a4] sm:$0xf] }
 0x360   : > { %v2451_v59 = vpop.f32.mrf.mxu2 }
 0x361   : > { %v2500_v7 = vpop.f32.mrf.mxu3  ;;  %v6961_v60 = vpack.c.bf16 %v2675_v38, %v2671_v43  ;;  %v2452_v19 = vadd.f32 %v2451_v59, %v2403_v8  ;;  %v5643_v43 = vld [vmem:[#allocation7 + $0x2b0] sm:$0xf0]  ;;  %v5973_v38 = vld [vmem:[#allocation7 + $0xa4] sm:$0xf] }
 0x362   : > { %v5646_v8 = vor.u32 %v6037_v35, %v5643_v43 }
 0x363   : > { %7668 = vst [vmem:[#allocation30_spill] sm:$0xff] %v6961_v60  ;;  %v2358_v61 = vpop.f32.mrf.mxu0  ;;  %v2501_v6 = vadd.f32 %v2500_v7, %v2452_v19  ;;  %v6069_v19 = vld [vmem:[#allocation7 + $0x3a4] sm:$0xf] }
 0x364   : > { %v2407_v0 = vpop.f32.mrf.mxu1  ;;  %v2359_v33 = vadd.f32 %v2358_v61, %v6955_v63  ;;  %v5771_v61 = vld [vmem:[#allocation7 + $0x3b0] sm:$0xf0]  ;;  %3783 = vmatpush.bf16.msra.mxu2 %v5646_v8 }
 0x365   : > { %v2543_v10 = vmax.f32 %v2501_v6, 0.0  ;;  %v5774_v6 = vor.u32 %v6069_v19, %v5771_v61 }
 0x366   : > { %3500 = vmatmul.bf16.gmra.mxu0 %v6721_v14  ;;  %v2408_v55 = vadd.f32 %v2407_v0, %v2359_v33  ;;  %v7671_v33 = vld [vmem:[#allocation23_spill] sm:$0xff] }
 0x367   : > { %3549 = vmatmul.bf16.gmra.mxu1 %v6807_v15  ;;  %v2616_v40 = vmul.f32 %v6967_v54, %v2543_v10  ;;  %3832 = vmatpush.bf16.msra.mxu3 %v5774_v6 }
 0x368   : > { %v2453_v17 = vpop.f32.mrf.mxu2 }
 0x369   : > { %v2502_v44 = vpop.f32.mrf.mxu3  ;;  %v2454_v4 = vadd.f32 %v2453_v17, %v2405_v5  ;;  %v5390_v5 = vor.u32 %v5973_v38, %v5387_v52  ;;  %v6001_v38 = vld [vmem:[#allocation7 + $0x184] sm:$0xf] }
 0x36b   : > { %v2503_v29 = vadd.f32 %v2502_v44, %v2454_v4  ;;  %v2360_v32 = vpop.f32.mrf.mxu0  ;;  %3685 = vmatpush.bf16.msra.mxu0 %v5390_v5 }
 0x36c   : > { %v2409_v62 = vpop.f32.mrf.mxu1  ;;  %v2361_v49 = vadd.f32 %v2360_v32, %v6955_v63 }
 0x36d   : > { %v2547_v18 = vmax.f32 %v2503_v29, 0.0  ;;  %3598 = vmatmul.bf16.gmra.mxu2 %v6900_v42 }
 0x36e   : > { %v2410_v21 = vadd.f32 %v2409_v62, %v2361_v49 }
 0x36f   : > { %v2620_v45 = vmul.f32 %v6967_v54, %v2547_v18 }
 0x370   : > { %v2456_v48 = vpop.f32.mrf.mxu2 }
 0x371   : > { %v2505_v46 = vpop.f32.mrf.mxu3  ;;  %v6973_v16 = vpack.c.bf16 %v2620_v45, %v2616_v40  ;;  %v2457_v41 = vadd.f32 %v2456_v48, %v2408_v55  ;;  %v6033_v45 = vld [vmem:[#allocation7 + $0x284] sm:$0xf]  ;;  %v5627_v48 = vld [vmem:[#allocation7 + $0x290] sm:$0xf0] }
 0x373   : > { %7669 = vst [vmem:[#allocation31_spill] sm:$0xff] %v6973_v16  ;;  %3642 = vmatmul.bf16.vlgmr.msrb.gmra.mxu3 %v6973_v16  ;;  %v2363_v56 = vpop.f32.mrf.mxu0  ;;  %v2506_v37 = vadd.f32 %v2505_v46, %v2457_v41  ;;  %v5969_v46 = vld [vmem:[#allocation7 + $0x84] sm:$0xf]  ;;  %v5630_v41 = vor.u32 %v6033_v45, %v5627_v48  ;;  %v5739_v45 = vld [vmem:[#allocation7 + $0x370] sm:$0xf0] }
 0x374   : > { %v2412_v58 = vpop.f32.mrf.mxu1  ;;  %v2364_v28 = vadd.f32 %v2363_v56, %v6955_v63  ;;  %v5371_v56 = vld [vmem:[#allocation7 + $0x90] sm:$0xf0] }
 0x375   : > { %v2551_v17 = vmax.f32 %v2506_v37, 0.0  ;;  %v5374_v35 = vor.u32 %v5969_v46, %v5371_v56  ;;  %3784 = vmatpush.bf16.msra.mxu2 %v5630_v41  ;;  %v5483_v41 = vld [vmem:[#allocation7 + $0x170] sm:$0xf0] }
 0x376   : > { %3505 = vmatmul.bf16.gmra.mxu0 %v6731_v3  ;;  %v2413_v9 = vadd.f32 %v2412_v58, %v2364_v28  ;;  %v6065_v58 = vld [vmem:[#allocation7 + $0x384] sm:$0xf] }
 0x377   : > { %3554 = vmatmul.bf16.gmra.mxu1 %v6817_v2  ;;  %v2624_v4 = vmul.f32 %v6967_v54, %v2551_v17  ;;  %3686 = vmatpush.bf16.msra.mxu0 %v5374_v35 }
 0x378   : > { %v2458_v59 = vpop.f32.mrf.mxu2 }
 0x379   : > { %v2507_v7 = vpop.f32.mrf.mxu3  ;;  %v2459_v0 = vadd.f32 %v2458_v59, %v2410_v21  ;;  %v5755_v21 = vld [vmem:[#allocation7 + $0x390] sm:$0xf0] }
 0x37a   : > { %v5758_v43 = vor.u32 %v6065_v58, %v5755_v21  ;;  %v5499_v59 = vld [vmem:[#allocation7 + $0x190] sm:$0xf0] }
 0x37b   : > { %v2508_v44 = vadd.f32 %v2507_v7, %v2459_v0  ;;  %v2365_v47 = vpop.f32.mrf.mxu0  ;;  %v5502_v7 = vor.u32 %v6001_v38, %v5499_v59 }
 0x37c   : > { %v2414_v25 = vpop.f32.mrf.mxu1  ;;  %v2366_v10 = vadd.f32 %v2365_v47, %v6955_v63  ;;  %3833 = vmatpush.bf16.msra.mxu3 %v5758_v43 }
 0x37d   : > { %v2555_v27 = vmax.f32 %v2508_v44, 0.0  ;;  %3603 = vmatmul.bf16.gmra.mxu2 %v6910_v36  ;;  %3735 = vmatpush.bf16.msra.mxu1 %v5502_v7 }
 0x37e   : > { %v2415_v18 = vadd.f32 %v2414_v25, %v2366_v10  ;;  %v5965_v10 = vld [vmem:[#allocation7 + $0x64] sm:$0xf] }
 0x37f   : > { %v2628_v26 = vmul.f32 %v6967_v54, %v2555_v27 }
 0x380   : > { %v2461_v39 = vpop.f32.mrf.mxu2 }
 0x381   : > { %v2510_v51 = vpop.f32.mrf.mxu3  ;;  %v6983_v34 = vpack.c.bf16 %v2628_v26, %v2624_v4  ;;  %v2462_v29 = vadd.f32 %v2461_v39, %v2413_v9  ;;  %v7672_v4 = vld [vmem:[#allocation17_spill] sm:$0xff] }
 0x382   : > { %v5611_v9 = vld [vmem:[#allocation7 + $0x270] sm:$0xf0] }
 0x383   : > { %7670 = vst [vmem:[#allocation32_spill] sm:$0xff] %v6983_v34  ;;  %3647 = vmatmul.bf16.gmra.mxu3 %v6983_v34  ;;  %v2368_v32 = vpop.f32.mrf.mxu0  ;;  %v2511_v40 = vadd.f32 %v2510_v51, %v2462_v29  ;;  %v6029_v51 = vld [vmem:[#allocation7 + $0x264] sm:$0xf] }
 0x384   : > { %v2417_v62 = vpop.f32.mrf.mxu1  ;;  %v2369_v0 = vadd.f32 %v2368_v32, %v6955_v63 }
 0x385   : > { %v2559_v8 = vmax.f32 %v2511_v40, 0.0  ;;  %v6061_v40 = vld [vmem:[#allocation7 + $0x364] sm:$0xf] }
 0x386   : > { %3510 = vmatmul.bf16.gmra.mxu0 %v6741_v22  ;;  %v2418_v17 = vadd.f32 %v2417_v62, %v2369_v0  ;;  %v5614_v62 = vor.u32 %v6029_v51, %v5611_v9  ;;  %v5339_v9 = vld [vmem:[#allocation7 + $0x50] sm:$0xf0] }
 0x387   : > { %3559 = vmatmul.bf16.gmra.mxu1 %v7671_v33  ;;  %v2632_v6 = vmul.f32 %v6967_v54, %v2559_v8 }
 0x388   : > { %v2463_v55 = vpop.f32.mrf.mxu2  ;;  %3785 = vmatpush.bf16.msra.mxu2 %v5614_v62 }
 0x389   : > { %v2512_v49 = vpop.f32.mrf.mxu3  ;;  %v2464_v37 = vadd.f32 %v2463_v55, %v2415_v18  ;;  %v5355_v18 = vld [vmem:[#allocation7 + $0x70] sm:$0xf0]  ;;  %v5742_v55 = vor.u32 %v6061_v40, %v5739_v45  ;;  %v5993_v40 = vld [vmem:[#allocation7 + $0x144] sm:$0xf] }
 0x38a   : > { %v5358_v46 = vor.u32 %v5965_v10, %v5355_v18  ;;  %v6057_v10 = vld [vmem:[#allocation7 + $0x344] sm:$0xf]  ;;  %v5467_v45 = vld [vmem:[#allocation7 + $0x150] sm:$0xf0] }
 0x38b   : > { %v2513_v52 = vadd.f32 %v2512_v49, %v2464_v37  ;;  %v2370_v19 = vpop.f32.mrf.mxu0  ;;  %v5997_v49 = vld [vmem:[#allocation7 + $0x164] sm:$0xf]  ;;  %3834 = vmatpush.bf16.msra.mxu3 %v5742_v55 }
 0x38c   : > { %v2419_v61 = vpop.f32.mrf.mxu1  ;;  %v2371_v47 = vadd.f32 %v2370_v19, %v6955_v63  ;;  %v5486_v56 = vor.u32 %v5997_v49, %v5483_v41  ;;  %3687 = vmatpush.bf16.msra.mxu0 %v5358_v46 }
 0x38d   : > { %v2563_v5 = vmax.f32 %v2513_v52, 0.0  ;;  %3608 = vmatmul.bf16.gmra.mxu2 %v6920_v53 }
 0x38e   : > { %v2420_v26 = vadd.f32 %v2419_v61, %v2371_v47  ;;  %3736 = vmatpush.bf16.msra.mxu1 %v5486_v56 }
 0x38f   : > { %v2636_v12 = vmul.f32 %v6967_v54, %v2563_v5 }
 0x390   : > { %v2466_v24 = vpop.f32.mrf.mxu2 }
 0x391   : > { %v2515_v31 = vpop.f32.mrf.mxu3  ;;  %v6993_v44 = vpack.c.bf16 %v2636_v12, %v2632_v6  ;;  %v2467_v25 = vadd.f32 %v2466_v24, %v2418_v17  ;;  %v7673_v24 = vld [vmem:[#allocation18_spill] sm:$0xff] }
 0x393   : > { %3652 = vmatmul.bf16.gmra.mxu3 %v6993_v44  ;;  %v2373_v28 = vpop.f32.mrf.mxu0  ;;  %v2516_v39 = vadd.f32 %v2515_v31, %v2467_v25  ;;  %v7674_v31 = vld [vmem:[#allocation24_spill] sm:$0xff]  ;;  %v6025_v25 = vld [vmem:[#allocation7 + $0x244] sm:$0xf] }
 0x394   : > { %v2422_v27 = vpop.f32.mrf.mxu1  ;;  %v2374_v43 = vadd.f32 %v2373_v28, %v6955_v63  ;;  %v5595_v28 = vld [vmem:[#allocation7 + $0x250] sm:$0xf0] }
 0x395   : > { %v2567_v58 = vmax.f32 %v2516_v39, 0.0  ;;  %v5598_v51 = vor.u32 %v6025_v25, %v5595_v28  ;;  %v5435_v28 = vld [vmem:[#allocation7 + $0x110] sm:$0xf0] }
 0x396   : > { %3515 = vmatmul.bf16.gmra.mxu0 %v7672_v4  ;;  %v2423_v19 = vadd.f32 %v2422_v27, %v2374_v43  ;;  %v5989_v43 = vld [vmem:[#allocation7 + $0x124] sm:$0xf] }
 0x397   : > { %3564 = vmatmul.bf16.gmra.mxu1 %v6837_v13  ;;  %v2640_v59 = vmul.f32 %v6967_v54, %v2567_v58  ;;  %3786 = vmatpush.bf16.msra.mxu2 %v5598_v51 }
 0x398   : > { %v2468_v29 = vpop.f32.mrf.mxu2 }
 0x399   : > { %v2517_v32 = vpop.f32.mrf.mxu3  ;;  %v2469_v48 = vadd.f32 %v2468_v29, %v2420_v26  ;;  %v5961_v26 = vld [vmem:[#allocation7 + $0x44] sm:$0xf]  ;;  %v5723_v29 = vld [vmem:[#allocation7 + $0x350] sm:$0xf0] }
 0x39a   : > { %v5342_v62 = vor.u32 %v5961_v26, %v5339_v9  ;;  %v5726_v18 = vor.u32 %v6057_v10, %v5723_v29  ;;  %v6021_v9 = vld [vmem:[#allocation7 + $0x224] sm:$0xf]  ;;  %v5579_v10 = vld [vmem:[#allocation7 + $0x230] sm:$0xf0] }
 0x39b   : > { %v2518_v21 = vadd.f32 %v2517_v32, %v2469_v48  ;;  %v2375_v37 = vpop.f32.mrf.mxu0  ;;  %v5470_v48 = vor.u32 %v5993_v40, %v5467_v45  ;;  %v6053_v45 = vld [vmem:[#allocation7 + $0x324] sm:$0xf] }
 0x39c   : > { %v2424_v35 = vpop.f32.mrf.mxu1  ;;  %v2376_v0 = vadd.f32 %v2375_v37, %v6955_v63  ;;  %3688 = vmatpush.bf16.msra.mxu0 %v5342_v62  ;;  %3835 = vmatpush.bf16.msra.mxu3 %v5726_v18  ;;  %v5323_v37 = vld [vmem:[#allocation7 + $0x30] sm:$0xf0] }
 0x39d   : > { %v2571_v38 = vmax.f32 %v2518_v21, 0.0  ;;  %3613 = vmatmul.bf16.gmra.mxu2 %v6930_v57  ;;  %3737 = vmatpush.bf16.msra.mxu1 %v5470_v48  ;;  %v5957_v21 = vld [vmem:[#allocation7 + $0x24] sm:$0xf]  ;;  %v7676_v62 = vld [vmem:[#allocation25_spill] sm:$0xff] }
 0x39e   : > { %v2425_v17 = vadd.f32 %v2424_v35, %v2376_v0  ;;  %v5326_v35 = vor.u32 %v5957_v21, %v5323_v37  ;;  %v5707_v48 = vld [vmem:[#allocation7 + $0x330] sm:$0xf0] }
 0x39f   : > { %v2644_v7 = vmul.f32 %v6967_v54, %v2571_v38  ;;  %v5451_v38 = vld [vmem:[#allocation7 + $0x130] sm:$0xf0] }
 0x3a0   : > { %v2471_v8 = vpop.f32.mrf.mxu2  ;;  %3689 = vmatpush.bf16.msra.mxu0 %v5326_v35 }
 0x3a1   : > { %v2520_v52 = vpop.f32.mrf.mxu3  ;;  %v7003_v61 = vpack.c.bf16 %v2644_v7, %v2640_v59  ;;  %v2472_v5 = vadd.f32 %v2471_v8, %v2423_v19  ;;  %v5454_v8 = vor.u32 %v5989_v43, %v5451_v38 }
 0x3a3   : > { %3657 = vmatmul.bf16.gmra.mxu3 %v7003_v61  ;;  %v2378_v6 = vpop.f32.mrf.mxu0  ;;  %v2521_v47 = vadd.f32 %v2520_v52, %v2472_v5  ;;  %3738 = vmatpush.bf16.msra.mxu1 %v5454_v8 }
 0x3a4   : > { %v2427_v12 = vpop.f32.mrf.mxu1  ;;  %v2379_v56 = vadd.f32 %v2378_v6, %v6955_v63  ;;  %v5953_v6 = vld [vmem:[#allocation7 + $0x4] sm:$0xf] }
 0x3a5   : > { %v2575_v46 = vmax.f32 %v2521_v47, 0.0  ;;  %v5985_v47 = vld [vmem:[#allocation7 + $0x104] sm:$0xf] }
 0x3a6   : > { %3520 = vmatmul.bf16.gmra.mxu0 %v7673_v24  ;;  %v2428_v0 = vadd.f32 %v2427_v12, %v2379_v56  ;;  %v5438_v29 = vor.u32 %v5985_v47, %v5435_v28  ;;  %v7675_v12 = vld [vmem:[#allocation19_spill] sm:$0xff]  ;;  %v5710_v56 = vor.u32 %v6053_v45, %v5707_v48 }
 0x3a7   : > { %3569 = vmatmul.bf16.gmra.mxu1 %v7674_v31  ;;  %v2648_v59 = vmul.f32 %v6967_v54, %v2575_v46  ;;  %v6017_v46 = vld [vmem:[#allocation7 + $0x204] sm:$0xf] }
 0x3a8   : > { %v2473_v39 = vpop.f32.mrf.mxu2  ;;  %3739 = vmatpush.bf16.msra.mxu1 %v5438_v29  ;;  %3836 = vmatpush.bf16.msra.mxu3 %v5710_v56 }
 0x3a9   : > { %v2522_v27 = vpop.f32.mrf.mxu3  ;;  %v2474_v32 = vadd.f32 %v2473_v39, %v2425_v17  ;;  %v5307_v17 = vld [vmem:[#allocation7 + $0x10] sm:$0xf0] }
 0x3aa   : > { %v5310_v25 = vor.u32 %v5953_v6, %v5307_v17 }
 0x3ab   : > { %v2523_v55 = vadd.f32 %v2522_v27, %v2474_v32  ;;  %v2380_v49 = vpop.f32.mrf.mxu0  ;;  %v5582_v32 = vor.u32 %v6021_v9, %v5579_v10  ;;  %v7677_v10 = vld [vmem:[#allocation20_spill] sm:$0xff] }
 0x3ac   : > { %v2429_v41 = vpop.f32.mrf.mxu1  ;;  %v2381_v26 = vadd.f32 %v2380_v49, %v6955_v63  ;;  %3690 = vmatpush.bf16.msra.mxu0 %v5310_v25 }
 0x3ad   : > { %v2579_v58 = vmax.f32 %v2523_v55, 0.0  ;;  %3618 = vmatmul.bf16.gmra.mxu2 %v6940_v23 }
 0x3ae   : > { %v2430_v18 = vadd.f32 %v2429_v41, %v2381_v26  ;;  %3787 = vmatpush.bf16.msra.mxu2 %v5582_v32 }
 0x3af   : > { %v2652_v7 = vmul.f32 %v6967_v54, %v2579_v58  ;;  %v5563_v58 = vld [vmem:[#allocation7 + $0x210] sm:$0xf0] }
 0x3b0   : > { %v2476_v52 = vpop.f32.mrf.mxu2  ;;  %v5566_v37 = vor.u32 %v6017_v46, %v5563_v58  ;;  %v7034_v58 = vld [vmem:[%s7619_s7] sm:$0xf] }
 0x3b1   : > { %v2525_v19 = vpop.f32.mrf.mxu3  ;;  %v7013_v5 = vpack.c.bf16 %v2652_v7, %v2648_v59  ;;  %v2477_v39 = vadd.f32 %v2476_v52, %v2428_v0 }
 0x3b2   : > { %3788 = vmatpush.bf16.msra.mxu2 %v5566_v37 }
 0x3b3   : > { %3662 = vmatmul.bf16.gmra.mxu3 %v7013_v5  ;;  %v2383_v27 = vpop.f32.mrf.mxu0  ;;  %v2526_v40 = vadd.f32 %v2525_v19, %v2477_v39  ;;  %v6049_v39 = vld [vmem:[#allocation7 + $0x304] sm:$0xf] }
 0x3b4   : > { %v2432_v51 = vpop.f32.mrf.mxu1  ;;  %v2384_v7 = vadd.f32 %v2383_v27, %v6955_v63  ;;  %v5691_v27 = vld [vmem:[#allocation7 + $0x310] sm:$0xf0] }
 0x3b5   : > { %v2583_v35 = vmax.f32 %v2526_v40, 0.0  ;;  %v5694_v9 = vor.u32 %v6049_v39, %v5691_v27  ;;  %v5809_v39 = vld [vmem:[#allocation7 + $0x3e8] sm:$0xf] }
 0x3b6   : > { %3525 = vmatmul.bf16.gmra.mxu0 %v7675_v12  ;;  %v2433_v6 = vadd.f32 %v2432_v51, %v2384_v7 }
 0x3b7   : > { %3574 = vmatmul.bf16.gmra.mxu1 %v7676_v62  ;;  %v2656_v8 = vmul.f32 %v6967_v54, %v2583_v35  ;;  %3837 = vmatpush.bf16.msra.mxu3 %v5694_v9 }
 0x3b8   : > { %v2478_v55 = vpop.f32.mrf.mxu2 }
 0x3b9   : > { %v2527_v49 = vpop.f32.mrf.mxu3  ;;  %v2479_v21 = vadd.f32 %v2478_v55, %v2430_v18 }
 0x3bb   : > { %v2528_v43 = vadd.f32 %v2527_v49, %v2479_v21  ;;  %v2385_v38 = vpop.f32.mrf.mxu0 }
 0x3bc   : > { %v2434_v59 = vpop.f32.mrf.mxu1  ;;  %v2386_v47 = vadd.f32 %v2385_v38, %v6955_v63  ;;  %v7039_v38 = vperm.slane %v7034_v58, 0 }
 0x3bd   : > { %v2587_v41 = vmax.f32 %v2528_v43, 0.0  ;;  %3623 = vmatmul.bf16.gmra.mxu2 %v6950_v20 }
 0x3be   : > { %v2435_v29 = vadd.f32 %v2434_v59, %v2386_v47 }
 0x3bf   : > { %v2660_v52 = vmul.f32 %v6967_v54, %v2587_v41  ;;  %v5681_v41 = vld [vmem:[#allocation7 + $0x2e8] sm:$0xf] }
 0x3c0   : > { %v2481_v19 = vpop.f32.mrf.mxu2 }
 0x3c1   : > { %v2530_v0 = vpop.f32.mrf.mxu3  ;;  %v7023_v17 = vpack.c.bf16 %v2660_v52, %v2656_v8  ;;  %v2482_v25 = vadd.f32 %v2481_v19, %v2433_v6  ;;  %v6048_v8 = vld [vmem:[#allocation7 + $0x2f4] sm:$0xf0] }
 0x3c2   : > { %v5682_v52 = vor.u32 %v6048_v8, %v5681_v41 }
 0x3c3   : > { %3667 = vmatmul.bf16.gmra.mxu3 %v7023_v17  ;;  %v2388_v28 = vpop.f32.mrf.mxu0  ;;  %v2531_v32 = vadd.f32 %v2530_v0, %v2482_v25  ;;  %v5425_v25 = vld [vmem:[#allocation7 + $0xe8] sm:$0xf] }
 0x3c4   : > { %v2437_v26 = vpop.f32.mrf.mxu1  ;;  %v2389_v49 = vadd.f32 %v2388_v28, %v6955_v63  ;;  %v5984_v28 = vld [vmem:[#allocation7 + $0xf4] sm:$0xf0]  ;;  %3977 = vmatpush.bf16.msrb.mxu2 %v5682_v52 }
 0x3c5   : > { %v2591_v45 = vmax.f32 %v2531_v32, 0.0  ;;  %v5426_v9 = vor.u32 %v5984_v28, %v5425_v25  ;;  %v5665_v28 = vld [vmem:[#allocation7 + $0x2c8] sm:$0xf] }
 0x3c6   : > { %3530 = vmatmul.bf16.gmra.mxu0 %v7677_v10  ;;  %v2438_v59 = vadd.f32 %v2437_v26, %v2389_v49  ;;  %v6080_v26 = vld [vmem:[#allocation7 + $0x3f4] sm:$0xf0] }
 0x3c7   : > { %3579 = vmatmul.bf16.gmra.mxu1 %v6875_v11  ;;  %v2664_v21 = vmul.f32 %v6967_v54, %v2591_v45  ;;  %3879 = vmatpush.bf16.msrb.mxu0 %v5426_v9 }
 0x3c8   : > { %v2483_v51 = vpop.f32.mrf.mxu2 }
 0x3c9   : > { %v2532_v18 = vpop.f32.mrf.mxu3  ;;  %v2484_v40 = vadd.f32 %v2483_v51, %v2435_v29  ;;  %v5810_v29 = vor.u32 %v6080_v26, %v5809_v39  ;;  %v6016_v51 = vld [vmem:[#allocation7 + $0x1f4] sm:$0xf0] }
 0x3ca   : > { %v6044_v39 = vld [vmem:[#allocation7 + $0x2d4] sm:$0xf0] }
 0x3cb   : > { %v2533_v48 = vadd.f32 %v2532_v18, %v2484_v40  ;;  %v2390_v46 = vpop.f32.mrf.mxu0  ;;  %4026 = vmatpush.bf16.msrb.mxu3 %v5810_v29  ;;  %v5666_v26 = vor.u32 %v6044_v39, %v5665_v28  ;;  %v5793_v29 = vld [vmem:[#allocation7 + $0x3c8] sm:$0xf]  ;;  %v5976_v39 = vld [vmem:[#allocation7 + $0xb4] sm:$0xf0] }
 0x3cc   : > { %v2439_v55 = vpop.f32.mrf.mxu1  ;;  %v2391_v19 = vadd.f32 %v2390_v46, %v6955_v63  ;;  %v5553_v63 = vld [vmem:[#allocation7 + $0x1e8] sm:$0xf] }
 0x3cd   : > { %v2595_v56 = vmax.f32 %v2533_v48, 0.0  ;;  %3628 = vmatmul.bf16.gmra.mxu2 %v6961_v60  ;;  %v5554_v45 = vor.u32 %v6016_v51, %v5553_v63  ;;  %v6076_v63 = vld [vmem:[#allocation7 + $0x3d4] sm:$0xf0] }
 0x3ce   : > { %v2440_v18 = vadd.f32 %v2439_v55, %v2391_v19  ;;  %3978 = vmatpush.bf16.msrb.mxu2 %v5666_v26  ;;  %v6072_v26 = vld [vmem:[#allocation7 + $0x3b4] sm:$0xf0] }
 0x3cf   : > { %v2668_v37 = vmul.f32 %v6967_v54, %v2595_v56  ;;  %3928 = vmatpush.bf16.msrb.mxu1 %v5554_v45 }
 0x3d0   : > { %v2486_v35 = vpop.f32.mrf.mxu2 }
 0x3d1   : > { %v2535_v43 = vpop.f32.mrf.mxu3  ;;  %v7041_v7 = vpack.c.bf16 %v2668_v37, %v2664_v21  ;;  %v2487_v0 = vadd.f32 %v2486_v35, %v2438_v59 }
 0x3d3   : > { %7678 = vst [vmem:[#allocation23_spill] sm:$0xff] %v7041_v7  ;;  %3672 = vmatmul.bf16.gmra.mxu3 %v7041_v7  ;;  %v3496_v6 = vpop.f32.mrf.mxu0  ;;  %v2536_v40 = vadd.f32 %v2535_v43, %v2487_v0 }
 0x3d4   : > { %v3545_v47 = vpop.f32.mrf.mxu1  ;;  %v3497_v27 = vadd.f32 %v3496_v6, %v7039_v38 }
 0x3d5   : > { %v2599_v56 = vmax.f32 %v2536_v40, 0.0  ;;  %v6012_v40 = vld [vmem:[#allocation7 + $0x1d4] sm:$0xf0] }
 0x3d6   : > { %v3546_v32 = vadd.f32 %v3545_v47, %v3497_v27  ;;  %3691 = vmatmul.bf16.vlgmr.msra.gmra.mxu0 %v6711_v1  ;;  %v5409_v27 = vld [vmem:[#allocation7 + $0xc8] sm:$0xf] }
 0x3d7   : > { %3740 = vmatmul.bf16.vlgmr.msra.gmra.mxu1 %v6797_v30  ;;  %v2672_v55 = vmul.f32 %v6967_v54, %v2599_v56 }
 0x3d8   : > { %v2488_v48 = vpop.f32.mrf.mxu2 }
 0x3d9   : > { %v2489_v46 = vadd.f32 %v2488_v48, %v2440_v18  ;;  %v2537_v49 = vpop.f32.mrf.mxu3  ;;  %v5537_v18 = vld [vmem:[#allocation7 + $0x1c8] sm:$0xf] }
 0x3da   : > { %v5538_v48 = vor.u32 %v6012_v40, %v5537_v18 }
 0x3db   : > { %v2538_v21 = vadd.f32 %v2537_v49, %v2489_v46  ;;  %v3498_v37 = vpop.f32.mrf.mxu0 }
 0x3dc   : > { %v3547_v35 = vpop.f32.mrf.mxu1  ;;  %v3499_v59 = vadd.f32 %v3498_v37, %v7039_v38  ;;  %3929 = vmatpush.bf16.msrb.mxu1 %v5538_v48 }
 0x3dd   : > { %v2603_v41 = vmax.f32 %v2538_v21, 0.0  ;;  %3789 = vmatmul.bf16.vlgmr.msra.gmra.mxu2 %v6890_v50 }
 0x3de   : > { %v3548_v8 = vadd.f32 %v3547_v35, %v3499_v59 }
 0x3df   : > { %v2676_v43 = vmul.f32 %v6967_v54, %v2603_v41  ;;  %v5980_v54 = vld [vmem:[#allocation7 + $0xd4] sm:$0xf0] }
 0x3e0   : > { %v3594_v52 = vpop.f32.mrf.mxu2  ;;  %v5410_v51 = vor.u32 %v5980_v54, %v5409_v27  ;;  %v5777_v27 = vld [vmem:[#allocation7 + $0x3a8] sm:$0xf] }
 0x3e1   : > { %v7052_v19 = vpack.c.bf16 %v2676_v43, %v2672_v55  ;;  %v3595_v0 = vadd.f32 %v3594_v52, %v3546_v32  ;;  %v5794_v32 = vor.u32 %v6076_v63, %v5793_v29  ;;  %v5649_v52 = vld [vmem:[#allocation7 + $0x2a8] sm:$0xf]  ;;  %v5778_v29 = vor.u32 %v6072_v26, %v5777_v27  ;;  %v6068_v26 = vld [vmem:[#allocation7 + $0x394] sm:$0xf0] }
 0x3e2   : > { %3880 = vmatpush.bf16.msrb.mxu0 %v5410_v51  ;;  %v5521_v63 = vld [vmem:[#allocation7 + $0x1a8] sm:$0xf]  ;;  %v6008_v51 = vld [vmem:[#allocation7 + $0x1b4] sm:$0xf0] }
 0x3e3   : > { %7679 = vst [vmem:[#allocation17_spill] sm:$0xff] %v7052_v19  ;;  %3677 = vmatmul.bf16.gmra.mxu3 %v7052_v19  ;;  %v3501_v6 = vpop.f32.mrf.mxu0  ;;  %v5522_v18 = vor.u32 %v6008_v51, %v5521_v63  ;;  %v5761_v27 = vld [vmem:[#allocation7 + $0x388] sm:$0xf]  ;;  %v6004_v51 = vld [vmem:[#allocation7 + $0x194] sm:$0xf0] }
 0x3e4   : > { %v3550_v47 = vpop.f32.mrf.mxu1  ;;  %v3502_v25 = vadd.f32 %v3501_v6, %v7039_v38  ;;  %4027 = vmatpush.bf16.msrb.mxu3 %v5794_v32  ;;  %v5393_v6 = vld [vmem:[#allocation7 + $0xa8] sm:$0xf] }
 0x3e5   : > { %v5394_v54 = vor.u32 %v5976_v39, %v5393_v6  ;;  %3930 = vmatpush.bf16.msrb.mxu1 %v5522_v18  ;;  %v5377_v6 = vld [vmem:[#allocation7 + $0x88] sm:$0xf] }
 0x3e6   : > { %v3551_v9 = vadd.f32 %v3550_v47, %v3502_v25  ;;  %3696 = vmatmul.bf16.gmra.mxu0 %v6721_v14  ;;  %v5505_v63 = vld [vmem:[#allocation7 + $0x188] sm:$0xf] }
 0x3e7   : > { %3745 = vmatmul.bf16.gmra.mxu1 %v6807_v15  ;;  %3881 = vmatpush.bf16.msrb.mxu0 %v5394_v54  ;;  %v5506_v18 = vor.u32 %v6004_v51, %v5505_v63 }
 0x3e8   : > { %v3596_v45 = vpop.f32.mrf.mxu2  ;;  %4028 = vmatpush.bf16.msrb.mxu3 %v5778_v29  ;;  %v5762_v29 = vor.u32 %v6068_v26, %v5761_v27 }
 0x3e9   : > { %v3597_v46 = vadd.f32 %v3596_v45, %v3548_v8  ;;  %v6040_v8 = vld [vmem:[#allocation7 + $0x2b4] sm:$0xf0]  ;;  %3931 = vmatpush.bf16.msrb.mxu1 %v5506_v18 }
 0x3ea   : > { %v5650_v28 = vor.u32 %v6040_v8, %v5649_v52  ;;  %v5633_v52 = vld [vmem:[#allocation7 + $0x288] sm:$0xf]  ;;  %v6036_v8 = vld [vmem:[#allocation7 + $0x294] sm:$0xf0] }
 0x3eb   : > { %v3503_v49 = vpop.f32.mrf.mxu0  ;;  %v5634_v39 = vor.u32 %v6036_v8, %v5633_v52  ;;  %v6000_v18 = vld [vmem:[#allocation7 + $0x174] sm:$0xf0] }
 0x3ec   : > { %v3552_v56 = vpop.f32.mrf.mxu1  ;;  %v3504_v21 = vadd.f32 %v3503_v49, %v7039_v38  ;;  %3979 = vmatpush.bf16.msrb.mxu2 %v5650_v28  ;;  %4029 = vmatpush.bf16.msrb.mxu3 %v5762_v29  ;;  %v6064_v29 = vld [vmem:[#allocation7 + $0x374] sm:$0xf0] }
 0x3ed   : > { %3794 = vmatmul.bf16.gmra.mxu2 %v6900_v42 }
 0x3ee   : > { %v3553_v37 = vadd.f32 %v3552_v56, %v3504_v21 }
 0x3f0   : > { %v3599_v35 = vpop.f32.mrf.mxu2  ;;  %3980 = vmatpush.bf16.msrb.mxu2 %v5634_v39  ;;  %v5361_v39 = vld [vmem:[#allocation7 + $0x68] sm:$0xf] }
 0x3f1   : > { %v3600_v59 = vadd.f32 %v3599_v35, %v3551_v9 }
 0x3f3   : > { %3838 = vmatmul.bf16.vlgmr.msra.gmra.mxu3 %v6973_v16  ;;  %v3506_v41 = vpop.f32.mrf.mxu0 }
 0x3f4   : > { %v3555_v55 = vpop.f32.mrf.mxu1  ;;  %v3507_v43 = vadd.f32 %v3506_v41, %v7039_v38 }
 0x3f6   : > { %v3556_v47 = vadd.f32 %v3555_v55, %v3507_v43  ;;  %v3643_v25 = vpop.f32.mrf.mxu3  ;;  %3701 = vmatmul.bf16.gmra.mxu0 %v6731_v3 }
 0x3f7   : > { %3750 = vmatmul.bf16.gmra.mxu1 %v6817_v2  ;;  %v7064_v9 = vadd.f32 %v3643_v25, %v3595_v0 }
 0x3f8   : > { %v3601_v32 = vpop.f32.mrf.mxu2 }
 0x3f9   : > { %v3602_v40 = vadd.f32 %v3601_v32, %v3553_v37 }
 0x3fb   : > { %v3508_v45 = vpop.f32.mrf.mxu0 }
 0x3fc   : > { %v3557_v48 = vpop.f32.mrf.mxu1  ;;  %v3509_v49 = vadd.f32 %v3508_v45, %v7039_v38 }
 0x3fd   : > { %3799 = vmatmul.bf16.gmra.mxu2 %v6910_v36 }
 0x3fe   : > { %v3558_v56 = vadd.f32 %v3557_v48, %v3509_v49  ;;  %v3645_v0 = vpop.f32.mrf.mxu3 }
 0x3ff   : > { %v7068_v21 = vadd.f32 %v3645_v0, %v3597_v46  ;;  %v5972_v46 = vld [vmem:[#allocation7 + $0x94] sm:$0xf0] }
 0x400   : > { %v3604_v35 = vpop.f32.mrf.mxu2  ;;  %v5378_v54 = vor.u32 %v5972_v46, %v5377_v6  ;;  %v5617_v6 = vld [vmem:[#allocation7 + $0x268] sm:$0xf] }
 0x401   : > { %v3605_v41 = vadd.f32 %v3604_v35, %v3556_v47 }
 0x402   : > { %3882 = vmatpush.bf16.msrb.mxu0 %v5378_v54  ;;  %v5745_v54 = vld [vmem:[#allocation7 + $0x368] sm:$0xf] }
 0x403   : > { %3843 = vmatmul.bf16.gmra.mxu3 %v6983_v34  ;;  %v3511_v55 = vpop.f32.mrf.mxu0  ;;  %v5746_v51 = vor.u32 %v6064_v29, %v5745_v54  ;;  %v5345_v54 = vld [vmem:[#allocation7 + $0x48] sm:$0xf] }
 0x404   : > { %v3560_v43 = vpop.f32.mrf.mxu1  ;;  %v3512_v37 = vadd.f32 %v3511_v55, %v7039_v38 }
 0x405   : > { %4030 = vmatpush.bf16.msrb.mxu3 %v5746_v51  ;;  %v5964_v51 = vld [vmem:[#allocation7 + $0x54] sm:$0xf0] }
 0x406   : > { %v3561_v25 = vadd.f32 %v3560_v43, %v3512_v37  ;;  %v3648_v28 = vpop.f32.mrf.mxu3  ;;  %3706 = vmatmul.bf16.gmra.mxu0 %v6741_v22 }
 0x407   : > { %3755 = vmatmul.bf16.gmra.mxu1 %v7671_v33  ;;  %v7074_v47 = vadd.f32 %v3648_v28, %v3600_v59  ;;  %v6032_v28 = vld [vmem:[#allocation7 + $0x274] sm:$0xf0] }
 0x408   : > { %v3606_v32 = vpop.f32.mrf.mxu2  ;;  %v5618_v26 = vor.u32 %v6032_v28, %v5617_v6 }
 0x409   : > { %v3607_v45 = vadd.f32 %v3606_v32, %v3558_v56  ;;  %v5489_v32 = vld [vmem:[#allocation7 + $0x168] sm:$0xf] }
 0x40a   : > { %3981 = vmatpush.bf16.msrb.mxu2 %v5618_v26  ;;  %v5601_v26 = vld [vmem:[#allocation7 + $0x248] sm:$0xf] }
 0x40b   : > { %v3513_v48 = vpop.f32.mrf.mxu0 }
 0x40c   : > { %v3562_v49 = vpop.f32.mrf.mxu1  ;;  %v3514_v0 = vadd.f32 %v3513_v48, %v7039_v38 }
 0x40d   : > { %3804 = vmatmul.bf16.gmra.mxu2 %v6920_v53 }
 0x40e   : > { %v3563_v35 = vadd.f32 %v3562_v49, %v3514_v0  ;;  %v3650_v59 = vpop.f32.mrf.mxu3  ;;  %v5490_v49 = vor.u32 %v6000_v18, %v5489_v32  ;;  %v5729_v32 = vld [vmem:[#allocation7 + $0x348] sm:$0xf] }
 0x40f   : > { %v7078_v55 = vadd.f32 %v3650_v59, %v3602_v40  ;;  %v5968_v40 = vld [vmem:[#allocation7 + $0x74] sm:$0xf0] }
 0x410   : > { %v3609_v43 = vpop.f32.mrf.mxu2  ;;  %v5362_v63 = vor.u32 %v5968_v40, %v5361_v39  ;;  %3932 = vmatpush.bf16.msrb.mxu1 %v5490_v49  ;;  %v6028_v40 = vld [vmem:[#allocation7 + $0x254] sm:$0xf0] }
 0x411   : > { %v3610_v37 = vadd.f32 %v3609_v43, %v3561_v25 }
 0x412   : > { %3883 = vmatpush.bf16.msrb.mxu0 %v5362_v63 }
 0x413   : > { %3848 = vmatmul.bf16.gmra.mxu3 %v6993_v44  ;;  %v3516_v52 = vpop.f32.mrf.mxu0 }
 0x414   : > { %v3565_v8 = vpop.f32.mrf.mxu1  ;;  %v3517_v56 = vadd.f32 %v3516_v52, %v7039_v38 }
 0x416   : > { %v3566_v46 = vadd.f32 %v3565_v8, %v3517_v56  ;;  %v3653_v27 = vpop.f32.mrf.mxu3  ;;  %3711 = vmatmul.bf16.gmra.mxu0 %v7672_v4 }
 0x417   : > { %3760 = vmatmul.bf16.gmra.mxu1 %v6837_v13  ;;  %v7084_v25 = vadd.f32 %v3653_v27, %v3605_v41 }
 0x418   : > { %v3611_v48 = vpop.f32.mrf.mxu2 }
 0x419   : > { %v3612_v0 = vadd.f32 %v3611_v48, %v3563_v35  ;;  %v5346_v48 = vor.u32 %v5964_v51, %v5345_v54 }
 0x41b   : > { %v3518_v59 = vpop.f32.mrf.mxu0  ;;  %3884 = vmatpush.bf16.msrb.mxu0 %v5346_v48 }
 0x41c   : > { %v3567_v43 = vpop.f32.mrf.mxu1  ;;  %v3519_v52 = vadd.f32 %v3518_v59, %v7039_v38  ;;  %v5473_v59 = vld [vmem:[#allocation7 + $0x148] sm:$0xf] }
 0x41d   : > { %3809 = vmatmul.bf16.gmra.mxu2 %v6930_v57 }
 0x41e   : > { %v3568_v8 = vadd.f32 %v3567_v43, %v3519_v52  ;;  %v3655_v41 = vpop.f32.mrf.mxu3  ;;  %v5996_v43 = vld [vmem:[#allocation7 + $0x154] sm:$0xf0] }
 0x41f   : > { %v7088_v56 = vadd.f32 %v3655_v41, %v3607_v45  ;;  %v5602_v45 = vor.u32 %v6028_v40, %v5601_v26  ;;  %v5474_v41 = vor.u32 %v5996_v43, %v5473_v59  ;;  %v5329_v26 = vld [vmem:[#allocation7 + $0x28] sm:$0xf]  ;;  %v5956_v59 = vld [vmem:[#allocation7 + $0x14] sm:$0xf0] }
 0x420   : > { %v3614_v6 = vpop.f32.mrf.mxu2  ;;  %v5457_v40 = vld [vmem:[#allocation7 + $0x128] sm:$0xf] }
 0x421   : > { %v7090_v28 = vadd.f32 %v3614_v6, %v3566_v46  ;;  %v6060_v46 = vld [vmem:[#allocation7 + $0x354] sm:$0xf0]  ;;  %3982 = vmatpush.bf16.msrb.mxu2 %v5602_v45  ;;  %3933 = vmatpush.bf16.msrb.mxu1 %v5474_v41 }
 0x422   : > { %v5730_v49 = vor.u32 %v6060_v46, %v5729_v32  ;;  %v5992_v32 = vld [vmem:[#allocation7 + $0x134] sm:$0xf0] }
 0x423   : > { %3853 = vmatmul.bf16.gmra.mxu3 %v7003_v61  ;;  %v3521_v39 = vpop.f32.mrf.mxu0  ;;  %v5458_v45 = vor.u32 %v5992_v32, %v5457_v40  ;;  %v5988_v41 = vld [vmem:[#allocation7 + $0x114] sm:$0xf0]  ;;  %v5713_v40 = vld [vmem:[#allocation7 + $0x328] sm:$0xf] }
 0x424   : > { %v3570_v35 = vpop.f32.mrf.mxu1  ;;  %v3522_v27 = vadd.f32 %v3521_v39, %v7039_v38  ;;  %4031 = vmatpush.bf16.msrb.mxu3 %v5730_v49  ;;  %v5313_v49 = vld [vmem:[#allocation7 + $0x8] sm:$0xf] }
 0x425   : > { %3934 = vmatpush.bf16.msrb.mxu1 %v5458_v45  ;;  %v5314_v43 = vor.u32 %v5956_v59, %v5313_v49  ;;  %v6020_v49 = vld [vmem:[#allocation7 + $0x214] sm:$0xf0] }
 0x426   : > { %v3571_v29 = vadd.f32 %v3570_v35, %v3522_v27  ;;  %v3658_v63 = vpop.f32.mrf.mxu3  ;;  %3716 = vmatmul.bf16.gmra.mxu0 %v7673_v24 }
 0x427   : > { %3765 = vmatmul.bf16.gmra.mxu1 %v7674_v31  ;;  %v7096_v18 = vadd.f32 %v3658_v63, %v3610_v37  ;;  %v5960_v37 = vld [vmem:[#allocation7 + $0x34] sm:$0xf0] }
 0x428   : > { %v3616_v52 = vpop.f32.mrf.mxu2  ;;  %v5330_v51 = vor.u32 %v5960_v37, %v5329_v26 }
 0x429   : > { %v3617_v6 = vadd.f32 %v3616_v52, %v3568_v8  ;;  %v5441_v52 = vld [vmem:[#allocation7 + $0x108] sm:$0xf] }
 0x42a   : > { %3885 = vmatpush.bf16.msrb.mxu0 %v5330_v51  ;;  %v5442_v26 = vor.u32 %v5988_v41, %v5441_v52 }
 0x42b   : > { %v3523_v39 = vpop.f32.mrf.mxu0 }
 0x42c   : > { %v3572_v35 = vpop.f32.mrf.mxu1  ;;  %v3524_v27 = vadd.f32 %v3523_v39, %v7039_v38  ;;  %3935 = vmatpush.bf16.msrb.mxu1 %v5442_v26 }
 0x42d   : > { %3814 = vmatmul.bf16.gmra.mxu2 %v6940_v23 }
 0x42e   : > { %v3573_v54 = vadd.f32 %v3572_v35, %v3524_v27  ;;  %v3660_v63 = vpop.f32.mrf.mxu3  ;;  %v5585_v35 = vld [vmem:[#allocation7 + $0x228] sm:$0xf]  ;;  %v6024_v27 = vld [vmem:[#allocation7 + $0x234] sm:$0xf0]  ;;  %3886 = vmatpush.bf16.msrb.mxu0 %v5314_v43 }
 0x42f   : > { %v7100_v46 = vadd.f32 %v3660_v63, %v3612_v0  ;;  %v5586_v37 = vor.u32 %v6024_v27, %v5585_v35  ;;  %v6056_v63 = vld [vmem:[#allocation7 + $0x334] sm:$0xf0] }
 0x430   : > { %v3619_v8 = vpop.f32.mrf.mxu2  ;;  %v5714_v32 = vor.u32 %v6056_v63, %v5713_v40 }
 0x431   : > { %v3620_v48 = vadd.f32 %v3619_v8, %v3571_v29  ;;  %3983 = vmatpush.bf16.msrb.mxu2 %v5586_v37  ;;  %v5569_v8 = vld [vmem:[#allocation7 + $0x208] sm:$0xf] }
 0x432   : > { %4032 = vmatpush.bf16.msrb.mxu3 %v5714_v32  ;;  %v5570_v52 = vor.u32 %v6020_v49, %v5569_v8 }
 0x433   : > { %3858 = vmatmul.bf16.gmra.mxu3 %v7013_v5  ;;  %v3526_v39 = vpop.f32.mrf.mxu0 }
 0x434   : > { %v3575_v23 = vpop.f32.mrf.mxu1  ;;  %v3527_v0 = vadd.f32 %v3526_v39, %v7039_v38 }
 0x435   : > { %3984 = vmatpush.bf16.msrb.mxu2 %v5570_v52 }
 0x436   : > { %v3576_v29 = vadd.f32 %v3575_v23, %v3527_v0  ;;  %v3663_v51 = vpop.f32.mrf.mxu3  ;;  %3721 = vmatmul.bf16.gmra.mxu0 %v7675_v12 }
 0x437   : > { %3770 = vmatmul.bf16.gmra.mxu1 %v7676_v62  ;;  %v7107_v45 = vadd.f32 %v3663_v51, %v7090_v28  ;;  %v6052_v51 = vld [vmem:[#allocation7 + $0x314] sm:$0xf0] }
 0x438   : > { %v3621_v59 = vpop.f32.mrf.mxu2 }
 0x439   : > { %v3622_v43 = vadd.f32 %v3621_v59, %v3573_v54  ;;  %v5697_v54 = vld [vmem:[#allocation7 + $0x308] sm:$0xf] }
 0x43a   : > { %v5698_v49 = vor.u32 %v6052_v51, %v5697_v54  ;;  %v6046_v51 = vld [vmem:[#allocation7 + $0x2ec] sm:$0xf] }
 0x43b   : > { %v3528_v41 = vpop.f32.mrf.mxu0 }
 0x43c   : > { %v3577_v39 = vpop.f32.mrf.mxu1  ;;  %v3529_v23 = vadd.f32 %v3528_v41, %v7039_v38  ;;  %4033 = vmatpush.bf16.msrb.mxu3 %v5698_v49 }
 0x43d   : > { %3819 = vmatmul.bf16.gmra.mxu2 %v6950_v20 }
 0x43e   : > { %v3578_v35 = vadd.f32 %v3577_v39, %v3529_v23  ;;  %v3665_v27 = vpop.f32.mrf.mxu3 }
 0x43f   : > { %v7111_v26 = vadd.f32 %v3665_v27, %v3617_v6 }
 0x440   : > { %v3624_v28 = vpop.f32.mrf.mxu2 }
 0x441   : > { %v3625_v0 = vadd.f32 %v3624_v28, %v3576_v29 }
 0x443   : > { %3863 = vmatmul.bf16.gmra.mxu3 %v7023_v17  ;;  %v3531_v37 = vpop.f32.mrf.mxu0 }
 0x444   : > { %v3580_v40 = vpop.f32.mrf.mxu1  ;;  %v3532_v63 = vadd.f32 %v3531_v37, %v7039_v38 }
 0x446   : > { %v3581_v32 = vadd.f32 %v3580_v40, %v3532_v63  ;;  %v3668_v8 = vpop.f32.mrf.mxu3  ;;  %3726 = vmatmul.bf16.gmra.mxu0 %v7677_v10  ;;  %v7124_v40 = vperm.slane %v7034_v58, 1  ;;  %v6078_v58 = vld [vmem:[#allocation7 + $0x3ec] sm:$0xf] }
 0x447   : > { %3775 = vmatmul.bf16.gmra.mxu1 %v6875_v11  ;;  %v7117_v59 = vadd.f32 %v3668_v8, %v3620_v48  ;;  %v5683_v8 = vld [vmem:[#allocation7 + $0x2f8] sm:$0xf0] }
 0x448   : > { %v3626_v6 = vpop.f32.mrf.mxu2 }
 0x449   : > { %v3627_v29 = vadd.f32 %v3626_v6, %v3578_v35 }
 0x44b   : > { %v3533_v52 = vpop.f32.mrf.mxu0 }
 0x44c   : > { %v3582_v41 = vpop.f32.mrf.mxu1  ;;  %v3534_v39 = vadd.f32 %v3533_v52, %v7039_v38  ;;  %v5982_v38 = vld [vmem:[#allocation7 + $0xec] sm:$0xf]  ;;  %v5427_v52 = vld [vmem:[#allocation7 + $0xf8] sm:$0xf0] }
 0x44d   : > { %3824 = vmatmul.bf16.gmra.mxu2 %v6961_v60 }
 0x44e   : > { %v3583_v23 = vadd.f32 %v3582_v41, %v3534_v39  ;;  %v3670_v27 = vpop.f32.mrf.mxu3  ;;  %v5811_v41 = vld [vmem:[#allocation7 + $0x3f8] sm:$0xf0]  ;;  %v5430_v39 = vor.u32 %v5982_v38, %v5427_v52 }
 0x44f   : > { %v7121_v28 = vadd.f32 %v3670_v27, %v3622_v43  ;;  %v5686_v43 = vor.u32 %v6046_v51, %v5683_v8  ;;  %v5814_v27 = vor.u32 %v6078_v58, %v5811_v41  ;;  %v6042_v58 = vld [vmem:[#allocation7 + $0x2cc] sm:$0xf] }
 0x450   : > { %v3629_v37 = vpop.f32.mrf.mxu2  ;;  %4075 = vmatpush.bf16.msra.mxu0 %v5430_v39  ;;  %v5978_v41 = vld [vmem:[#allocation7 + $0xcc] sm:$0xf] }
 0x451   : > { %7680 = vst [vmem:[#allocation18_spill] sm:$0xff] %v7121_v28  ;;  %v3630_v63 = vadd.f32 %v3629_v37, %v3581_v32  ;;  %v6014_v37 = vld [vmem:[#allocation7 + $0x1ec] sm:$0xf]  ;;  %4173 = vmatpush.bf16.msra.mxu2 %v5686_v43  ;;  %4222 = vmatpush.bf16.msra.mxu3 %v5814_v27 }
 0x453   : > { %3868 = vmatmul.bf16.gmra.mxu3 %v7041_v7  ;;  %v3692_v48 = vpop.f32.mrf.mxu0  ;;  %v5555_v7 = vld [vmem:[#allocation7 + $0x1f8] sm:$0xf0] }
 0x454   : > { %v3741_v54 = vpop.f32.mrf.mxu1  ;;  %v3693_v35 = vadd.f32 %v3692_v48, %v7124_v40  ;;  %v5558_v60 = vor.u32 %v6014_v37, %v5555_v7 }
 0x456   : > { %v3742_v49 = vadd.f32 %v3741_v54, %v3693_v35  ;;  %v3673_v6 = vpop.f32.mrf.mxu3  ;;  %3887 = vmatmul.bf16.vlgmr.msrb.gmra.mxu0 %v6711_v1  ;;  %4124 = vmatpush.bf16.msra.mxu1 %v5558_v60  ;;  %v5667_v60 = vld [vmem:[#allocation7 + $0x2d8] sm:$0xf0] }
 0x457   : > { %3936 = vmatmul.bf16.vlgmr.msrb.gmra.mxu1 %v6797_v30  ;;  %v7130_v32 = vadd.f32 %v3673_v6, %v3625_v0  ;;  %v5670_v37 = vor.u32 %v6042_v58, %v5667_v60 }
 0x458   : > { %v3631_v48 = vpop.f32.mrf.mxu2 }
 0x459   : > { %v3632_v28 = vadd.f32 %v3631_v48, %v3583_v23  ;;  %v6074_v48 = vld [vmem:[#allocation7 + $0x3cc] sm:$0xf]  ;;  %4174 = vmatpush.bf16.msra.mxu2 %v5670_v37 }
 0x45b   : > { %v3694_v54 = vpop.f32.mrf.mxu0 }
 0x45c   : > { %v3743_v35 = vpop.f32.mrf.mxu1  ;;  %v3695_v51 = vadd.f32 %v3694_v54, %v7124_v40  ;;  %v5795_v54 = vld [vmem:[#allocation7 + $0x3d8] sm:$0xf0] }
 0x45d   : > { %3985 = vmatmul.bf16.vlgmr.msrb.gmra.mxu2 %v6890_v50 }
 0x45e   : > { %v3744_v8 = vadd.f32 %v3743_v35, %v3695_v51  ;;  %v3675_v0 = vpop.f32.mrf.mxu3  ;;  %v5798_v51 = vor.u32 %v6074_v48, %v5795_v54 }
 0x45f   : > { %v7134_v6 = vadd.f32 %v3675_v0, %v3627_v29  ;;  %v5411_v29 = vld [vmem:[#allocation7 + $0xd8] sm:$0xf0]  ;;  %v6010_v0 = vld [vmem:[#allocation7 + $0x1cc] sm:$0xf] }
 0x460   : > { %v3790_v38 = vpop.f32.mrf.mxu2  ;;  %v5414_v35 = vor.u32 %v5978_v41, %v5411_v29  ;;  %4223 = vmatpush.bf16.msra.mxu3 %v5798_v51  ;;  %v7146_v29 = vld [vmem:[#allocation10] sm:$0xf]  ;;  %v6038_v51 = vld [vmem:[#allocation7 + $0x2ac] sm:$0xf] }
 0x461   : > { %v3791_v52 = vadd.f32 %v3790_v38, %v3742_v49  ;;  %v5539_v38 = vld [vmem:[#allocation7 + $0x1d8] sm:$0xf0]  ;;  %v7153_v54 = vperm.slane %v7146_v29, 0 }
 0x462   : > { %4076 = vmatpush.bf16.msra.mxu0 %v5414_v35  ;;  %v7158_v35 = vld [vmem:[%s7620_s8] sm:$0xf] }
 0x463   : > { %3873 = vmatmul.bf16.gmra.mxu3 %v7052_v19  ;;  %v3697_v43 = vpop.f32.mrf.mxu0  ;;  %v5542_v19 = vor.u32 %v6010_v0, %v5539_v38  ;;  %7682 = vst [vmem:[#allocation19_spill] sm:$0xff] %v7158_v35  ;;  %v5651_v0 = vld [vmem:[#allocation7 + $0x2b8] sm:$0xf0] }
 0x464   : > { %v3746_v7 = vpop.f32.mrf.mxu1  ;;  %v3698_v23 = vadd.f32 %v3697_v43, %v7124_v40 }
 0x465   : > { %4125 = vmatpush.bf16.msra.mxu1 %v5542_v19  ;;  %v4271_v19 = vmax.f32 %v7064_v9, 0.0  ;;  %v5654_v9 = vor.u32 %v6038_v51, %v5651_v0  ;;  %v7171_v0 = vperm.slane %v7158_v35, 1 }
 0x466   : > { %v3747_v39 = vadd.f32 %v3746_v7, %v3698_v23  ;;  %v3678_v27 = vpop.f32.mrf.mxu3  ;;  %3892 = vmatmul.bf16.gmra.mxu0 %v6721_v14 }
 0x467   : > { %3941 = vmatmul.bf16.gmra.mxu1 %v6807_v15  ;;  %v7140_v49 = vadd.f32 %v3678_v27, %v3630_v63  ;;  %v7167_v15 = vperm.slane %v7158_v35, 0  ;;  %4175 = vmatpush.bf16.msra.mxu2 %v5654_v9 }
 0x468   : > { %v3792_v43 = vpop.f32.mrf.mxu2 }
 0x469   : > { %v3793_v50 = vadd.f32 %v3792_v43, %v3744_v8 }
 0x46b   : > { %v3699_v7 = vpop.f32.mrf.mxu0 }
 0x46c   : > { %v3748_v23 = vpop.f32.mrf.mxu1  ;;  %v3700_v58 = vadd.f32 %v3699_v7, %v7124_v40  ;;  %v5395_v7 = vld [vmem:[#allocation7 + $0xb8] sm:$0xf0] }
 0x46d   : > { %3990 = vmatmul.bf16.gmra.mxu2 %v6900_v42 }
 0x46e   : > { %v3749_v60 = vadd.f32 %v3748_v23, %v3700_v58  ;;  %v3680_v63 = vpop.f32.mrf.mxu3  ;;  %v6070_v23 = vld [vmem:[#allocation7 + $0x3ac] sm:$0xf]  ;;  %v5779_v58 = vld [vmem:[#allocation7 + $0x3b8] sm:$0xf0] }
 0x46f   : > { %v7144_v27 = vadd.f32 %v3680_v63, %v3632_v28  ;;  %v5782_v42 = vor.u32 %v6070_v23, %v5779_v58 }
 0x470   : > { %v3795_v41 = vpop.f32.mrf.mxu2 }
 0x471   : > { %7681 = vst [vmem:[#allocation24_spill] sm:$0xff] %v7144_v27  ;;  %v7148_v48 = vadd.f32 %v3795_v41, %v3747_v39  ;;  %v5974_v39 = vld [vmem:[#allocation7 + $0xac] sm:$0xf]  ;;  %v7164_v41 = vperm.slane %v7146_v29, 1  ;;  %v5523_v27 = vld [vmem:[#allocation7 + $0x1b8] sm:$0xf0]  ;;  %4224 = vmatpush.bf16.msra.mxu3 %v5782_v42 }
 0x473   : > { %4034 = vmatmul.bf16.vlgmr.msrb.gmra.mxu3 %v6973_v16  ;;  %v3702_v8 = vpop.f32.mrf.mxu0  ;;  %v5398_v16 = vor.u32 %v5974_v39, %v5395_v7 }
 0x474   : > { %v3751_v37 = vpop.f32.mrf.mxu1  ;;  %v3703_v28 = vadd.f32 %v3702_v8, %v7124_v40  ;;  %v6006_v8 = vld [vmem:[#allocation7 + $0x1ac] sm:$0xf] }
 0x475   : > { %4077 = vmatpush.bf16.msra.mxu0 %v5398_v16 }
 0x476   : > { %v3752_v38 = vadd.f32 %v3751_v37, %v3703_v28  ;;  %v3839_v43 = vpop.f32.mrf.mxu3  ;;  %3897 = vmatmul.bf16.gmra.mxu0 %v6731_v3  ;;  %v5526_v28 = vor.u32 %v6006_v8, %v5523_v27  ;;  %v4275_v27 = vmax.f32 %v7068_v21, 0.0 }
 0x477   : > { %3946 = vmatmul.bf16.gmra.mxu1 %v6817_v2  ;;  %v3840_v63 = vadd.f32 %v3839_v43, %v3791_v52  ;;  %v4344_v2 = vmul.f32 %v7153_v54, %v4271_v19 }
 0x478   : > { %v3797_v37 = vpop.f32.mrf.mxu2  ;;  %4126 = vmatpush.bf16.msra.mxu1 %v5526_v28  ;;  %v4348_v8 = vmul.f32 %v7153_v54, %v4275_v27  ;;  %v5970_v27 = vld [vmem:[#allocation7 + $0x8c] sm:$0xf] }
 0x479   : > { %v4272_v51 = vmax.f32 %v3840_v63, 0.0  ;;  %v7173_v52 = vadd.f32 %v3797_v37, %v3749_v60  ;;  %v4418_v9 = vmul.f32 %v7167_v15, %v4344_v2 }
 0x47b   : > { %v4345_v39 = vmul.f32 %v7164_v41, %v4272_v51  ;;  %v3704_v43 = vpop.f32.mrf.mxu0 }
 0x47c   : > { %v3753_v7 = vpop.f32.mrf.mxu1  ;;  %v3705_v23 = vadd.f32 %v3704_v43, %v7124_v40 }
 0x47d   : > { %v4419_v19 = vmul.f32 %v7171_v0, %v4345_v39  ;;  %3995 = vmatmul.bf16.gmra.mxu2 %v6910_v36  ;;  %v4279_v39 = vmax.f32 %v7074_v47, 0.0 }
 0x47e   : > { %v3754_v58 = vadd.f32 %v3753_v7, %v3705_v23  ;;  %v3841_v60 = vpop.f32.mrf.mxu3  ;;  %v6034_v23 = vld [vmem:[#allocation7 + $0x28c] sm:$0xf] }
 0x47f   : > { %v3842_v63 = vadd.f32 %v3841_v60, %v3793_v50  ;;  %v7181_v16 = vadd.f32 %v4419_v19, %v4418_v9  ;;  %v4422_v50 = vmul.f32 %v7167_v15, %v4348_v8  ;;  %v5635_v9 = vld [vmem:[#allocation7 + $0x298] sm:$0xf0]  ;;  %v6002_v8 = vld [vmem:[#allocation7 + $0x18c] sm:$0xf] }
 0x480   : > { %v3800_v42 = vpop.f32.mrf.mxu2  ;;  %v5638_v60 = vor.u32 %v6034_v23, %v5635_v9 }
 0x481   : > { %7683 = vst [vmem:[#allocation25_spill] sm:$0xff] %v7181_v16  ;;  %v4276_v37 = vmax.f32 %v3842_v63, 0.0  ;;  %v7184_v28 = vadd.f32 %v3800_v42, %v3752_v38  ;;  %v5379_v63 = vld [vmem:[#allocation7 + $0x98] sm:$0xf0]  ;;  %v6066_v42 = vld [vmem:[#allocation7 + $0x38c] sm:$0xf] }
 0x482   : > { %v5507_v16 = vld [vmem:[#allocation7 + $0x198] sm:$0xf0]  ;;  %4176 = vmatpush.bf16.msra.mxu2 %v5638_v60 }
 0x483   : > { %v4349_v51 = vmul.f32 %v7164_v41, %v4276_v37  ;;  %4039 = vmatmul.bf16.gmra.mxu3 %v6983_v34  ;;  %v3707_v2 = vpop.f32.mrf.mxu0  ;;  %v5763_v37 = vld [vmem:[#allocation7 + $0x398] sm:$0xf0] }
 0x484   : > { %v3756_v21 = vpop.f32.mrf.mxu1  ;;  %v3708_v43 = vadd.f32 %v3707_v2, %v7124_v40  ;;  %v5382_v2 = vor.u32 %v5970_v27, %v5379_v63  ;;  %v5766_v34 = vor.u32 %v6066_v42, %v5763_v37 }
 0x485   : > { %v4423_v7 = vmul.f32 %v7171_v0, %v4349_v51 }
 0x486   : > { %v3757_v19 = vadd.f32 %v3756_v21, %v3708_v43  ;;  %v3844_v38 = vpop.f32.mrf.mxu3  ;;  %3902 = vmatmul.bf16.gmra.mxu0 %v6741_v22  ;;  %v5510_v21 = vor.u32 %v6002_v8, %v5507_v16  ;;  %v4352_v43 = vmul.f32 %v7153_v54, %v4279_v39  ;;  %4225 = vmatpush.bf16.msra.mxu3 %v5766_v34 }
 0x487   : > { %3951 = vmatmul.bf16.gmra.mxu1 %v7671_v33  ;;  %v3845_v47 = vadd.f32 %v3844_v38, %v7148_v48  ;;  %v7195_v51 = vadd.f32 %v4423_v7, %v4422_v50  ;;  %4078 = vmatpush.bf16.msra.mxu0 %v5382_v2  ;;  %v4283_v7 = vmax.f32 %v7078_v55, 0.0 }
 0x488   : > { %v3802_v36 = vpop.f32.mrf.mxu2  ;;  %4127 = vmatpush.bf16.msra.mxu1 %v5510_v21  ;;  %v4426_v50 = vmul.f32 %v7167_v15, %v4352_v43  ;;  %v6030_v21 = vld [vmem:[#allocation7 + $0x26c] sm:$0xf]  ;;  %v5619_v43 = vld [vmem:[#allocation7 + $0x278] sm:$0xf0] }
 0x489   : > { %v4280_v22 = vmax.f32 %v3845_v47, 0.0  ;;  %v7198_v35 = vadd.f32 %v3802_v36, %v3754_v58  ;;  %v4287_v47 = vmax.f32 %v7084_v25, 0.0 }
 0x48b   : > { %v4353_v23 = vmul.f32 %v7164_v41, %v4280_v22  ;;  %v3709_v48 = vpop.f32.mrf.mxu0  ;;  %v4356_v22 = vmul.f32 %v7153_v54, %v4283_v7  ;;  %v5747_v7 = vld [vmem:[#allocation7 + $0x378] sm:$0xf0] }
 0x48c   : > { %v3758_v9 = vpop.f32.mrf.mxu1  ;;  %v3710_v27 = vadd.f32 %v3709_v48, %v7124_v40 }
 0x48d   : > { %v4427_v16 = vmul.f32 %v7171_v0, %v4353_v23  ;;  %4000 = vmatmul.bf16.gmra.mxu2 %v6920_v53  ;;  %v5966_v23 = vld [vmem:[#allocation7 + $0x6c] sm:$0xf] }
 0x48e   : > { %v3759_v39 = vadd.f32 %v3758_v9, %v3710_v27  ;;  %v3846_v36 = vpop.f32.mrf.mxu3  ;;  %v5622_v9 = vor.u32 %v6030_v21, %v5619_v43  ;;  %v5363_v27 = vld [vmem:[#allocation7 + $0x78] sm:$0xf0] }
 0x48f   : > { %v3847_v58 = vadd.f32 %v3846_v36, %v7173_v52  ;;  %v7207_v34 = vadd.f32 %v4427_v16, %v4426_v50  ;;  %v4430_v52 = vmul.f32 %v7167_v15, %v4356_v22  ;;  %v6062_v50 = vld [vmem:[#allocation7 + $0x36c] sm:$0xf]  ;;  %v5366_v16 = vor.u32 %v5966_v23, %v5363_v27 }
 0x490   : > { %v3805_v38 = vpop.f32.mrf.mxu2  ;;  %v5750_v36 = vor.u32 %v6062_v50, %v5747_v7  ;;  %4177 = vmatpush.bf16.msra.mxu2 %v5622_v9 }
 0x491   : > { %v4284_v60 = vmax.f32 %v3847_v58, 0.0  ;;  %v7210_v63 = vadd.f32 %v3805_v38, %v3757_v19  ;;  %v5998_v58 = vld [vmem:[#allocation7 + $0x16c] sm:$0xf]  ;;  %v5491_v38 = vld [vmem:[#allocation7 + $0x178] sm:$0xf0]  ;;  %4079 = vmatpush.bf16.msra.mxu0 %v5366_v16 }
 0x492   : > { %4226 = vmatpush.bf16.msra.mxu3 %v5750_v36 }
 0x493   : > { %v4357_v42 = vmul.f32 %v7164_v41, %v4284_v60  ;;  %4044 = vmatmul.bf16.gmra.mxu3 %v6993_v44  ;;  %v3712_v55 = vpop.f32.mrf.mxu0 }
 0x494   : > { %v3761_v37 = vpop.f32.mrf.mxu1  ;;  %v3713_v2 = vadd.f32 %v3712_v55, %v7124_v40  ;;  %v4360_v55 = vmul.f32 %v7153_v54, %v4287_v47 }
 0x495   : > { %v4431_v8 = vmul.f32 %v7171_v0, %v4357_v42  ;;  %v5494_v42 = vor.u32 %v5998_v58, %v5491_v38  ;;  %v4295_v38 = vmax.f32 %v7096_v18, 0.0 }
 0x496   : > { %v3762_v48 = vadd.f32 %v3761_v37, %v3713_v2  ;;  %v3849_v19 = vpop.f32.mrf.mxu3  ;;  %3907 = vmatmul.bf16.gmra.mxu0 %v7672_v4 }
 0x497   : > { %3956 = vmatmul.bf16.gmra.mxu1 %v6837_v13  ;;  %v3850_v25 = vadd.f32 %v3849_v19, %v7184_v28  ;;  %v7221_v22 = vadd.f32 %v4431_v8, %v4430_v52  ;;  %v4434_v52 = vmul.f32 %v7167_v15, %v4360_v55  ;;  %v4291_v8 = vmax.f32 %v7088_v56, 0.0  ;;  %v6026_v55 = vld [vmem:[#allocation7 + $0x24c] sm:$0xf] }
 0x498   : > { %v3807_v60 = vpop.f32.mrf.mxu2  ;;  %4128 = vmatpush.bf16.msra.mxu1 %v5494_v42 }
 0x499   : > { %v4288_v37 = vmax.f32 %v3850_v25, 0.0  ;;  %v7224_v2 = vadd.f32 %v3807_v60, %v3759_v39  ;;  %v4364_v7 = vmul.f32 %v7153_v54, %v4291_v8  ;;  %v5731_v8 = vld [vmem:[#allocation7 + $0x358] sm:$0xf0] }
 0x49b   : > { %v4361_v21 = vmul.f32 %v7164_v41, %v4288_v37  ;;  %v3714_v28 = vpop.f32.mrf.mxu0  ;;  %v5603_v37 = vld [vmem:[#allocation7 + $0x258] sm:$0xf0] }
 0x49c   : > { %v3763_v43 = vpop.f32.mrf.mxu1  ;;  %v3715_v23 = vadd.f32 %v3714_v28, %v7124_v40 }
 0x49d   : > { %v4435_v19 = vmul.f32 %v7171_v0, %v4361_v21  ;;  %4005 = vmatmul.bf16.gmra.mxu2 %v6930_v57  ;;  %v5962_v21 = vld [vmem:[#allocation7 + $0x4c] sm:$0xf] }
 0x49e   : > { %v3764_v47 = vadd.f32 %v3763_v43, %v3715_v23  ;;  %v3851_v39 = vpop.f32.mrf.mxu3  ;;  %v5606_v43 = vor.u32 %v6026_v55, %v5603_v37  ;;  %v5347_v23 = vld [vmem:[#allocation7 + $0x58] sm:$0xf0] }
 0x49f   : > { %v3852_v9 = vadd.f32 %v3851_v39, %v7198_v35  ;;  %v7233_v27 = vadd.f32 %v4435_v19, %v4434_v52  ;;  %v4438_v35 = vmul.f32 %v7167_v15, %v4364_v7  ;;  %v6058_v52 = vld [vmem:[#allocation7 + $0x34c] sm:$0xf]  ;;  %v5350_v19 = vor.u32 %v5962_v21, %v5347_v23 }
 0x4a0   : > { %v3810_v50 = vpop.f32.mrf.mxu2  ;;  %v5734_v39 = vor.u32 %v6058_v52, %v5731_v8  ;;  %4178 = vmatpush.bf16.msra.mxu2 %v5606_v43  ;;  %v4299_v21 = vmax.f32 %v7100_v46, 0.0  ;;  %v7684_v43 = vld [vmem:[#allocation29_spill] sm:$0xff]  ;;  %v5990_v23 = vld [vmem:[#allocation7 + $0x12c] sm:$0xf] }
 0x4a1   : > { %v4292_v25 = vmax.f32 %v3852_v9, 0.0  ;;  %v7236_v16 = vadd.f32 %v3810_v50, %v3762_v48  ;;  %v5994_v9 = vld [vmem:[#allocation7 + $0x14c] sm:$0xf]  ;;  %v5475_v50 = vld [vmem:[#allocation7 + $0x158] sm:$0xf0]  ;;  %4080 = vmatpush.bf16.msra.mxu0 %v5350_v19 }
 0x4a2   : > { %4227 = vmatpush.bf16.msra.mxu3 %v5734_v39  ;;  %v5459_v19 = vld [vmem:[#allocation7 + $0x138] sm:$0xf0] }
 0x4a3   : > { %v4365_v36 = vmul.f32 %v7164_v41, %v4292_v25  ;;  %4049 = vmatmul.bf16.gmra.mxu3 %v7003_v61  ;;  %v3717_v56 = vpop.f32.mrf.mxu0 }
 0x4a4   : > { %v3766_v58 = vpop.f32.mrf.mxu1  ;;  %v3718_v60 = vadd.f32 %v3717_v56, %v7124_v40  ;;  %v4368_v56 = vmul.f32 %v7153_v54, %v4295_v38  ;;  %v5958_v38 = vld [vmem:[#allocation7 + $0x2c] sm:$0xf] }
 0x4a5   : > { %v4439_v42 = vmul.f32 %v7171_v0, %v4365_v36  ;;  %v5478_v36 = vor.u32 %v5994_v9, %v5475_v50  ;;  %v5462_v9 = vor.u32 %v5990_v23, %v5459_v19 }
 0x4a6   : > { %v3767_v28 = vadd.f32 %v3766_v58, %v3718_v60  ;;  %v3854_v48 = vpop.f32.mrf.mxu3  ;;  %3912 = vmatmul.bf16.gmra.mxu0 %v7673_v24 }
 0x4a7   : > { %3961 = vmatmul.bf16.gmra.mxu1 %v7674_v31  ;;  %v3855_v18 = vadd.f32 %v3854_v48, %v7210_v63  ;;  %v7247_v7 = vadd.f32 %v4439_v42, %v4438_v35  ;;  %v4442_v42 = vmul.f32 %v7167_v15, %v4368_v56 }
 0x4a8   : > { %v3812_v25 = vpop.f32.mrf.mxu2  ;;  %4129 = vmatpush.bf16.msra.mxu1 %v5478_v36 }
 0x4a9   : > { %v4296_v58 = vmax.f32 %v3855_v18, 0.0  ;;  %v7250_v60 = vadd.f32 %v3812_v25, %v3764_v47  ;;  %v5331_v47 = vld [vmem:[#allocation7 + $0x38] sm:$0xf0]  ;;  %v4372_v25 = vmul.f32 %v7153_v54, %v4299_v21 }
 0x4aa   : > { %v5334_v18 = vor.u32 %v5958_v38, %v5331_v47  ;;  %v5587_v47 = vld [vmem:[#allocation7 + $0x238] sm:$0xf0] }
 0x4ab   : > { %v4369_v55 = vmul.f32 %v7164_v41, %v4296_v58  ;;  %v3719_v63 = vpop.f32.mrf.mxu0  ;;  %v5954_v58 = vld [vmem:[#allocation7 + $0xc] sm:$0xf] }
 0x4ac   : > { %v3768_v37 = vpop.f32.mrf.mxu1  ;;  %v3720_v35 = vadd.f32 %v3719_v63, %v7124_v40  ;;  %4081 = vmatpush.bf16.msra.mxu0 %v5334_v18  ;;  %4130 = vmatpush.bf16.msra.mxu1 %v5462_v9  ;;  %v4303_v18 = vmax.f32 %v7107_v45, 0.0  ;;  %v5715_v9 = vld [vmem:[#allocation7 + $0x338] sm:$0xf0] }
 0x4ad   : > { %v4443_v48 = vmul.f32 %v7171_v0, %v4369_v55  ;;  %4010 = vmatmul.bf16.gmra.mxu2 %v7684_v43  ;;  %v5315_v55 = vld [vmem:[#allocation7 + $0x18] sm:$0xf0] }
 0x4ae   : > { %v3769_v52 = vadd.f32 %v3768_v37, %v3720_v35  ;;  %v3856_v8 = vpop.f32.mrf.mxu3  ;;  %v5318_v63 = vor.u32 %v5954_v58, %v5315_v55  ;;  %v5986_v37 = vld [vmem:[#allocation7 + $0x10c] sm:$0xf]  ;;  %v5443_v35 = vld [vmem:[#allocation7 + $0x118] sm:$0xf0] }
 0x4af   : > { %v3857_v39 = vadd.f32 %v3856_v8, %v7224_v2  ;;  %v7259_v50 = vadd.f32 %v4443_v48, %v4442_v42  ;;  %v6022_v48 = vld [vmem:[#allocation7 + $0x22c] sm:$0xf]  ;;  %v5446_v23 = vor.u32 %v5986_v37, %v5443_v35  ;;  %v5571_v37 = vld [vmem:[#allocation7 + $0x218] sm:$0xf0] }
 0x4b0   : > { %v3815_v46 = vpop.f32.mrf.mxu2  ;;  %v5590_v8 = vor.u32 %v6022_v48, %v5587_v47  ;;  %4082 = vmatpush.bf16.msra.mxu0 %v5318_v63  ;;  %v6018_v63 = vld [vmem:[#allocation7 + $0x20c] sm:$0xf] }
 0x4b1   : > { %v4300_v36 = vmax.f32 %v3857_v39, 0.0  ;;  %v7262_v56 = vadd.f32 %v3815_v46, %v3767_v28  ;;  %v4446_v28 = vmul.f32 %v7167_v15, %v4372_v25  ;;  %v6054_v39 = vld [vmem:[#allocation7 + $0x32c] sm:$0xf]  ;;  %4131 = vmatpush.bf16.msra.mxu1 %v5446_v23  ;;  %v5574_v35 = vor.u32 %v6018_v63, %v5571_v37 }
 0x4b2   : > { %v5718_v58 = vor.u32 %v6054_v39, %v5715_v9  ;;  %4179 = vmatpush.bf16.msra.mxu2 %v5590_v8  ;;  %v4307_v8 = vmax.f32 %v7111_v26, 0.0 }
 0x4b3   : > { %v4373_v38 = vmul.f32 %v7164_v41, %v4300_v36  ;;  %4054 = vmatmul.bf16.gmra.mxu3 %v7013_v5  ;;  %v3722_v2 = vpop.f32.mrf.mxu0 }
 0x4b4   : > { %v3771_v42 = vpop.f32.mrf.mxu1  ;;  %v3723_v21 = vadd.f32 %v3722_v2, %v7124_v40  ;;  %4228 = vmatpush.bf16.msra.mxu3 %v5718_v58 }
 0x4b5   : > { %v4447_v19 = vmul.f32 %v7171_v0, %v4373_v38  ;;  %v4376_v38 = vmul.f32 %v7153_v54, %v4303_v18 }
 0x4b6   : > { %v3772_v46 = vadd.f32 %v3771_v42, %v3723_v21  ;;  %v3859_v36 = vpop.f32.mrf.mxu3  ;;  %3917 = vmatmul.bf16.gmra.mxu0 %v7675_v12  ;;  %4180 = vmatpush.bf16.msra.mxu2 %v5574_v35 }
 0x4b7   : > { %3966 = vmatmul.bf16.gmra.mxu1 %v7676_v62  ;;  %v3860_v55 = vadd.f32 %v3859_v36, %v7236_v16  ;;  %v7273_v25 = vadd.f32 %v4447_v19, %v4446_v28  ;;  %v4450_v16 = vmul.f32 %v7167_v15, %v4376_v38  ;;  %v4380_v36 = vmul.f32 %v7153_v54, %v4307_v8 }
 0x4b8   : > { %v3817_v45 = vpop.f32.mrf.mxu2  ;;  %v4311_v38 = vmax.f32 %v7117_v59, 0.0 }
 0x4b9   : > { %v4304_v2 = vmax.f32 %v3860_v55, 0.0  ;;  %v3818_v42 = vadd.f32 %v3817_v45, %v3769_v52  ;;  %v4454_v35 = vmul.f32 %v7167_v15, %v4380_v36 }
 0x4bb   : > { %v4377_v48 = vmul.f32 %v7164_v41, %v4304_v2  ;;  %v3724_v47 = vpop.f32.mrf.mxu0  ;;  %v6050_v2 = vld [vmem:[#allocation7 + $0x30c] sm:$0xf] }
 0x4bc   : > { %v3773_v23 = vpop.f32.mrf.mxu1  ;;  %v3725_v21 = vadd.f32 %v3724_v47, %v7124_v40 }
 0x4bd   : > { %v4451_v28 = vmul.f32 %v7171_v0, %v4377_v48  ;;  %4015 = vmatmul.bf16.gmra.mxu2 %v6950_v20  ;;  %v5699_v48 = vld [vmem:[#allocation7 + $0x318] sm:$0xf0] }
 0x4be   : > { %v3774_v19 = vadd.f32 %v3773_v23, %v3725_v21  ;;  %v3861_v39 = vpop.f32.mrf.mxu3 }
 0x4bf   : > { %v3862_v18 = vadd.f32 %v3861_v39, %v7250_v60  ;;  %v7283_v52 = vadd.f32 %v4451_v28, %v4450_v16  ;;  %v4384_v28 = vmul.f32 %v7153_v54, %v4311_v38 }
 0x4c0   : > { %v3820_v9 = vpop.f32.mrf.mxu2 }
 0x4c1   : > { %v4308_v58 = vmax.f32 %v3862_v18, 0.0  ;;  %v3821_v55 = vadd.f32 %v3820_v9, %v3772_v46  ;;  %v5702_v46 = vor.u32 %v6050_v2, %v5699_v48  ;;  %v7309_v48 = vld [vmem:[%s7619_s7] sm:$0xf] }
 0x4c3   : > { %v4381_v63 = vmul.f32 %v7164_v41, %v4308_v58  ;;  %4059 = vmatmul.bf16.gmra.mxu3 %v7023_v17  ;;  %v3727_v26 = vpop.f32.mrf.mxu0 }
 0x4c4   : > { %v3776_v37 = vpop.f32.mrf.mxu1  ;;  %v3728_v45 = vadd.f32 %v3727_v26, %v7124_v40  ;;  %4229 = vmatpush.bf16.msra.mxu3 %v5702_v46  ;;  %v7685_v26 = vld [vmem:[#allocation18_spill] sm:$0xff] }
 0x4c5   : > { %v4455_v60 = vmul.f32 %v7171_v0, %v4381_v63  ;;  %v4458_v63 = vmul.f32 %v7167_v15, %v4384_v28  ;;  %v7687_v28 = vld [vmem:[#allocation23_spill] sm:$0xff] }
 0x4c6   : > { %v3777_v47 = vadd.f32 %v3776_v37, %v3728_v45  ;;  %v3864_v23 = vpop.f32.mrf.mxu3  ;;  %3922 = vmatmul.bf16.gmra.mxu0 %v7677_v10  ;;  %v4315_v37 = vmax.f32 %v7685_v26, 0.0  ;;  %v7686_v45 = vld [vmem:[#allocation30_spill] sm:$0xff] }
 0x4c7   : > { %3971 = vmatmul.bf16.gmra.mxu1 %v6875_v11  ;;  %v3865_v21 = vadd.f32 %v3864_v23, %v7262_v56  ;;  %v7295_v16 = vadd.f32 %v4455_v60, %v4454_v35 }
 0x4c8   : > { %v3822_v8 = vpop.f32.mrf.mxu2  ;;  %v4388_v23 = vmul.f32 %v7153_v54, %v4315_v37 }
 0x4c9   : > { %v4312_v59 = vmax.f32 %v3865_v21, 0.0  ;;  %v3823_v39 = vadd.f32 %v3822_v8, %v3774_v19 }
 0x4cb   : > { %v4385_v18 = vmul.f32 %v7164_v41, %v4312_v59  ;;  %v3729_v9 = vpop.f32.mrf.mxu0 }
 0x4cc   : > { %v3778_v36 = vpop.f32.mrf.mxu1  ;;  %v3730_v58 = vadd.f32 %v3729_v9, %v7124_v40  ;;  %v7312_v40 = vperm.slane %v7309_v48, 2  ;;  %v4462_v9 = vmul.f32 %v7167_v15, %v4388_v23 }
 0x4cd   : > { %v4459_v56 = vmul.f32 %v7171_v0, %v4385_v18  ;;  %4020 = vmatmul.bf16.gmra.mxu2 %v7686_v45 }
 0x4ce   : > { %v3779_v35 = vadd.f32 %v3778_v36, %v3730_v58  ;;  %v3866_v60 = vpop.f32.mrf.mxu3  ;;  %v4319_v36 = vmax.f32 %v7130_v32, 0.0 }
 0x4cf   : > { %v3867_v2 = vadd.f32 %v3866_v60, %v3818_v42  ;;  %v7304_v38 = vadd.f32 %v4459_v56, %v4458_v63 }
 0x4d0   : > { %v3825_v19 = vpop.f32.mrf.mxu2  ;;  %v4392_v60 = vmul.f32 %v7153_v54, %v4319_v36 }
 0x4d1   : > { %v4316_v46 = vmax.f32 %v3867_v2, 0.0  ;;  %v3826_v21 = vadd.f32 %v3825_v19, %v3777_v47 }
 0x4d3   : > { %v4389_v8 = vmul.f32 %v7164_v41, %v4316_v46  ;;  %4064 = vmatmul.bf16.gmra.mxu3 %v7687_v28  ;;  %v3888_v42 = vpop.f32.mrf.mxu0 }
 0x4d4   : > { %v3937_v59 = vpop.f32.mrf.mxu1  ;;  %v3889_v18 = vadd.f32 %v3888_v42, %v7312_v40  ;;  %v4466_v42 = vmul.f32 %v7167_v15, %v4392_v60 }
 0x4d5   : > { %v4463_v58 = vmul.f32 %v7171_v0, %v4389_v8 }
 0x4d6   : > { %v3938_v63 = vadd.f32 %v3937_v59, %v3889_v18  ;;  %v3869_v26 = vpop.f32.mrf.mxu3  ;;  %4083 = vmatmul.bf16.vlgmr.msra.gmra.mxu0 %v6711_v1  ;;  %v4323_v1 = vmax.f32 %v7134_v6, 0.0 }
 0x4d7   : > { %4132 = vmatmul.bf16.vlgmr.msra.gmra.mxu1 %v6797_v30  ;;  %v3870_v47 = vadd.f32 %v3869_v26, %v3821_v55  ;;  %v7323_v37 = vadd.f32 %v4463_v58, %v4462_v9  ;;  %v7688_v55 = vld [vmem:[#allocation26_spill] sm:$0xff] }
 0x4d8   : > { %v3827_v56 = vpop.f32.mrf.mxu2  ;;  %v4396_v58 = vmul.f32 %v7153_v54, %v4323_v1  ;;  %v7690_v1 = vld [vmem:[#allocation21_spill] sm:$0xff] }
 0x4d9   : > { %v4320_v2 = vmax.f32 %v3870_v47, 0.0  ;;  %v3828_v19 = vadd.f32 %v3827_v56, %v3779_v35 }
 0x4db   : > { %v4393_v23 = vmul.f32 %v7164_v41, %v4320_v2  ;;  %v3890_v46 = vpop.f32.mrf.mxu0  ;;  %v7689_v2 = vld [vmem:[#allocation17_spill] sm:$0xff] }
 0x4dc   : > { %v3939_v32 = vpop.f32.mrf.mxu1  ;;  %v3891_v8 = vadd.f32 %v3890_v46, %v7312_v40  ;;  %v4470_v46 = vmul.f32 %v7167_v15, %v4396_v58 }
 0x4dd   : > { %v4467_v30 = vmul.f32 %v7171_v0, %v4393_v23  ;;  %4181 = vmatmul.bf16.vlgmr.msra.gmra.mxu2 %v7688_v55 }
 0x4de   : > { %v3940_v59 = vadd.f32 %v3939_v32, %v3891_v8  ;;  %v3871_v18 = vpop.f32.mrf.mxu3  ;;  %v4327_v32 = vmax.f32 %v7140_v49, 0.0 }
 0x4df   : > { %v3872_v9 = vadd.f32 %v3871_v18, %v3823_v39  ;;  %v7332_v36 = vadd.f32 %v4467_v30, %v4466_v42 }
 0x4e0   : > { %v3986_v35 = vpop.f32.mrf.mxu2  ;;  %v4400_v18 = vmul.f32 %v7153_v54, %v4327_v32 }
 0x4e1   : > { %v4324_v26 = vmax.f32 %v3872_v9, 0.0  ;;  %v3987_v47 = vadd.f32 %v3986_v35, %v3938_v63 }
 0x4e3   : > { %v4397_v56 = vmul.f32 %v7164_v41, %v4324_v26  ;;  %4069 = vmatmul.bf16.gmra.mxu3 %v7689_v2  ;;  %v3893_v60 = vpop.f32.mrf.mxu0 }
 0x4e4   : > { %v3942_v6 = vpop.f32.mrf.mxu1  ;;  %v3894_v23 = vadd.f32 %v3893_v60, %v7312_v40  ;;  %v4474_v60 = vmul.f32 %v7167_v15, %v4400_v18 }
 0x4e5   : > { %v4471_v39 = vmul.f32 %v7171_v0, %v4397_v56 }
 0x4e6   : > { %v3943_v8 = vadd.f32 %v3942_v6, %v3894_v23  ;;  %v3874_v42 = vpop.f32.mrf.mxu3  ;;  %4088 = vmatmul.bf16.gmra.mxu0 %v6721_v14  ;;  %v7691_v6 = vld [vmem:[#allocation24_spill] sm:$0xff] }
 0x4e7   : > { %4137 = vmatmul.bf16.gmra.mxu1 %v7690_v1  ;;  %v3875_v63 = vadd.f32 %v3874_v42, %v3826_v21  ;;  %v7343_v30 = vadd.f32 %v4471_v39, %v4470_v46  ;;  %v4331_v14 = vmax.f32 %v7691_v6, 0.0  ;;  %v7692_v21 = vld [vmem:[#allocation27_spill] sm:$0xff] }
 0x4e8   : > { %v3988_v55 = vpop.f32.mrf.mxu2 }
 0x4e9   : > { %v4328_v9 = vmax.f32 %v3875_v63, 0.0  ;;  %v3989_v35 = vadd.f32 %v3988_v55, %v3940_v59  ;;  %v4404_v1 = vmul.f32 %v7153_v54, %v4331_v14 }
 0x4eb   : > { %v4401_v58 = vmul.f32 %v7164_v41, %v4328_v9  ;;  %v3895_v26 = vpop.f32.mrf.mxu0 }
 0x4ec   : > { %v3944_v49 = vpop.f32.mrf.mxu1  ;;  %v3896_v56 = vadd.f32 %v3895_v26, %v7312_v40  ;;  %v7693_v26 = vld [vmem:[#allocation31_spill] sm:$0xff] }
 0x4ed   : > { %v4475_v23 = vmul.f32 %v7171_v0, %v4401_v58  ;;  %4186 = vmatmul.bf16.gmra.mxu2 %v7692_v21  ;;  %v4478_v21 = vmul.f32 %v7167_v15, %v4404_v1 }
 0x4ee   : > { %v3945_v46 = vadd.f32 %v3944_v49, %v3896_v56  ;;  %v3876_v39 = vpop.f32.mrf.mxu3 }
 0x4ef   : > { %v3877_v42 = vadd.f32 %v3876_v39, %v3828_v19  ;;  %v7352_v32 = vadd.f32 %v4475_v23, %v4474_v60  ;;  %v7694_v60 = vld [vmem:[#allocation22_spill] sm:$0xff] }
 0x4f0   : > { %v3991_v59 = vpop.f32.mrf.mxu2 }
 0x4f1   : > { %v4332_v63 = vmax.f32 %v3877_v42, 0.0  ;;  %v3992_v55 = vadd.f32 %v3991_v59, %v3943_v8  ;;  %v7363_v8 = vperm.slane %v7146_v29, 2  ;;  %v7695_v42 = vld [vmem:[#allocation19_spill] sm:$0xff] }
 0x4f2   : > { %v7368_v59 = vperm.slane %v7695_v42, 2 }
 0x4f3   : > { %v4405_v9 = vmul.f32 %v7164_v41, %v4332_v63  ;;  %4230 = vmatmul.bf16.vlgmr.msra.gmra.mxu3 %v7693_v26  ;;  %v3898_v18 = vpop.f32.mrf.mxu0  ;;  %v7696_v63 = vld [vmem:[#allocation28_spill] sm:$0xff] }
 0x4f4   : > { %v3947_v6 = vpop.f32.mrf.mxu1  ;;  %v3899_v58 = vadd.f32 %v3898_v18, %v7312_v40  ;;  %v7697_v18 = vld [vmem:[#allocation25_spill] sm:$0xff] }
 0x4f5   : > { %v4479_v49 = vmul.f32 %v7171_v0, %v4405_v9 }
 0x4f6   : > { %v3948_v19 = vadd.f32 %v3947_v6, %v3899_v58  ;;  %v4035_v56 = vpop.f32.mrf.mxu3  ;;  %4093 = vmatmul.bf16.gmra.mxu0 %v6731_v3 }
 0x4f7   : > { %4142 = vmatmul.bf16.gmra.mxu1 %v7694_v60  ;;  %v4036_v54 = vadd.f32 %v4035_v56, %v3987_v47  ;;  %v7365_v41 = vadd.f32 %v4479_v49, %v4478_v21  ;;  %v7698_v56 = vld [vmem:[#allocation32_spill] sm:$0xff] }
 0x4f8   : > { %v3993_v14 = vpop.f32.mrf.mxu2 }
 0x4f9   : > { %v4273_v23 = vmax.f32 %v4036_v54, 0.0  ;;  %v3994_v39 = vadd.f32 %v3993_v14, %v3945_v46 }
 0x4fb   : > { %v4346_v15 = vmul.f32 %v7363_v8, %v4273_v23  ;;  %v3900_v0 = vpop.f32.mrf.mxu0 }
 0x4fc   : > { %v3949_v1 = vpop.f32.mrf.mxu1  ;;  %v3901_v3 = vadd.f32 %v3900_v0, %v7312_v40  ;;  %v7699_v0 = vld [vmem:[#allocation16_spill] sm:$0xff] }
 0x4fd   : > { %4191 = vmatmul.bf16.gmra.mxu2 %v7696_v63  ;;  %v4420_v47 = vmul.f32 %v7368_v59, %v4346_v15 }
 0x4fe   : > { %v3950_v29 = vadd.f32 %v3949_v1, %v3901_v3  ;;  %v4037_v9 = vpop.f32.mrf.mxu3 }
 0x4ff   : > { %v4038_v26 = vadd.f32 %v4037_v9, %v3989_v35  ;;  %v7375_v6 = vadd.f32 %v7697_v18, %v4420_v47 }
 0x500   : > { %v3996_v46 = vpop.f32.mrf.mxu2 }
 0x501   : > { %v4277_v58 = vmax.f32 %v4038_v26, 0.0  ;;  %v3997_v21 = vadd.f32 %v3996_v46, %v3948_v19 }
 0x503   : > { %v4350_v49 = vmul.f32 %v7363_v8, %v4277_v58  ;;  %4235 = vmatmul.bf16.gmra.mxu3 %v7698_v56  ;;  %v3903_v60 = vpop.f32.mrf.mxu0 }
 0x504   : > { %v3952_v54 = vpop.f32.mrf.mxu1  ;;  %v3904_v14 = vadd.f32 %v3903_v60, %v7312_v40 }
 0x505   : > { %v4424_v23 = vmul.f32 %v7368_v59, %v4350_v49 }
 0x506   : > { %v3953_v42 = vadd.f32 %v3952_v54, %v3904_v14  ;;  %v4040_v15 = vpop.f32.mrf.mxu3  ;;  %4098 = vmatmul.bf16.gmra.mxu0 %v7699_v0 }
 0x507   : > { %4147 = vmatmul.bf16.gmra.mxu1 %v7671_v33  ;;  %v4041_v35 = vadd.f32 %v4040_v15, %v3992_v55  ;;  %v7384_v1 = vadd.f32 %v7195_v51, %v4424_v23 }
 0x508   : > { %v3998_v19 = vpop.f32.mrf.mxu2 }
 0x509   : > { %v4281_v3 = vmax.f32 %v4041_v35, 0.0  ;;  %v3999_v63 = vadd.f32 %v3998_v19, %v3950_v29 }
 0x50b   : > { %v4354_v47 = vmul.f32 %v7363_v8, %v4281_v3  ;;  %v3905_v9 = vpop.f32.mrf.mxu0 }
 0x50c   : > { %v3954_v26 = vpop.f32.mrf.mxu1  ;;  %v3906_v18 = vadd.f32 %v3905_v9, %v7312_v40 }
 0x50d   : > { %4196 = vmatmul.bf16.gmra.mxu2 %v6920_v53  ;;  %v4428_v46 = vmul.f32 %v7368_v59, %v4354_v47 }
 0x50e   : > { %v3955_v58 = vadd.f32 %v3954_v26, %v3906_v18  ;;  %v4042_v49 = vpop.f32.mrf.mxu3 }
 0x50f   : > { %v4043_v33 = vadd.f32 %v4042_v49, %v3994_v39  ;;  %v7391_v55 = vadd.f32 %v7207_v34, %v4428_v46 }
 0x510   : > { %v4001_v51 = vpop.f32.mrf.mxu2 }
 0x511   : > { %v4285_v56 = vmax.f32 %v4043_v33, 0.0  ;;  %v4002_v60 = vadd.f32 %v4001_v51, %v3953_v42 }
 0x513   : > { %v4358_v29 = vmul.f32 %v7363_v8, %v4285_v56  ;;  %4240 = vmatmul.bf16.gmra.mxu3 %v6993_v44  ;;  %v3908_v54 = vpop.f32.mrf.mxu0 }
 0x514   : > { %v3957_v14 = vpop.f32.mrf.mxu1  ;;  %v3909_v23 = vadd.f32 %v3908_v54, %v7312_v40 }
 0x515   : > { %v4432_v53 = vmul.f32 %v7368_v59, %v4358_v29 }
 0x516   : > { %v3958_v15 = vadd.f32 %v3957_v14, %v3909_v23  ;;  %v4045_v0 = vpop.f32.mrf.mxu3  ;;  %4103 = vmatmul.bf16.gmra.mxu0 %v7672_v4 }
 0x517   : > { %4152 = vmatmul.bf16.gmra.mxu1 %v6837_v13  ;;  %v4046_v34 = vadd.f32 %v4045_v0, %v3997_v21  ;;  %v7400_v39 = vadd.f32 %v7221_v22, %v4432_v53 }
 0x518   : > { %v4003_v42 = vpop.f32.mrf.mxu2 }
 0x519   : > { %v4289_v35 = vmax.f32 %v4046_v34, 0.0  ;;  %v4004_v19 = vadd.f32 %v4003_v42, %v3955_v58 }
 0x51b   : > { %v4362_v44 = vmul.f32 %v7363_v8, %v4289_v35  ;;  %v3910_v3 = vpop.f32.mrf.mxu0 }
 0x51c   : > { %v3959_v47 = vpop.f32.mrf.mxu1  ;;  %v3911_v9 = vadd.f32 %v3910_v3, %v7312_v40 }
 0x51d   : > { %4201 = vmatmul.bf16.gmra.mxu2 %v6930_v57  ;;  %v4436_v26 = vmul.f32 %v7368_v59, %v4362_v44 }
 0x51e   : > { %v3960_v4 = vadd.f32 %v3959_v47, %v3911_v9  ;;  %v4047_v18 = vpop.f32.mrf.mxu3 }
 0x51f   : > { %v4048_v13 = vadd.f32 %v4047_v18, %v3999_v63  ;;  %v7407_v21 = vadd.f32 %v7233_v27, %v4436_v26 }
 0x520   : > { %v4006_v22 = vpop.f32.mrf.mxu2 }
 0x521   : > { %v4293_v46 = vmax.f32 %v4048_v13, 0.0  ;;  %v4007_v49 = vadd.f32 %v4006_v22, %v3958_v15 }
 0x523   : > { %v4366_v58 = vmul.f32 %v7363_v8, %v4293_v46  ;;  %4245 = vmatmul.bf16.gmra.mxu3 %v7003_v61  ;;  %v3913_v33 = vpop.f32.mrf.mxu0 }
 0x524   : > { %v3962_v51 = vpop.f32.mrf.mxu1  ;;  %v3914_v56 = vadd.f32 %v3913_v33, %v7312_v40 }
 0x525   : > { %v4440_v57 = vmul.f32 %v7368_v59, %v4366_v58 }
 0x526   : > { %v3963_v29 = vadd.f32 %v3962_v51, %v3914_v56  ;;  %v4050_v54 = vpop.f32.mrf.mxu3  ;;  %4108 = vmatmul.bf16.gmra.mxu0 %v7673_v24 }
 0x527   : > { %4157 = vmatmul.bf16.gmra.mxu1 %v7674_v31  ;;  %v4051_v27 = vadd.f32 %v4050_v54, %v4002_v60  ;;  %v7416_v63 = vadd.f32 %v7247_v7, %v4440_v57 }
 0x528   : > { %v4008_v14 = vpop.f32.mrf.mxu2 }
 0x529   : > { %v4297_v23 = vmax.f32 %v4051_v27, 0.0  ;;  %v4009_v53 = vadd.f32 %v4008_v14, %v3960_v4 }
 0x52b   : > { %v4370_v61 = vmul.f32 %v7363_v8, %v4297_v23  ;;  %v3915_v15 = vpop.f32.mrf.mxu0 }
 0x52c   : > { %v3964_v0 = vpop.f32.mrf.mxu1  ;;  %v3916_v34 = vadd.f32 %v3915_v15, %v7312_v40 }
 0x52d   : > { %v4444_v42 = vmul.f32 %v7368_v59, %v4370_v61  ;;  %4206 = vmatmul.bf16.gmra.mxu2 %v7684_v43 }
 0x52e   : > { %v3965_v24 = vadd.f32 %v3964_v0, %v3916_v34  ;;  %v4052_v35 = vpop.f32.mrf.mxu3 }
 0x52f   : > { %v4053_v31 = vadd.f32 %v4052_v35, %v4004_v19  ;;  %v7423_v60 = vadd.f32 %v7259_v50, %v4444_v42 }
 0x530   : > { %v4011_v7 = vpop.f32.mrf.mxu2 }
 0x531   : > { %v4301_v44 = vmax.f32 %v4053_v31, 0.0  ;;  %v4012_v3 = vadd.f32 %v4011_v7, %v3963_v29 }
 0x533   : > { %v4374_v47 = vmul.f32 %v7363_v8, %v4301_v44  ;;  %4250 = vmatmul.bf16.gmra.mxu3 %v7013_v5  ;;  %v3918_v9 = vpop.f32.mrf.mxu0 }
 0x534   : > { %v3967_v26 = vpop.f32.mrf.mxu1  ;;  %v3919_v4 = vadd.f32 %v3918_v9, %v7312_v40 }
 0x535   : > { %v4448_v18 = vmul.f32 %v7368_v59, %v4374_v47 }
 0x536   : > { %v3968_v43 = vadd.f32 %v3967_v26, %v3919_v4  ;;  %v4055_v13 = vpop.f32.mrf.mxu3  ;;  %4113 = vmatmul.bf16.gmra.mxu0 %v7675_v12 }
 0x537   : > { %4162 = vmatmul.bf16.gmra.mxu1 %v7676_v62  ;;  %v4056_v50 = vadd.f32 %v4055_v13, %v4007_v49  ;;  %v7432_v19 = vadd.f32 %v7273_v25, %v4448_v18 }
 0x538   : > { %v4013_v22 = vpop.f32.mrf.mxu2 }
 0x539   : > { %v4305_v46 = vmax.f32 %v4056_v50, 0.0  ;;  %v4014_v58 = vadd.f32 %v4013_v22, %v3965_v24 }
 0x53b   : > { %v4378_v5 = vmul.f32 %v7363_v8, %v4305_v46  ;;  %v3920_v33 = vpop.f32.mrf.mxu0 }
 0x53c   : > { %v3969_v51 = vpop.f32.mrf.mxu1  ;;  %v3921_v56 = vadd.f32 %v3920_v33, %v7312_v40 }
 0x53d   : > { %v4452_v57 = vmul.f32 %v7368_v59, %v4378_v5  ;;  %4211 = vmatmul.bf16.gmra.mxu2 %v6950_v20 }
 0x53e   : > { %v3970_v12 = vadd.f32 %v3969_v51, %v3921_v56  ;;  %v4057_v29 = vpop.f32.mrf.mxu3 }
 0x53f   : > { %v4058_v62 = vadd.f32 %v4057_v29, %v4009_v53  ;;  %v7439_v49 = vadd.f32 %v7283_v52, %v4452_v57 }
 0x540   : > { %v4016_v25 = vpop.f32.mrf.mxu2 }
 0x541   : > { %v4309_v54 = vmax.f32 %v4058_v62, 0.0  ;;  %v4017_v27 = vadd.f32 %v4016_v25, %v3968_v43 }
 0x543   : > { %v4382_v14 = vmul.f32 %v7363_v8, %v4309_v54  ;;  %4255 = vmatmul.bf16.gmra.mxu3 %v7023_v17  ;;  %v3923_v23 = vpop.f32.mrf.mxu0 }
 0x544   : > { %v3972_v61 = vpop.f32.mrf.mxu1  ;;  %v3924_v15 = vadd.f32 %v3923_v23, %v7312_v40 }
 0x545   : > { %v4456_v0 = vmul.f32 %v7368_v59, %v4382_v14 }
 0x546   : > { %v3973_v20 = vadd.f32 %v3972_v61, %v3924_v15  ;;  %v4060_v34 = vpop.f32.mrf.mxu3  ;;  %4118 = vmatmul.bf16.gmra.mxu0 %v7677_v10 }
 0x547   : > { %4167 = vmatmul.bf16.gmra.mxu1 %v6875_v11  ;;  %v4061_v52 = vadd.f32 %v4060_v34, %v4012_v3  ;;  %v7448_v53 = vadd.f32 %v7295_v16, %v4456_v0 }
 0x548   : > { %v4018_v42 = vpop.f32.mrf.mxu2 }
 0x549   : > { %v4313_v24 = vmax.f32 %v4061_v52, 0.0  ;;  %v4019_v35 = vadd.f32 %v4018_v42, %v3970_v12 }
 0x54b   : > { %v4386_v17 = vmul.f32 %v7363_v8, %v4313_v24  ;;  %v3925_v31 = vpop.f32.mrf.mxu0 }
 0x54c   : > { %v3974_v7 = vpop.f32.mrf.mxu1  ;;  %v3926_v44 = vadd.f32 %v3925_v31, %v7312_v40 }
 0x54d   : > { %v4460_v47 = vmul.f32 %v7368_v59, %v4386_v17  ;;  %4216 = vmatmul.bf16.gmra.mxu2 %v7686_v45 }
 0x54e   : > { %v3975_v10 = vadd.f32 %v3974_v7, %v3926_v44  ;;  %v4062_v9 = vpop.f32.mrf.mxu3 }
 0x54f   : > { %v4063_v11 = vadd.f32 %v4062_v9, %v4014_v58  ;;  %v7455_v3 = vadd.f32 %v7304_v38, %v4460_v47 }
 0x550   : > { %v4021_v16 = vpop.f32.mrf.mxu2 }
 0x551   : > { %v4317_v26 = vmax.f32 %v4063_v11, 0.0  ;;  %v4022_v4 = vadd.f32 %v4021_v16, %v3973_v20 }
 0x553   : > { %v4390_v18 = vmul.f32 %v7363_v8, %v4317_v26  ;;  %4260 = vmatmul.bf16.gmra.mxu3 %v7687_v28  ;;  %v4084_v43 = vpop.f32.mrf.mxu0  ;;  %v6141_v26 = vld [vmem:[#allocation10] sm:$0xf] }
 0x554   : > { %v4133_v13 = vpop.f32.mrf.mxu1 }
 0x555   : > { %v4464_v40 = vmul.f32 %v7368_v59, %v4390_v18 }
 0x556   : > { %v4065_v50 = vpop.f32.mrf.mxu3 }
 0x557   : > { %v4066_v22 = vadd.f32 %v4065_v50, %v4017_v27  ;;  %v7461_v45 = vadd.f32 %v7323_v37, %v4464_v40 }
 0x558   : > { %v4023_v46 = vpop.f32.mrf.mxu2 }
 0x559   : > { %v4321_v58 = vmax.f32 %v4066_v22, 0.0  ;;  %v4024_v38 = vadd.f32 %v4023_v46, %v3975_v10 }
 0x55b   : > { %v4394_v5 = vmul.f32 %v7363_v8, %v4321_v58  ;;  %v4086_v33 = vpop.f32.mrf.mxu0 }
 0x55c   : > { %v4135_v56 = vpop.f32.mrf.mxu1 }
 0x55d   : > { %v4468_v51 = vmul.f32 %v7368_v59, %v4394_v5 }
 0x55e   : > { %v4067_v57 = vpop.f32.mrf.mxu3 }
 0x55f   : > { %v4068_v28 = vadd.f32 %v4067_v57, %v4019_v35  ;;  %v7466_v12 = vadd.f32 %v7332_v36, %v4468_v51  ;;  %v7475_v36 = vperm.slane %v7309_v48, 3 }
 0x560   : > { %v4182_v29 = vpop.f32.mrf.mxu2 }
 0x561   : > { %v4325_v62 = vmax.f32 %v4068_v28, 0.0  ;;  %v4085_v42 = vadd.f32 %v4084_v43, %v7475_v36  ;;  %v4087_v11 = vadd.f32 %v4086_v33, %v7475_v36 }
 0x563   : > { %v4398_v25 = vmul.f32 %v7363_v8, %v4325_v62  ;;  %4265 = vmatmul.bf16.gmra.mxu3 %v7689_v2  ;;  %v4089_v37 = vpop.f32.mrf.mxu0  ;;  %v4134_v7 = vadd.f32 %v4133_v13, %v4085_v42 }
 0x564   : > { %v4138_v14 = vpop.f32.mrf.mxu1 }
 0x565   : > { %v4472_v54 = vmul.f32 %v7368_v59, %v4398_v25  ;;  %v4183_v48 = vadd.f32 %v4182_v29, %v4134_v7 }
 0x566   : > { %v4070_v27 = vpop.f32.mrf.mxu3 }
 0x567   : > { %v4071_v23 = vadd.f32 %v4070_v27, %v4022_v4  ;;  %v7472_v61 = vadd.f32 %v7343_v30, %v4472_v54  ;;  %v7486_v4 = vperm.slane %v6141_v26, 3 }
 0x568   : > { %v4184_v15 = vpop.f32.mrf.mxu2 }
 0x569   : > { %v4329_v0 = vmax.f32 %v4071_v23, 0.0 }
 0x56b   : > { %v4402_v20 = vmul.f32 %v7363_v8, %v4329_v0  ;;  %v4091_v34 = vpop.f32.mrf.mxu0 }
 0x56c   : > { %v4140_v30 = vpop.f32.mrf.mxu1  ;;  %v4092_v27 = vadd.f32 %v4091_v34, %v7475_v36 }
 0x56d   : > { %v4476_v52 = vmul.f32 %v7368_v59, %v4402_v20 }
 0x56e   : > { %v4072_v2 = vpop.f32.mrf.mxu3  ;;  %v4141_v20 = vadd.f32 %v4140_v30, %v4092_v27 }
 0x56f   : > { %v4073_v24 = vadd.f32 %v4072_v2, %v4024_v38  ;;  %v7481_v35 = vadd.f32 %v7352_v32, %v4476_v52  ;;  %v4090_v38 = vadd.f32 %v4089_v37, %v7475_v36 }
 0x570   : > { %v4187_v17 = vpop.f32.mrf.mxu2 }
 0x571   : > { %v4333_v31 = vmax.f32 %v4073_v24, 0.0  ;;  %v4139_v28 = vadd.f32 %v4138_v14, %v4090_v38 }
 0x573   : > { %v4406_v44 = vmul.f32 %v7363_v8, %v4333_v31  ;;  %v4094_v10 = vpop.f32.mrf.mxu0  ;;  %v6142_v8 = vld [vmem:[%s7620_s8] sm:$0xf] }
 0x574   : > { %v7494_v13 = vperm.slane %v6142_v8, 3  ;;  %v4143_v40 = vpop.f32.mrf.mxu1  ;;  %v4095_v24 = vadd.f32 %v4094_v10, %v7475_v36 }
 0x575   : > { %v4480_v47 = vmul.f32 %v7368_v59, %v4406_v44  ;;  %v4136_v59 = vadd.f32 %v4135_v56, %v4087_v11  ;;  %v4188_v56 = vadd.f32 %v4187_v17, %v4139_v28 }
 0x576   : > { %v4231_v9 = vpop.f32.mrf.mxu3 }
 0x577   : > { %v4232_v16 = vadd.f32 %v4231_v9, %v4183_v48  ;;  %v7489_v32 = vadd.f32 %v7365_v41, %v4480_v47  ;;  %v4185_v22 = vadd.f32 %v4184_v15, %v4136_v59 }
 0x578   : > { %v4189_v18 = vpop.f32.mrf.mxu2 }
 0x579   : > { %v4274_v43 = vmax.f32 %v4232_v16, 0.0  ;;  %v4190_v14 = vadd.f32 %v4189_v18, %v4141_v20 }
 0x57b   : > { %v4347_v50 = vmul.f32 %v7486_v4, %v4274_v43  ;;  %v4096_v33 = vpop.f32.mrf.mxu0 }
 0x57c   : > { %v4145_v62 = vpop.f32.mrf.mxu1  ;;  %v4097_v16 = vadd.f32 %v4096_v33, %v7475_v36 }
 0x57d   : > { %v4421_v46 = vmul.f32 %v7494_v13, %v4347_v50 }
 0x57e   : > { %v4233_v58 = vpop.f32.mrf.mxu3  ;;  %v4146_v8 = vadd.f32 %v4145_v62, %v4097_v16 }
 0x57f   : > { %v4234_v41 = vadd.f32 %v4233_v58, %v4185_v22  ;;  %v4484_v5 = vadd.f32 %v7375_v6, %v4421_v46 }
 0x580   : > { %v4192_v51 = vpop.f32.mrf.mxu2 }
 0x581   : > { %v4278_v57 = vmax.f32 %v4234_v41, 0.0  ;;  %4485 = vadd.xlane.f32.xlu0 %v4484_v5 }
 0x583   : > { %v4351_v29 = vmul.f32 %v7486_v4, %v4278_v57  ;;  %v4099_v6 = vpop.f32.mrf.mxu0 }
 0x584   : > { %v4148_v17 = vpop.f32.mrf.mxu1  ;;  %v4100_v58 = vadd.f32 %v4099_v6, %v7475_v36 }
 0x585   : > { %v4425_v25 = vmul.f32 %v7494_v13, %v4351_v29 }
 0x586   : > { %v4236_v54 = vpop.f32.mrf.mxu3 }
 0x587   : > { %v4237_v23 = vadd.f32 %v4236_v54, %v4188_v56  ;;  %v4489_v37 = vadd.f32 %v7384_v1, %v4425_v25  ;;  %v4144_v1 = vadd.f32 %v4143_v40, %v4095_v24 }
 0x588   : > { %v4194_v15 = vpop.f32.mrf.mxu2 }
 0x589   : > { %v4282_v0 = vmax.f32 %v4237_v23, 0.0  ;;  %4490 = vadd.xlane.f32.xlu0 %v4489_v37  ;;  %v4193_v30 = vadd.f32 %v4192_v51, %v4144_v1  ;;  %v4195_v40 = vadd.f32 %v4194_v15, %v4146_v8 }
 0x58b   : > { %v4355_v52 = vmul.f32 %v7486_v4, %v4282_v0  ;;  %v4101_v47 = vpop.f32.mrf.mxu0 }
 0x58c   : > { %v4150_v18 = vpop.f32.mrf.mxu1  ;;  %v4102_v62 = vadd.f32 %v4101_v47, %v7475_v36 }
 0x58d   : > { %v4429_v2 = vmul.f32 %v7494_v13, %v4355_v52 }
 0x58e   : > { %v4238_v42 = vpop.f32.mrf.mxu3 }
 0x58f   : > { %v4239_v31 = vadd.f32 %v4238_v42, %v4190_v14  ;;  %v4494_v34 = vadd.f32 %v7391_v55, %v4429_v2 }
 0x590   : > { %v4197_v7 = vpop.f32.mrf.mxu2 }
 0x591   : > { %v4286_v44 = vmax.f32 %v4239_v31, 0.0  ;;  %4495 = vadd.xlane.f32.xlu1 %v4494_v34 }
 0x593   : > { %v4359_v48 = vmul.f32 %v7486_v4, %v4286_v44  ;;  %v4104_v22 = vpop.f32.mrf.mxu0 }
 0x594   : > { %v4153_v33 = vpop.f32.mrf.mxu1  ;;  %v4105_v14 = vadd.f32 %v4104_v22, %v7475_v36 }
 0x595   : > { %v4433_v9 = vmul.f32 %v7494_v13, %v4359_v48 }
 0x596   : > { %v4241_v11 = vpop.f32.mrf.mxu3 }
 0x597   : > { %v4242_v26 = vadd.f32 %v4241_v11, %v4193_v30  ;;  %v4499_v10 = vadd.f32 %v7400_v39, %v4433_v9  ;;  %v4149_v39 = vadd.f32 %v4148_v17, %v4100_v58  ;;  %v4154_v17 = vadd.f32 %v4153_v33, %v4105_v14 }
 0x598   : > { %v4199_v55 = vpop.f32.mrf.mxu2 }
 0x599   : > { %v4290_v43 = vmax.f32 %v4242_v26, 0.0  ;;  %4500 = vadd.xlane.f32.xlu1 %v4499_v10  ;;  %v4198_v28 = vadd.f32 %v4197_v7, %v4149_v39 }
 0x59b   : > { %v4363_v59 = vmul.f32 %v7486_v4, %v4290_v43  ;;  %v4106_v27 = vpop.f32.mrf.mxu0 }
 0x59c   : > { %v4155_v0 = vpop.f32.mrf.mxu1  ;;  %v4107_v1 = vadd.f32 %v4106_v27, %v7475_v36 }
 0x59d   : > { %v4437_v50 = vmul.f32 %v7494_v13, %v4363_v59 }
 0x59e   : > { %v4243_v46 = vpop.f32.mrf.mxu3 }
 0x59f   : > { %v4244_v38 = vadd.f32 %v4243_v46, %v4195_v40  ;;  %v4504_v41 = vadd.f32 %v7407_v21, %v4437_v50  ;;  %v4151_v21 = vadd.f32 %v4150_v18, %v4102_v62 }
 0x5a0   : > { %v4202_v57 = vpop.f32.mrf.mxu2 }
 0x5a1   : > { %v4294_v5 = vmax.f32 %v4244_v38, 0.0  ;;  %4505 = vadd.xlane.f32.xlu2 %v4504_v41  ;;  %v4200_v15 = vadd.f32 %v4199_v55, %v4151_v21  ;;  %v4203_v34 = vadd.f32 %v4202_v57, %v4154_v17 }
 0x5a3   : > { %v4367_v51 = vmul.f32 %v7486_v4, %v4294_v5 }
 0x5a4   : > { %v4158_v48 = vpop.f32.mrf.mxu1 }
 0x5a5   : > { %v4441_v29 = vmul.f32 %v7494_v13, %v4367_v51 }
 0x5a6   : > { %v4246_v56 = vpop.f32.mrf.mxu3 }
 0x5a7   : > { %v4247_v25 = vadd.f32 %v4246_v56, %v4198_v28  ;;  %v4509_v54 = vadd.f32 %v7416_v63, %v4441_v29  ;;  %v4109_v63 = vpop.f32.mrf.mxu0 }
 0x5a8   : > { %v4204_v20 = vpop.f32.mrf.mxu2  ;;  %v4110_v55 = vadd.f32 %v4109_v63, %v7475_v36 }
 0x5a9   : > { %v4298_v23 = vmax.f32 %v4247_v25, 0.0  ;;  %4510 = vadd.xlane.f32.xlu2 %v4509_v54 }
 0x5aa   : > { %v4159_v22 = vadd.f32 %v4158_v48, %v4110_v55 }
 0x5ab   : > { %v4371_v37 = vmul.f32 %v7486_v4, %v4298_v23 }
 0x5ac   : > { %v4160_v40 = vpop.f32.mrf.mxu1 }
 0x5ad   : > { %v4445_v6 = vmul.f32 %v7494_v13, %v4371_v37 }
 0x5ae   : > { %v4248_v52 = vpop.f32.mrf.mxu3 }
 0x5af   : > { %v4249_v2 = vadd.f32 %v4248_v52, %v4200_v15  ;;  %v4514_v42 = vadd.f32 %v7423_v60, %v4445_v6  ;;  %v4156_v60 = vadd.f32 %v4155_v0, %v4107_v1  ;;  %v4111_v26 = vpop.f32.mrf.mxu0 }
 0x5b0   : > { %v4207_v9 = vpop.f32.mrf.mxu2  ;;  %v4112_v39 = vadd.f32 %v4111_v26, %v7475_v36 }
 0x5b1   : > { %v4302_v24 = vmax.f32 %v4249_v2, 0.0  ;;  %4515 = vadd.xlane.f32.xlu0 %v4514_v42  ;;  %v4205_v10 = vadd.f32 %v4204_v20, %v4156_v60  ;;  %v4208_v58 = vadd.f32 %v4207_v9, %v4159_v22 }
 0x5b3   : > { %v4375_v31 = vmul.f32 %v7486_v4, %v4302_v24 }
 0x5b4   : > { %v4163_v28 = vpop.f32.mrf.mxu1 }
 0x5b5   : > { %v4449_v7 = vmul.f32 %v7494_v13, %v4375_v31 }
 0x5b6   : > { %v4251_v44 = vpop.f32.mrf.mxu3 }
 0x5b7   : > { %v4252_v47 = vadd.f32 %v4251_v44, %v4203_v34  ;;  %v4519_v30 = vadd.f32 %v7432_v19, %v4449_v7  ;;  %v4114_v41 = vpop.f32.mrf.mxu0 }
 0x5b8   : > { %v4209_v19 = vpop.f32.mrf.mxu2  ;;  %v4115_v27 = vadd.f32 %v4114_v41, %v7475_v36 }
 0x5b9   : > { %v4306_v11 = vmax.f32 %v4252_v47, 0.0  ;;  %4520 = vadd.xlane.f32.xlu1 %v4519_v30 }
 0x5bb   : > { %v4379_v16 = vmul.f32 %v7486_v4, %v4306_v11 }
 0x5bc   : > { %v4165_v6 = vpop.f32.mrf.mxu1 }
 0x5bd   : > { %v4453_v18 = vmul.f32 %v7494_v13, %v4379_v16 }
 0x5be   : > { %v4253_v43 = vpop.f32.mrf.mxu3 }
 0x5bf   : > { %v4254_v8 = vadd.f32 %v4253_v43, %v4205_v10  ;;  %v4524_v59 = vadd.f32 %v7439_v49, %v4453_v18  ;;  %v4161_v49 = vadd.f32 %v4160_v40, %v4112_v39  ;;  %v4116_v37 = vpop.f32.mrf.mxu0 }
 0x5c0   : > { %v4212_v56 = vpop.f32.mrf.mxu2  ;;  %v4117_v42 = vadd.f32 %v4116_v37, %v7475_v36 }
 0x5c1   : > { %v4310_v50 = vmax.f32 %v4254_v8, 0.0  ;;  %4525 = vadd.xlane.f32.xlu2 %v4524_v59  ;;  %v4210_v62 = vadd.f32 %v4209_v19, %v4161_v49 }
 0x5c2   : > { %v4166_v31 = vadd.f32 %v4165_v6, %v4117_v42 }
 0x5c3   : > { %v4383_v46 = vmul.f32 %v7486_v4, %v4310_v50 }
 0x5c4   : > { %v4168_v9 = vpop.f32.mrf.mxu1 }
 0x5c5   : > { %v4457_v38 = vmul.f32 %v7494_v13, %v4383_v46 }
 0x5c6   : > { %v4256_v5 = vpop.f32.mrf.mxu3 }
 0x5c7   : > { %v4257_v33 = vadd.f32 %v4256_v5, %v4208_v58  ;;  %v4529_v51 = vadd.f32 %v7448_v53, %v4457_v38  ;;  %v4164_v53 = vadd.f32 %v4163_v28, %v4115_v27  ;;  %v6137_v5 = vld [vmem:[#allocation3] ss:$0 sm:$0xff] }
 0x5c8   : > { %v4214_v14 = vpop.f32.mrf.mxu2 }
 0x5c9   : > { %v4314_v57 = vmax.f32 %v4257_v33, 0.0  ;;  %4530 = vadd.xlane.f32.xlu0 %v4529_v51  ;;  %v4213_v20 = vadd.f32 %v4212_v56, %v4164_v53  ;;  %v4215_v7 = vadd.f32 %v4214_v14, %v4166_v31 }
 0x5cb   : > { %v4387_v29 = vmul.f32 %v7486_v4, %v4314_v57 }
 0x5cd   : > { %v4461_v25 = vmul.f32 %v7494_v13, %v4387_v29 }
 0x5ce   : > { %v4258_v54 = vpop.f32.mrf.mxu3 }
 0x5cf   : > { %v4259_v23 = vadd.f32 %v4258_v54, %v4210_v62  ;;  %v4534_v21 = vadd.f32 %v7455_v3, %v4461_v25  ;;  %v4119_v3 = vpop.f32.mrf.mxu0 }
 0x5d0   : > { %v4120_v48 = vadd.f32 %v4119_v3, %v7475_v36  ;;  %v4217_v11 = vpop.f32.mrf.mxu2 }
 0x5d1   : > { %v4318_v15 = vmax.f32 %v4259_v23, 0.0  ;;  %4535 = vadd.xlane.f32.xlu1 %v4534_v21 }
 0x5d3   : > { %v4391_v0 = vmul.f32 %v7486_v4, %v4318_v15 }
 0x5d5   : > { %v4465_v52 = vmul.f32 %v7494_v13, %v4391_v0 }
 0x5d6   : > { %v4261_v2 = vpop.f32.mrf.mxu3 }
 0x5d7   : > { %v4262_v24 = vadd.f32 %v4261_v2, %v4213_v20  ;;  %v4539_v63 = vadd.f32 %v7461_v45, %v4465_v52  ;;  %v4169_v45 = vadd.f32 %v4168_v9, %v4120_v48  ;;  %v4121_v26 = vpop.f32.mrf.mxu0 }
 0x5d8   : > { %v4122_v55 = vadd.f32 %v4121_v26, %v7475_v36  ;;  %v4219_v50 = vpop.f32.mrf.mxu2 }
 0x5d9   : > { %v4322_v17 = vmax.f32 %v4262_v24, 0.0  ;;  %4540 = vadd.xlane.f32.xlu2 %v4539_v63  ;;  %v4218_v10 = vadd.f32 %v4217_v11, %v4169_v45 }
 0x5db   : > { %v4395_v34 = vmul.f32 %v7486_v4, %v4322_v17 }
 0x5dd   : > { %v4469_v44 = vmul.f32 %v7494_v13, %v4395_v34 }
 0x5de   : > { %v4263_v1 = vpop.f32.mrf.mxu3 }
 0x5df   : > { %v4264_v47 = vadd.f32 %v4263_v1, %v4215_v7  ;;  %v4544_v30 = vadd.f32 %v7466_v12, %v4469_v44  ;;  %v4170_v12 = vpop.f32.mrf.mxu1 }
 0x5e0   : > { %v4171_v19 = vadd.f32 %v4170_v12, %v4122_v55 }
 0x5e1   : > { %v4326_v60 = vmax.f32 %v4264_v47, 0.0  ;;  %4545 = vadd.xlane.f32.xlu0 %v4544_v30 }
 0x5e2   : > { %v4220_v46 = vadd.f32 %v4219_v50, %v4171_v19 }
 0x5e3   : > { %v4399_v16 = vmul.f32 %v7486_v4, %v4326_v60 }
 0x5e5   : > { %v4473_v18 = vmul.f32 %v7494_v13, %v4399_v16 }
 0x5e6   : > { %v4266_v43 = vpop.f32.mrf.mxu3 }
 0x5e7   : > { %v4267_v8 = vadd.f32 %v4266_v43, %v4218_v10  ;;  %v4549_v59 = vadd.f32 %v7472_v61, %v4473_v18 }
 0x5e9   : > { %v4330_v40 = vmax.f32 %v4267_v8, 0.0  ;;  %4550 = vadd.xlane.f32.xlu1 %v4549_v59 }
 0x5eb   : > { %v4403_v22 = vmul.f32 %v7486_v4, %v4330_v40 }
 0x5ed   : > { %v4477_v58 = vmul.f32 %v7494_v13, %v4403_v22 }
 0x5ee   : > { %v4268_v38 = vpop.f32.mrf.mxu3 }
 0x5ef   : > { %v4269_v61 = vadd.f32 %v4268_v38, %v4220_v46  ;;  %v4554_v36 = vadd.f32 %v7481_v35, %v4477_v58 }
 0x5f1   : > { %v4334_v41 = vmax.f32 %v4269_v61, 0.0  ;;  %4555 = vadd.xlane.f32.xlu2 %v4554_v36 }
 0x5f3   : > { %v4407_v39 = vmul.f32 %v7486_v4, %v4334_v41 }
 0x5f4   : > { %v4486_v35 = vpop.xlane.xlu0 %4485 }
 0x5f5   : > { %v4566_v33 = vadd.f32 %v6137_v5, %v4486_v35  ;;  %v4481_v51 = vmul.f32 %v7494_v13, %v4407_v39 }
 0x5f7   : > { %4583 = vst.msk [vmem:[%s6417_s21] sm:$0xff] %vm4582_vm12, %v4566_v33  ;;  %v4559_v57 = vadd.f32 %v7489_v32, %v4481_v51 }
 0x5f9   : > { %4560 = vadd.xlane.f32.xlu0 %v4559_v57 }
 0x5fc   : > { %v4491_v49 = vpop.xlane.xlu0 %4490 }
 0x5fd   : > { %v4567_v28 = vadd.f32 %v6137_v5, %v4491_v49 }
 0x5ff   : > { %4584 = vst.msk [vmem:[%s6417_s21 + $0x8] sm:$0xff] %vm4582_vm12, %v4567_v28 }
 0x604   : > { %v4496_v4 = vpop.xlane.xlu1 %4495 }
 0x605   : > { %v4568_v29 = vadd.f32 %v6137_v5, %v4496_v4 }
 0x607   : > { %4585 = vst.msk [vmem:[%s6417_s21 + $0x10] sm:$0xff] %vm4582_vm12, %v4568_v29 }
 0x60c   : > { %v4501_v56 = vpop.xlane.xlu1 %4500 }
 0x60d   : > { %v4569_v62 = vadd.f32 %v6137_v5, %v4501_v56 }
 0x60f   : > { %4586 = vst.msk [vmem:[%s6417_s21 + $0x18] sm:$0xff] %vm4582_vm12, %v4569_v62 }
 0x614   : > { %v4506_v13 = vpop.xlane.xlu2 %4505 }
 0x615   : > { %v4570_v25 = vadd.f32 %v6137_v5, %v4506_v13 }
 0x617   : > { %4587 = vst.msk [vmem:[%s6417_s21 + $0x20] sm:$0xff] %vm4582_vm12, %v4570_v25 }
 0x61c   : > { %v4511_v32 = vpop.xlane.xlu2 %4510 }
 0x61d   : > { %v4571_v54 = vadd.f32 %v6137_v5, %v4511_v32 }
 0x61f   : > { %4588 = vst.msk [vmem:[%s6417_s21 + $0x28] sm:$0xff] %vm4582_vm12, %v4571_v54 }
 0x624   : > { %v4516_v27 = vpop.xlane.xlu0 %4515 }
 0x625   : > { %v4572_v23 = vadd.f32 %v6137_v5, %v4516_v27 }
 0x627   : > { %4589 = vst.msk [vmem:[%s6417_s21 + $0x30] sm:$0xff] %vm4582_vm12, %v4572_v23 }
 0x62c   : > { %v4521_v21 = vpop.xlane.xlu1 %4520 }
 0x62d   : > { %v4573_v37 = vadd.f32 %v6137_v5, %v4521_v21 }
 0x62f   : > { %4590 = vst.msk [vmem:[%s6417_s21 + $0x38] sm:$0xff] %vm4582_vm12, %v4573_v37 }
 0x634   : > { %v4526_v15 = vpop.xlane.xlu2 %4525 }
 0x635   : > { %v4574_v53 = vadd.f32 %v6137_v5, %v4526_v15 }
 0x637   : > { %4591 = vst.msk [vmem:[%s6417_s21 + $0x40] sm:$0xff] %vm4582_vm12, %v4574_v53 }
 0x63c   : > { %v4531_v0 = vpop.xlane.xlu0 %4530 }
 0x63d   : > { %v4575_v6 = vadd.f32 %v6137_v5, %v4531_v0 }
 0x63f   : > { %4592 = vst.msk [vmem:[%s6417_s21 + $0x48] sm:$0xff] %vm4582_vm12, %v4575_v6 }
 0x644   : > { %v4536_v20 = vpop.xlane.xlu1 %4535 }
 0x645   : > { %v4576_v52 = vadd.f32 %v6137_v5, %v4536_v20 }
 0x647   : > { %4593 = vst.msk [vmem:[%s6417_s21 + $0x50] sm:$0xff] %vm4582_vm12, %v4576_v52 }
 0x64c   : > { %v4541_v14 = vpop.xlane.xlu2 %4540 }
 0x64d   : > { %v4577_v2 = vadd.f32 %v6137_v5, %v4541_v14 }
 0x64f   : > { %4594 = vst.msk [vmem:[%s6417_s21 + $0x58] sm:$0xff] %vm4582_vm12, %v4577_v2 }
 0x654   : > { %v4546_v42 = vpop.xlane.xlu0 %4545 }
 0x655   : > { %v4578_v24 = vadd.f32 %v6137_v5, %v4546_v42 }
 0x657   : > { %4595 = vst.msk [vmem:[%s6417_s21 + $0x60] sm:$0xff] %vm4582_vm12, %v4578_v24 }
 0x65c   : > { %v4551_v63 = vpop.xlane.xlu1 %4550 }
 0x65d   : > { %v4579_v17 = vadd.f32 %v6137_v5, %v4551_v63 }
 0x65f   : > { %4596 = vst.msk [vmem:[%s6417_s21 + $0x68] sm:$0xff] %vm4582_vm12, %v4579_v17 }
 0x664   : > { %v4556_v3 = vpop.xlane.xlu2 %4555 }
 0x665   : > { %v4580_v31 = vadd.f32 %v6137_v5, %v4556_v3 }
 0x667   : > { %4597 = vst.msk [vmem:[%s6417_s21 + $0x70] sm:$0xff] %vm4582_vm12, %v4580_v31 }
 0x66c   : > { %v4561_v34 = vpop.xlane.xlu0 %4560 }
 0x66d   : > { %v4581_v7 = vadd.f32 %v6137_v5, %v4561_v34 }
 0x66f   : > { %4598 = vst.msk [vmem:[%s6417_s21 + $0x78] sm:$0xff] %vm4582_vm12, %v4581_v7 }
 0x670   : > { %6272 = dma.done.wait (%p6108_p8), [#allocation6], 64  }
 0x671   : > { %6274 = vsyncadd (%p6108_p8), [#allocation6], 4294967232 }
 0x672   : > { %6276 = dma.done.wait (%p6108_p8), [#allocation11], 64  }
 0x673   : > { %6278 = vsyncadd (%p6108_p8), [#allocation11], 4294967232 }
 0x674 PF: > { %s33_s17 = sadd.s32 1, %s6281_s17  }
 0x675   : > { %p30_p9 = scmp.ge.s32.totalorder %s33_s17, 4  }
 0x677   :  { %32 = sbr.rel (!%p30_p9) target bundleno = 8 (0x8), region = 128 }
 0x67c   :  { %4655 = vsyncpa [#allocation5], 1 }
 0x67d   :  { %4657 = vsyncpa [#allocation5 + $0x1], 1 }
 0x67e   :  { %4658 = vsyncpa [#allocation8], 1 }
 0x67f   :  { %4659 = vsyncpa [#allocation6], 1 }
 0x680   :  { %4661 = vsyncpa [#allocation6 + $0x1], 1 }
 0x681   :  { %4662 = vsyncpa [#allocation11], 1 }

</bundles_post_ra>
